<compile_context>
chip_gen: v7x
topology: tpu7x:2x2x1
jax: 0.10.0
libtpu: 0.0.40
codegen_flags: <defaults>
</compile_context>

<pallas_src>
from functools import partial

import jax
import jax.numpy as jnp
import numpy as np
from jax.experimental import pallas as pl
from jax.experimental.pallas import tpu as pltpu

C1 = 8            # conv1 output channels
C2 = 16           # conv2 output channels
P = 5             # adaptive pool output size (5x5)
HID = 128         # FC hidden width
N_ACT_PAD = 256   # actor logits padded to 2 lane-tiles
OUT_W = 384       # [padded actor logits (256) | padded critic value (128)]
NEG_BIG = -1e30


# ------------------------------ Pallas kernel ------------------------------ #

def _ppo_fused_kernel(x_ref, rhs1_ref, b1_ref, rhs2_ref, b2_ref,
                      pool_ref, wf_ref, bh1_ref, wh2_ref, bh2_ref,
                      out_ref, a1p_ref, *, H, W, Bt):
    """Whole PPOPolicy forward for a block of Bt samples (grid axis = batch block)."""
    f32 = jnp.float32
    wdt = rhs1_ref.dtype          # matmul operand dtype (f32 or bf16); accum stays f32
    Hp = H + 2                    # rows per sample incl. the two zero pad rows
    M = Bt * Hp                   # stacked padded rows in this block
    R = M - 2                     # rows produced by the row-shifted conv matmuls

    # ---- conv1 (3x3, 1->8, pad=1) + ReLU: three row-shifted banded matmuls ----
    # Horizontal padding is folded into rhs1; vertical padding came from the host.
    acc1 = jnp.dot(x_ref[0:R, :].astype(wdt), rhs1_ref[0], preferred_element_type=f32)
    acc1 = acc1 + jnp.dot(x_ref[1:R + 1, :].astype(wdt), rhs1_ref[1],
                          preferred_element_type=f32)
    acc1 = acc1 + jnp.dot(x_ref[2:R + 2, :].astype(wdt), rhs1_ref[2],
                          preferred_element_type=f32)
    a1 = jnp.maximum(acc1 + b1_ref[...], 0.0)                        # [R, W*C1] f32

    # Rows r with (r mod Hp) in {H, H+1} straddle two samples -> junk; they land on
    # the pad-row positions of a1p below and must be exactly zero for conv2.
    row = jax.lax.broadcasted_iota(jnp.int32, (R, W * C1), 0) % Hp
    a1 = jnp.where(row < H, a1, 0.0)

    # Rebuild the vertically padded conv1 activation (same Hp-per-sample layout).
    # Re-zero the two boundary rows every step (megacore-safe: no program_id gate).
    a1p_ref[0:1, :] = jnp.zeros((1, W * C1), wdt)
    a1p_ref[M - 1:M, :] = jnp.zeros((1, W * C1), wdt)
    a1p_ref[1:M - 1, :] = a1.astype(wdt)

    # ---- conv2 (3x3, 8->16, pad=1) + ReLU ----
    acc2 = jnp.dot(a1p_ref[0:R, :], rhs2_ref[0], preferred_element_type=f32)
    acc2 = acc2 + jnp.dot(a1p_ref[1:R + 1, :], rhs2_ref[1], preferred_element_type=f32)
    acc2 = acc2 + jnp.dot(a1p_ref[2:R + 2, :], rhs2_ref[2], preferred_element_type=f32)
    a2 = jnp.maximum(acc2 + b2_ref[...], 0.0)                        # [R, W*C2] f32

    # ---- AdaptiveAvgPool over rows: one block-diagonal batched pool matmul ----
    # pool_ref has zero columns on the junk rows, so a2 needs no extra masking.
    t = jnp.dot(pool_ref[...], a2.astype(wdt), preferred_element_type=f32)  # [P*Bt, W*C2]

    # ---- AdaptiveAvgPool cols + actor/critic FC1, folded into ONE K=P*W*C2 dot ----
    tc = t.astype(wdt)
    tcat = jnp.concatenate([tc[i * Bt:(i + 1) * Bt, :] for i in range(P)],
                           axis=1)                                    # [Bt, P*W*C2]
    h = jnp.dot(tcat, wf_ref[...], preferred_element_type=f32) + bh1_ref[...]
    h = jnp.maximum(h, 0.0)                                           # [Bt, 2*HID] f32

    # ---- FC2: block-diagonal [actor logits (pad 256) | critic value @ lane 256] ----
    o = jnp.dot(h.astype(wdt), wh2_ref[...], preferred_element_type=f32) + bh2_ref[...]

    # log-softmax over the padded 256-lane actor block (pad bias -1e30 -> exp = 0)
    logits = o[:, 0:N_ACT_PAD]
    m = jnp.max(logits, axis=-1, keepdims=True)
    e = jnp.exp(logits - m)
    s = jnp.sum(e, axis=-1, keepdims=True)
    logp = logits - m - jnp.log(s)

    # Single lane/sublane-dense [Bt, 384] store.
    out_ref[...] = jnp.concatenate([logp, o[:, N_ACT_PAD:OUT_W]], axis=1)


# ------------------------- host-side weight prepack ------------------------ #

def _adaptive_pool_matrix(n_in, n_out):
    """Row-stochastic matrix reproducing torch AdaptiveAvgPool1d bins."""
    m = np.zeros((n_out, n_in), dtype=np.float32)
    for i in range(n_out):
        s = (i * n_in) // n_out
        e = -((-(i + 1) * n_in) // n_out)   # ceil((i+1)*n_in/n_out)
        m[i, s:e] = 1.0 / (e - s)
    return m


def prepack_params(params, H=16, W=16, num_stocks=10, dtype=jnp.float32):
    """One-time repacking of module parameters into kernel-friendly matrices.

    Matmul weight matrices are cast to `dtype` (bf16 for the MXU fast path);
    biases stay float32 because they feed f32 accumulators / elementwise math.
    """
    n_act = num_stocks + 100 + 100 + 2
    assert n_act <= N_ACT_PAD
    w1 = np.asarray(params["conv1_w"], np.float32)   # (C1, 1, 3, 3)
    b1 = np.asarray(params["conv1_b"], np.float32)
    w2 = np.asarray(params["conv2_w"], np.float32)   # (C2, C1, 3, 3)
    b2 = np.asarray(params["conv2_b"], np.float32)
    wa1 = np.asarray(params["wa1"], np.float32)      # (C2*25, 128)
    ba1 = np.asarray(params["ba1"], np.float32)
    wa2 = np.asarray(params["wa2"], np.float32)      # (128, n_act)
    ba2 = np.asarray(params["ba2"], np.float32)
    wc1 = np.asarray(params["wc1"], np.float32)
    bc1 = np.asarray(params["bc1"], np.float32)
    wc2 = np.asarray(params["wc2"], np.float32)      # (128, 1)
    bc2 = np.asarray(params["bc2"], np.float32)

    # Banded conv matrices: output column = w*C + c_out; horizontal padding folded in.
    rhs1 = np.zeros((3, W, W * C1), np.float32)
    rhs2 = np.zeros((3, W * C1, W * C2), np.float32)
    for dy in range(3):
        for w in range(W):
            for dx in range(3):
                x = w + dx - 1
                if 0 <= x < W:
                    rhs1[dy, x, w * C1:(w + 1) * C1] = w1[:, 0, dy, dx]
                    rhs2[dy, x * C1:(x + 1) * C1, w * C2:(w + 1) * C2] = w2[:, :, dy, dx].T
    b1_il = np.tile(b1, W)[None, :]                  # (1, W*C1)
    b2_il = np.tile(b2, W)[None, :]                  # (1, W*C2)

    # FC1 (actor | critic fused): reorder rows from torch flatten order d*25+i*5+j to
    # the pooled layout [i, j*C2+d], then fold the column pooling so the kernel does
    # ONE K = P*W*C2 matmul instead of five serial M=1 dots.
    wh1 = np.concatenate([wa1, wc1], axis=1)                          # (400, 2*HID)
    wh1 = wh1.reshape(C2, P, P, 2 * HID).transpose(1, 2, 0, 3).reshape(P, P * C2, 2 * HID)
    pw = _adaptive_pool_matrix(W, P)
    pw2 = np.zeros((W * C2, P * C2), np.float32)
    eye = np.eye(C2, dtype=np.float32)
    for j in range(P):
        for w in range(W):
            pw2[w * C2:(w + 1) * C2, j * C2:(j + 1) * C2] = pw[j, w] * eye
    wfold = np.concatenate([pw2 @ wh1[i] for i in range(P)], axis=0)   # (P*W*C2, 2*HID)
    bh1 = np.concatenate([ba1, bc1])[None, :]                          # (1, 2*HID)

    # FC2 block-diagonal: actor (padded to 256 with -1e30 bias) | critic value @ col 256.
    wh2 = np.zeros((2 * HID, OUT_W), np.float32)
    wh2[:HID, :n_act] = wa2
    wh2[HID:, N_ACT_PAD:N_ACT_PAD + 1] = wc2
    bh2 = np.zeros((1, OUT_W), np.float32)
    bh2[0, :n_act] = ba2
    bh2[0, n_act:N_ACT_PAD] = NEG_BIG
    bh2[0, N_ACT_PAD] = bc2[0]

    mats = dict(rhs1=rhs1, rhs2=rhs2, wfold=wfold, wh2=wh2)
    vecs = dict(b1=b1_il, b2=b2_il, bh1=bh1, bh2=bh2)
    packed = {k: jnp.asarray(v, dtype) for k, v in mats.items()}
    packed.update({k: jnp.asarray(v, jnp.float32) for k, v in vecs.items()})
    return packed


# --------------------------------- wrapper --------------------------------- #

def ppo_policy_forward(packed, state_nchw, num_stocks=10, block_batch=8):
    B, C_in, H, W = state_nchw.shape
    assert C_in == 1
    assert block_batch % 8 == 0, "block_batch must be a multiple of 8 (sublane tile)"
    n_act = num_stocks + 100 + 100 + 2
    assert packed["rhs1"].shape == (3, W, W * C1)
    wdt = packed["rhs1"].dtype
    Bt = block_batch
    B_pad = ((B + Bt - 1) // Bt) * Bt
    n_blk = B_pad // Bt
    Hp = H + 2
    M = Bt * Hp
    R = M - 2

    # Host-side vertical (and batch) zero padding, flattened so each kernel block is
    # a single [Bt*(H+2), W] sublane-stacked slab.
    x = state_nchw.reshape(B, H, W).astype(jnp.float32)
    x = jnp.pad(x, ((0, B_pad - B), (1, 1), (0, 0)))
    xflat = x.reshape(B_pad * Hp, W)

    # Block-diagonal batched row-pool matrix (trace-time constant; zero columns on the
    # junk rows so they never leak into the pooled features).
    ph = _adaptive_pool_matrix(H, P)
    pool_np = np.zeros((P * Bt, R), np.float32)
    for s in range(Bt):
        for i in range(P):
            pool_np[i * Bt + s, s * Hp:s * Hp + H] = ph[i]
    pool = jnp.asarray(pool_np, wdt)

    def full(shape):
        return pl.BlockSpec(shape, lambda b, n=len(shape): (0,) * n)

    kernel = partial(_ppo_fused_kernel, H=H, W=W, Bt=Bt)
    out = pl.pallas_call(
        kernel,
        out_shape=jax.ShapeDtypeStruct((B_pad, OUT_W), jnp.float32),
        grid=(n_blk,),
        in_specs=[
            pl.BlockSpec((M, W), lambda b: (b, 0)),        # stacked padded inputs
            full((3, W, W * C1)), full((1, W * C1)),       # conv1 (weights ~2-4 MB total
            full((3, W * C1, W * C2)), full((1, W * C2)),  #   double-buffered: << VMEM)
            full((P * Bt, R)),                             # batched row-pool matrix
            full((P * W * C2, 2 * HID)), full((1, 2 * HID)),   # folded col-pool + FC1
            full((2 * HID, OUT_W)), full((1, OUT_W)),      # FC2 (actor | critic)
        ],
        out_specs=pl.BlockSpec((Bt, OUT_W), lambda b: (b, 0)),
        scratch_shapes=[pltpu.VMEM((M, W * C1), wdt)],     # vertically padded conv1 out
        compiler_params=pltpu.CompilerParams(dimension_semantics=("parallel",)),
    )(xflat, packed["rhs1"], packed["b1"], packed["rhs2"], packed["b2"],
      pool, packed["wfold"], packed["bh1"], packed["wh2"], packed["bh2"])
    out = out[:B]

    # TODO(synk): torch.distributions.Categorical has no Pallas equivalent; return the
    # exact tensors the module feeds to Categorical(probs=...) (sliced log_softmax over
    # all 212 logits, as in the torch code) plus the critic value.
    stock_p = out[:, :10]
    x_p = out[:, 10:110]
    y_p = out[:, 110:210]
    rot_p = out[:, n_act - 2:n_act]
    value = out[:, N_ACT_PAD:N_ACT_PAD + 1]
    return stock_p, x_p, y_p, rot_p, value


# ------------------------- reference / test harness ------------------------ #

def init_params(key, num_stocks=10):
    """Deterministic synthetic parameters with the same shapes as the torch module."""
    n_act = num_stocks + 100 + 100 + 2
    ks = jax.random.split(key, 12)
    w = lambda k, shape, s: jax.random.normal(k, shape, jnp.float32) * s
    return dict(
        conv1_w=w(ks[0], (C1, 1, 3, 3), 0.2),   conv1_b=w(ks[1], (C1,), 0.05),
        conv2_w=w(ks[2], (C2, C1, 3, 3), 0.1),  conv2_b=w(ks[3], (C2,), 0.05),
        wa1=w(ks[4], (C2 * P * P, HID), 0.05),  ba1=w(ks[5], (HID,), 0.05),
        wa2=w(ks[6], (HID, n_act), 0.05),       ba2=w(ks[7], (n_act,), 0.05),
        wc1=w(ks[8], (C2 * P * P, HID), 0.05),  bc1=w(ks[9], (HID,), 0.05),
        wc2=w(ks[10], (HID, 1), 0.05),          bc2=w(ks[11], (1,), 0.05),
    )


def _reference_forward(params, state_nchw, num_stocks=10):
    """Plain-JAX replica of the torch module, for numerical validation."""
    hi = jax.lax.Precision.HIGHEST
    B, _, H, W = state_nchw.shape
    x = jnp.transpose(state_nchw, (0, 2, 3, 1)).astype(jnp.float32)
    w1 = jnp.transpose(params["conv1_w"], (2, 3, 1, 0))
    dn1 = jax.lax.conv_dimension_numbers(x.shape, w1.shape, ("NHWC", "HWIO", "NHWC"))
    a1 = jax.nn.relu(jax.lax.conv_general_dilated(
        x, w1, (1, 1), "SAME", dimension_numbers=dn1, precision=hi) + params["conv1_b"])
    w2 = jnp.transpose(params["conv2_w"], (2, 3, 1, 0))
    dn2 = jax.lax.conv_dimension_numbers(a1.shape, w2.shape, ("NHWC", "HWIO", "NHWC"))
    a2 = jax.nn.relu(jax.lax.conv_general_dilated(
        a1, w2, (1, 1), "SAME", dimension_numbers=dn2, precision=hi) + params["conv2_b"])
    ph = jnp.asarray(_adaptive_pool_matrix(H, P))
    pw = jnp.asarray(_adaptive_pool_matrix(W, P))
    pooled = jnp.einsum("ih,jw,bhwc->bcij", ph, pw, a2, precision=hi)
    feats = pooled.reshape(B, C2 * P * P)
    ha = jax.nn.relu(jnp.dot(feats, params["wa1"], precision=hi) + params["ba1"])
    logits = jnp.dot(ha, params["wa2"], precision=hi) + params["ba2"]
    logp = jax.nn.log_softmax(logits, axis=-1)
    hc = jax.nn.relu(jnp.dot(feats, params["wc1"], precision=hi) + params["bc1"])
    value = jnp.dot(hc, params["wc2"], precision=hi) + params["bc2"]
    return logp[:, :10], logp[:, 10:110], logp[:, 110:210], logp[:, -2:], value


if __name__ == "__main__":
    key = jax.random.PRNGKey(0)
    pkey, xkey = jax.random.split(key)
    num_stocks = 10
    B, H, W = 16, 16, 16   # two blocks of 8 samples -> grid=2 (both v7x TensorCores busy)
    params = init_params(pkey, num_stocks=num_stocks)
    state = jax.random.normal(xkey, (B, 1, H, W), jnp.float32)   # NCHW like torch

    refs = _reference_forward(params, state, num_stocks=num_stocks)

    # Validate both weight packings: f32 (tight) and bf16 MXU fast path (looser).
    for dtype, tol in ((jnp.float32, 2e-2), (jnp.bfloat16, 6e-2)):
        packed = prepack_params(params, H=H, W=W, num_stocks=num_stocks, dtype=dtype)
        fwd = jax.jit(partial(ppo_policy_forward, num_stocks=num_stocks, block_batch=8))
        outs = jax.block_until_ready(fwd(packed, state))

        stock_p, x_p, y_p, rot_p, value = outs
        assert stock_p.shape == (B, 10)
        assert x_p.shape == (B, 100)
        assert y_p.shape == (B, 100)
        assert rot_p.shape == (B, 2)
        assert value.shape == (B, 1)

        for got, want in zip(outs, refs):
            np.testing.assert_allclose(np.asarray(got), np.asarray(want), rtol=tol, atol=tol)

    print("KERNEL_OK")
</pallas_src>

<mosaic_0001>
module attributes {stable_mosaic.version = 11 : i64} {
  func.func @_ppo_fused_kernel(%arg0: i32, %arg1: memref<144x16xf32, #tpu.memory_space<vmem>>, %arg2: memref<3x16x128xf32, #tpu.memory_space<vmem>>, %arg3: memref<1x128xf32, #tpu.memory_space<vmem>>, %arg4: memref<3x128x256xf32, #tpu.memory_space<vmem>>, %arg5: memref<1x256xf32, #tpu.memory_space<vmem>>, %arg6: memref<40x142xf32, #tpu.memory_space<vmem>>, %arg7: memref<1280x256xf32, #tpu.memory_space<vmem>>, %arg8: memref<1x256xf32, #tpu.memory_space<vmem>>, %arg9: memref<256x384xf32, #tpu.memory_space<vmem>>, %arg10: memref<1x384xf32, #tpu.memory_space<vmem>>, %arg11: memref<8x384xf32, #tpu.memory_space<vmem>>, %arg12: memref<144x128xf32, #tpu.memory_space<vmem>>) attributes {dimension_semantics = [#tpu.dimension_semantics<parallel>], iteration_bounds = array<i64: 2>, scalar_prefetch = 0 : i64, scratch_operands = 1 : i64, tpu.core_type = #tpu.core_type<tc>, window_params = [{transform_indices = @transform_0, window_bounds = array<i64: 144, 16>}, {pipeline_mode = #tpu.pipeline_mode<synchronous>, transform_indices = @transform_1, window_bounds = array<i64: 3, 16, 128>}, {pipeline_mode = #tpu.pipeline_mode<synchronous>, transform_indices = @transform_2, window_bounds = array<i64: 1, 128>}, {pipeline_mode = #tpu.pipeline_mode<synchronous>, transform_indices = @transform_3, window_bounds = array<i64: 3, 128, 256>}, {pipeline_mode = #tpu.pipeline_mode<synchronous>, transform_indices = @transform_4, window_bounds = array<i64: 1, 256>}, {pipeline_mode = #tpu.pipeline_mode<synchronous>, transform_indices = @transform_5, window_bounds = array<i64: 40, 142>}, {pipeline_mode = #tpu.pipeline_mode<synchronous>, transform_indices = @transform_6, window_bounds = array<i64: 1280, 256>}, {pipeline_mode = #tpu.pipeline_mode<synchronous>, transform_indices = @transform_7, window_bounds = array<i64: 1, 256>}, {pipeline_mode = #tpu.pipeline_mode<synchronous>, transform_indices = @transform_8, window_bounds = array<i64: 256, 384>}, {pipeline_mode = #tpu.pipeline_mode<synchronous>, transform_indices = @transform_9, window_bounds = array<i64: 1, 384>}, {transform_indices = @transform_10, window_bounds = array<i64: 8, 384>}]} {
    %c0 = arith.constant 0 : index
    %c0_0 = arith.constant 0 : index
    %0 = vector.load %arg1[%c0, %c0_0] : memref<144x16xf32, #tpu.memory_space<vmem>>, vector<142x16xf32>
    %c0_1 = arith.constant 0 : index
    %c0_2 = arith.constant 0 : index
    %c0_3 = arith.constant 0 : index
    %1 = vector.load %arg2[%c0_1, %c0_2, %c0_3] : memref<3x16x128xf32, #tpu.memory_space<vmem>>, vector<1x16x128xf32>
    %2 = vector.shape_cast %1 : vector<1x16x128xf32> to vector<16x128xf32>
    %cst = arith.constant dense<0.000000e+00> : vector<142x128xf32>
    %3 = tpu.matmul %0, %2, %cst {dimension_numbers = #tpu.dot_dimension_numbers<[1], [0], [0], [1], [0, 0, 1, 1], [], []>} : vector<142x16xf32>, vector<16x128xf32>, vector<142x128xf32> -> vector<142x128xf32>
    %c1 = arith.constant 1 : index
    %c0_4 = arith.constant 0 : index
    %4 = vector.load %arg1[%c1, %c0_4] : memref<144x16xf32, #tpu.memory_space<vmem>>, vector<142x16xf32>
    %c1_5 = arith.constant 1 : index
    %c0_6 = arith.constant 0 : index
    %c0_7 = arith.constant 0 : index
    %5 = vector.load %arg2[%c1_5, %c0_6, %c0_7] : memref<3x16x128xf32, #tpu.memory_space<vmem>>, vector<1x16x128xf32>
    %6 = vector.shape_cast %5 : vector<1x16x128xf32> to vector<16x128xf32>
    %cst_8 = arith.constant dense<0.000000e+00> : vector<142x128xf32>
    %7 = tpu.matmul %4, %6, %cst_8 {dimension_numbers = #tpu.dot_dimension_numbers<[1], [0], [0], [1], [0, 0, 1, 1], [], []>} : vector<142x16xf32>, vector<16x128xf32>, vector<142x128xf32> -> vector<142x128xf32>
    %8 = arith.addf %3, %7 : vector<142x128xf32>
    %c2 = arith.constant 2 : index
    %c0_9 = arith.constant 0 : index
    %9 = vector.load %arg1[%c2, %c0_9] : memref<144x16xf32, #tpu.memory_space<vmem>>, vector<142x16xf32>
    %c2_10 = arith.constant 2 : index
    %c0_11 = arith.constant 0 : index
    %c0_12 = arith.constant 0 : index
    %10 = vector.load %arg2[%c2_10, %c0_11, %c0_12] : memref<3x16x128xf32, #tpu.memory_space<vmem>>, vector<1x16x128xf32>
    %11 = vector.shape_cast %10 : vector<1x16x128xf32> to vector<16x128xf32>
    %cst_13 = arith.constant dense<0.000000e+00> : vector<142x128xf32>
    %12 = tpu.matmul %9, %11, %cst_13 {dimension_numbers = #tpu.dot_dimension_numbers<[1], [0], [0], [1], [0, 0, 1, 1], [], []>} : vector<142x16xf32>, vector<16x128xf32>, vector<142x128xf32> -> vector<142x128xf32>
    %13 = arith.addf %8, %12 : vector<142x128xf32>
    %c0_14 = arith.constant 0 : index
    %c0_15 = arith.constant 0 : index
    %14 = vector.load %arg3[%c0_14, %c0_15] : memref<1x128xf32, #tpu.memory_space<vmem>>, vector<1x128xf32>
    %15 = vector.broadcast %14 : vector<1x128xf32> to vector<142x128xf32>
    %16 = arith.addf %13, %15 : vector<142x128xf32>
    %cst_16 = arith.constant 0.000000e+00 : f32
    %17 = vector.broadcast %cst_16 : f32 to vector<142x128xf32>
    %18 = arith.maximumf %16, %17 : vector<142x128xf32>
    %19 = tpu.iota {dimensions = array<i32: 0>} : vector<142x128xi32>
    %c18_i32 = arith.constant 18 : i32
    %c0_i32 = arith.constant 0 : i32
    %20 = arith.cmpi eq, %c18_i32, %c0_i32 : i32
    %c1_i32 = arith.constant 1 : i32
    %21 = arith.select %20, %c1_i32, %c18_i32 : i32
    %22 = vector.broadcast %21 : i32 to vector<142x128xi32>
    %23 = arith.remsi %19, %22 : vector<142x128xi32>
    %c0_i32_17 = arith.constant 0 : i32
    %24 = vector.broadcast %c0_i32_17 : i32 to vector<142x128xi32>
    %25 = arith.cmpi ne, %23, %24 : vector<142x128xi32>
    %c0_i32_18 = arith.constant 0 : i32
    %26 = vector.broadcast %c0_i32_18 : i32 to vector<142x128xi32>
    %27 = arith.cmpi slt, %23, %26 : vector<142x128xi32>
    %c0_i32_19 = arith.constant 0 : i32
    %28 = arith.cmpi slt, %21, %c0_i32_19 : i32
    %29 = vector.broadcast %28 : i1 to vector<142x128xi1>
    %30 = vector.broadcast %29 : vector<142x128xi1> to vector<142x128xi1>
    %31 = arith.xori %27, %30 : vector<142x128xi1>
    %32 = arith.andi %31, %25 : vector<142x128xi1>
    %33 = vector.broadcast %21 : i32 to vector<142x128xi32>
    %34 = arith.addi %23, %33 : vector<142x128xi32>
    %35 = arith.select %32, %34, %23 : vector<142x128xi1>, vector<142x128xi32>
    %c16_i32 = arith.constant 16 : i32
    %36 = vector.broadcast %c16_i32 : i32 to vector<142x128xi32>
    %37 = arith.cmpi slt, %35, %36 : vector<142x128xi32>
    %cst_20 = arith.constant 0.000000e+00 : f32
    %38 = vector.broadcast %cst_20 : f32 to vector<142x128xf32>
    %39 = arith.select %37, %18, %38 : vector<142x128xi1>, vector<142x128xf32>
    %cst_21 = arith.constant 0.000000e+00 : f32
    %40 = vector.broadcast %cst_21 : f32 to vector<1x128xf32>
    %c0_22 = arith.constant 0 : index
    %c0_23 = arith.constant 0 : index
    %41 = vector.load %arg12[%c0_22, %c0_23] : memref<144x128xf32, #tpu.memory_space<vmem>>, vector<1x128xf32>
    tpu.vector_store %arg12[%c0_22, %c0_23], %40 {strides = array<i32>} : memref<144x128xf32, #tpu.memory_space<vmem>>, vector<1x128xf32>,
    %cst_24 = arith.constant 0.000000e+00 : f32
    %42 = vector.broadcast %cst_24 : f32 to vector<1x128xf32>
    %c143 = arith.constant 143 : index
    %c0_25 = arith.constant 0 : index
    %43 = vector.load %arg12[%c143, %c0_25] : memref<144x128xf32, #tpu.memory_space<vmem>>, vector<1x128xf32>
    tpu.vector_store %arg12[%c143, %c0_25], %42 {strides = array<i32>} : memref<144x128xf32, #tpu.memory_space<vmem>>, vector<1x128xf32>,
    %c1_26 = arith.constant 1 : index
    %c0_27 = arith.constant 0 : index
    %44 = vector.load %arg12[%c1_26, %c0_27] : memref<144x128xf32, #tpu.memory_space<vmem>>, vector<142x128xf32>
    tpu.vector_store %arg12[%c1_26, %c0_27], %39 {strides = array<i32>} : memref<144x128xf32, #tpu.memory_space<vmem>>, vector<142x128xf32>,
    %c0_28 = arith.constant 0 : index
    %c0_29 = arith.constant 0 : index
    %45 = vector.load %arg12[%c0_28, %c0_29] : memref<144x128xf32, #tpu.memory_space<vmem>>, vector<142x128xf32>
    %c0_30 = arith.constant 0 : index
    %c0_31 = arith.constant 0 : index
    %c0_32 = arith.constant 0 : index
    %46 = vector.load %arg4[%c0_30, %c0_31, %c0_32] : memref<3x128x256xf32, #tpu.memory_space<vmem>>, vector<1x128x256xf32>
    %47 = vector.shape_cast %46 : vector<1x128x256xf32> to vector<128x256xf32>
    %cst_33 = arith.constant dense<0.000000e+00> : vector<142x256xf32>
    %48 = tpu.matmul %45, %47, %cst_33 {dimension_numbers = #tpu.dot_dimension_numbers<[1], [0], [0], [1], [0, 0, 1, 1], [], []>} : vector<142x128xf32>, vector<128x256xf32>, vector<142x256xf32> -> vector<142x256xf32>
    %c1_34 = arith.constant 1 : index
    %c0_35 = arith.constant 0 : index
    %49 = vector.load %arg12[%c1_34, %c0_35] : memref<144x128xf32, #tpu.memory_space<vmem>>, vector<142x128xf32>
    %c1_36 = arith.constant 1 : index
    %c0_37 = arith.constant 0 : index
    %c0_38 = arith.constant 0 : index
    %50 = vector.load %arg4[%c1_36, %c0_37, %c0_38] : memref<3x128x256xf32, #tpu.memory_space<vmem>>, vector<1x128x256xf32>
    %51 = vector.shape_cast %50 : vector<1x128x256xf32> to vector<128x256xf32>
    %cst_39 = arith.constant dense<0.000000e+00> : vector<142x256xf32>
    %52 = tpu.matmul %49, %51, %cst_39 {dimension_numbers = #tpu.dot_dimension_numbers<[1], [0], [0], [1], [0, 0, 1, 1], [], []>} : vector<142x128xf32>, vector<128x256xf32>, vector<142x256xf32> -> vector<142x256xf32>
    %53 = arith.addf %48, %52 : vector<142x256xf32>
    %c2_40 = arith.constant 2 : index
    %c0_41 = arith.constant 0 : index
    %54 = vector.load %arg12[%c2_40, %c0_41] : memref<144x128xf32, #tpu.memory_space<vmem>>, vector<142x128xf32>
    %c2_42 = arith.constant 2 : index
    %c0_43 = arith.constant 0 : index
    %c0_44 = arith.constant 0 : index
    %55 = vector.load %arg4[%c2_42, %c0_43, %c0_44] : memref<3x128x256xf32, #tpu.memory_space<vmem>>, vector<1x128x256xf32>
    %56 = vector.shape_cast %55 : vector<1x128x256xf32> to vector<128x256xf32>
    %cst_45 = arith.constant dense<0.000000e+00> : vector<142x256xf32>
    %57 = tpu.matmul %54, %56, %cst_45 {dimension_numbers = #tpu.dot_dimension_numbers<[1], [0], [0], [1], [0, 0, 1, 1], [], []>} : vector<142x128xf32>, vector<128x256xf32>, vector<142x256xf32> -> vector<142x256xf32>
    %58 = arith.addf %53, %57 : vector<142x256xf32>
    %c0_46 = arith.constant 0 : index
    %c0_47 = arith.constant 0 : index
    %59 = vector.load %arg5[%c0_46, %c0_47] : memref<1x256xf32, #tpu.memory_space<vmem>>, vector<1x256xf32>
    %60 = vector.broadcast %59 : vector<1x256xf32> to vector<142x256xf32>
    %61 = arith.addf %58, %60 : vector<142x256xf32>
    %cst_48 = arith.constant 0.000000e+00 : f32
    %62 = vector.broadcast %cst_48 : f32 to vector<142x256xf32>
    %63 = arith.maximumf %61, %62 : vector<142x256xf32>
    %c0_49 = arith.constant 0 : index
    %c0_50 = arith.constant 0 : index
    %64 = vector.load %arg6[%c0_49, %c0_50] : memref<40x142xf32, #tpu.memory_space<vmem>>, vector<40x142xf32>
    %cst_51 = arith.constant dense<0.000000e+00> : vector<40x256xf32>
    %65 = tpu.matmul %64, %63, %cst_51 {dimension_numbers = #tpu.dot_dimension_numbers<[1], [0], [0], [1], [0, 0, 1, 1], [], []>} : vector<40x142xf32>, vector<142x256xf32>, vector<40x256xf32> -> vector<40x256xf32>
    %66 = vector.extract_strided_slice %65 {offsets = [0, 0], sizes = [8, 256], strides = [1, 1]} : vector<40x256xf32> to vector<8x256xf32>
    %67 = vector.extract_strided_slice %65 {offsets = [8, 0], sizes = [8, 256], strides = [1, 1]} : vector<40x256xf32> to vector<8x256xf32>
    %68 = vector.extract_strided_slice %65 {offsets = [16, 0], sizes = [8, 256], strides = [1, 1]} : vector<40x256xf32> to vector<8x256xf32>
    %69 = vector.extract_strided_slice %65 {offsets = [24, 0], sizes = [8, 256], strides = [1, 1]} : vector<40x256xf32> to vector<8x256xf32>
    %70 = vector.extract_strided_slice %65 {offsets = [32, 0], sizes = [8, 256], strides = [1, 1]} : vector<40x256xf32> to vector<8x256xf32>
    %71 = tpu.concatenate %66, %67, %68, %69, %70 in 1 : vector<8x256xf32>, vector<8x256xf32>, vector<8x256xf32>, vector<8x256xf32>, vector<8x256xf32> -> vector<8x1280xf32>
    %c0_52 = arith.constant 0 : index
    %c0_53 = arith.constant 0 : index
    %72 = vector.load %arg7[%c0_52, %c0_53] : memref<1280x256xf32, #tpu.memory_space<vmem>>, vector<1280x256xf32>
    %cst_54 = arith.constant dense<0.000000e+00> : vector<8x256xf32>
    %73 = tpu.matmul %71, %72, %cst_54 {dimension_numbers = #tpu.dot_dimension_numbers<[1], [0], [0], [1], [0, 0, 1, 1], [], []>} : vector<8x1280xf32>, vector<1280x256xf32>, vector<8x256xf32> -> vector<8x256xf32>
    %c0_55 = arith.constant 0 : index
    %c0_56 = arith.constant 0 : index
    %74 = vector.load %arg8[%c0_55, %c0_56] : memref<1x256xf32, #tpu.memory_space<vmem>>, vector<1x256xf32>
    %75 = vector.broadcast %74 : vector<1x256xf32> to vector<8x256xf32>
    %76 = arith.addf %73, %75 : vector<8x256xf32>
    %cst_57 = arith.constant 0.000000e+00 : f32
    %77 = vector.broadcast %cst_57 : f32 to vector<8x256xf32>
    %78 = arith.maximumf %76, %77 : vector<8x256xf32>
    %c0_58 = arith.constant 0 : index
    %c0_59 = arith.constant 0 : index
    %79 = vector.load %arg9[%c0_58, %c0_59] : memref<256x384xf32, #tpu.memory_space<vmem>>, vector<256x384xf32>
    %cst_60 = arith.constant dense<0.000000e+00> : vector<8x384xf32>
    %80 = tpu.matmul %78, %79, %cst_60 {dimension_numbers = #tpu.dot_dimension_numbers<[1], [0], [0], [1], [0, 0, 1, 1], [], []>} : vector<8x256xf32>, vector<256x384xf32>, vector<8x384xf32> -> vector<8x384xf32>
    %c0_61 = arith.constant 0 : index
    %c0_62 = arith.constant 0 : index
    %81 = vector.load %arg10[%c0_61, %c0_62] : memref<1x384xf32, #tpu.memory_space<vmem>>, vector<1x384xf32>
    %82 = vector.broadcast %81 : vector<1x384xf32> to vector<8x384xf32>
    %83 = arith.addf %80, %82 : vector<8x384xf32>
    %84 = vector.extract_strided_slice %83 {offsets = [0, 0], sizes = [8, 256], strides = [1, 1]} : vector<8x384xf32> to vector<8x256xf32>
    %cst_63 = arith.constant dense<0xFF800000> : vector<8xf32>
    %85 = vector.multi_reduction <maximumf>, %84, %cst_63 [1] : vector<8x256xf32> to vector<8xf32>
    %86 = vector.shape_cast %85 : vector<8xf32> to vector<8x1xf32>
    %87 = vector.broadcast %86 : vector<8x1xf32> to vector<8x256xf32>
    %88 = arith.subf %84, %87 : vector<8x256xf32>
    %89 = math.exp %88 : vector<8x256xf32>
    %cst_64 = arith.constant dense<0.000000e+00> : vector<8xf32>
    %90 = vector.multi_reduction <add>, %89, %cst_64 [1] : vector<8x256xf32> to vector<8xf32>
    %91 = vector.shape_cast %90 : vector<8xf32> to vector<8x1xf32>
    %92 = vector.broadcast %86 : vector<8x1xf32> to vector<8x256xf32>
    %93 = arith.subf %84, %92 : vector<8x256xf32>
    %94 = math.log %91 : vector<8x1xf32>
    %95 = vector.broadcast %94 : vector<8x1xf32> to vector<8x256xf32>
    %96 = arith.subf %93, %95 : vector<8x256xf32>
    %97 = vector.extract_strided_slice %83 {offsets = [0, 256], sizes = [8, 128], strides = [1, 1]} : vector<8x384xf32> to vector<8x128xf32>
    %98 = tpu.concatenate %96, %97 in 1 : vector<8x256xf32>, vector<8x128xf32> -> vector<8x384xf32>
    %c0_65 = arith.constant 0 : index
    %c0_66 = arith.constant 0 : index
    %99 = vector.load %arg11[%c0_65, %c0_66] : memref<8x384xf32, #tpu.memory_space<vmem>>, vector<8x384xf32>
    tpu.vector_store %arg11[%c0_65, %c0_66], %98 {strides = array<i32>} : memref<8x384xf32, #tpu.memory_space<vmem>>, vector<8x384xf32>,
    return
  }
  func.func @transform_0(%arg0: i32) -> (i32, i32) {
    %c0_i32 = arith.constant 0 : i32
    %c0_i32_0 = arith.constant 0 : i32
    return %arg0, %c0_i32 : i32, i32
  }
  func.func @transform_1(%arg0: i32) -> (i32, i32, i32) {
    %c0_i32 = arith.constant 0 : i32
    %c0_i32_0 = arith.constant 0 : i32
    %c0_i32_1 = arith.constant 0 : i32
    %c0_i32_2 = arith.constant 0 : i32
    return %c0_i32, %c0_i32_0, %c0_i32_1 : i32, i32, i32
  }
  func.func @transform_2(%arg0: i32) -> (i32, i32) {
    %c0_i32 = arith.constant 0 : i32
    %c0_i32_0 = arith.constant 0 : i32
    %c0_i32_1 = arith.constant 0 : i32
    return %c0_i32, %c0_i32_0 : i32, i32
  }
  func.func @transform_3(%arg0: i32) -> (i32, i32, i32) {
    %c0_i32 = arith.constant 0 : i32
    %c0_i32_0 = arith.constant 0 : i32
    %c0_i32_1 = arith.constant 0 : i32
    %c0_i32_2 = arith.constant 0 : i32
    return %c0_i32, %c0_i32_0, %c0_i32_1 : i32, i32, i32
  }
  func.func @transform_4(%arg0: i32) -> (i32, i32) {
    %c0_i32 = arith.constant 0 : i32
    %c0_i32_0 = arith.constant 0 : i32
    %c0_i32_1 = arith.constant 0 : i32
    return %c0_i32, %c0_i32_0 : i32, i32
  }
  func.func @transform_5(%arg0: i32) -> (i32, i32) {
    %c0_i32 = arith.constant 0 : i32
    %c0_i32_0 = arith.constant 0 : i32
    %c0_i32_1 = arith.constant 0 : i32
    return %c0_i32, %c0_i32_0 : i32, i32
  }
  func.func @transform_6(%arg0: i32) -> (i32, i32) {
    %c0_i32 = arith.constant 0 : i32
    %c0_i32_0 = arith.constant 0 : i32
    %c0_i32_1 = arith.constant 0 : i32
    return %c0_i32, %c0_i32_0 : i32, i32
  }
  func.func @transform_7(%arg0: i32) -> (i32, i32) {
    %c0_i32 = arith.constant 0 : i32
    %c0_i32_0 = arith.constant 0 : i32
    %c0_i32_1 = arith.constant 0 : i32
    return %c0_i32, %c0_i32_0 : i32, i32
  }
  func.func @transform_8(%arg0: i32) -> (i32, i32) {
    %c0_i32 = arith.constant 0 : i32
    %c0_i32_0 = arith.constant 0 : i32
    %c0_i32_1 = arith.constant 0 : i32
    return %c0_i32, %c0_i32_0 : i32, i32
  }
  func.func @transform_9(%arg0: i32) -> (i32, i32) {
    %c0_i32 = arith.constant 0 : i32
    %c0_i32_0 = arith.constant 0 : i32
    %c0_i32_1 = arith.constant 0 : i32
    return %c0_i32, %c0_i32_0 : i32, i32
  }
  func.func @transform_10(%arg0: i32) -> (i32, i32) {
    %c0_i32 = arith.constant 0 : i32
    %c0_i32_0 = arith.constant 0 : i32
    return %arg0, %c0_i32 : i32, i32
  }
}

</mosaic_0001>

<bundles_post_ra>
// kernel: ppo_policy_forward.1
= control target key start
LH: loop header
LB: loop body
LE: loop exit
PB: predicated region body
PF: predicated region fallthrough
CT: control target
= control target key end

     0   :  { %15 = vsyncpa [#allocation4], 0  ;;  %s6400_s0 = inlined_call_operand.vmem [shape: f32[288,16], index: 0, kind: input, shape index: {}]   ;;  %s6401_s1 = inlined_call_operand.hbm [shape: f32[3,16,128], index: 1, kind: input, shape index: {}]   ;;  %s6402_s2 = inlined_call_operand.hbm [shape: f32[1,128], index: 2, kind: input, shape index: {}]   ;;  %s6403_s3 = inlined_call_operand.hbm [shape: f32[3,128,256], index: 3, kind: input, shape index: {}]   ;;  %s6404_s4 = inlined_call_operand.hbm [shape: f32[1,256], index: 4, kind: input, shape index: {}]   ;;  %s6405_s5 = inlined_call_operand.hbm [shape: f32[40,142], index: 5, kind: input, shape index: {}]   ;;  %s6406_s6 = inlined_call_operand.hbm [shape: f32[1280,256], index: 6, kind: input, shape index: {}]   ;;  %s6407_s7 = inlined_call_operand.hbm [shape: f32[1,256], index: 7, kind: input, shape index: {}]   ;;  %s6408_s8 = inlined_call_operand.hbm [shape: f32[256,384], index: 8, kind: input, shape index: {}]   ;;  %s6409_s9 = inlined_call_operand.hbm [shape: f32[1,384], index: 9, kind: input, shape index: {}]   ;;  %s6410_s10 = inlined_call_operand.vmem [shape: f32[16,384], index: 10, kind: output, shape index: {}]  }
   0x1   :  { %16 = vsyncpa [#allocation6], 0 }
   0x2   :  { %17 = vsyncpa [#allocation9], 0 }
   0x3   :  { %18 = vsyncpa [#allocation12], 0 }
   0x4   :  { %19 = vsyncpa [#allocation15], 0  ;;  %s5101_s13 = smov 0  }
   0x5 LB: > { %s5029_s14 = smov [#allocation5]   ;;  %s5107_s16 = sadd.s32 4294967295, %s5027_s13   ;;  %s5027_s13 = sphi %s5101_s13, %s25_s13  }
   0x6   : > { %s297_s15 = sshll.u32 %s5029_s14, 4  ;;  %p3625_p0 = scmp.ge.s32.totalorder %s5027_s13, 1  ;;  %s5112_s15 = int_to_ptr.vmem [resolvable:$true] %s297_s15 }
   0x7   : > { %p271_p1 = scmp.lt.s32.totalorder %s5027_s13, 3  ;;  %p6411_p2 = scmp.eq.s32.totalorder %s5107_s16, 0 }
   0x8   : > { %s5030_s18 = smov [#allocation8]   ;;  %s5031_s21 = smov [#allocation11]  }
   0x9   : > { %p5114_p3 = pnand %p3625_p0, %p271_p1  ;;  %s321_s19 = sshll.u32 %s5030_s18, 4  ;;  %s5120_s19 = int_to_ptr.vmem [resolvable:$true] %s321_s19 }
   0xa   : > { %s344_s22 = sshll.u32 %s5031_s21, 4  ;;  %s5032_s23 = smov [#allocation14]   ;;  %s5128_s22 = int_to_ptr.vmem [resolvable:$true] %s344_s22 }
   0xb   : > { %s6419_s17 = scalar_select %p5114_p3, 1, 0 }
   0xc   : > { %p4655_p4 = pneg %p5114_p3  ;;  %s5130_s24 = sshll.u32 %s5032_s23, 4  ;;  %s369_s24 = int_to_ptr.vmem [resolvable:$true] %s5130_s24 }
   0xd   : > { %s4749_s27 = scalar_lea.hbm %s6402_s2, 16 }
   0xe   : > { %p5124_p5 = pnand %p6411_p2, %p4655_p4  ;;  %p4750_p6 = scmp.ne.s32.totalorder %s6402_s2, %s4749_s27 }
   0xf   : > { %p4756_p10 = scmp.lt.u32.totalorder %s4749_s27, %s6402_s2 }
  0x10   : > { %p5140_p7 = pneg %p5124_p5 }
  0x12   : > { %p4752_p8 = pnand %p5140_p7, %p4750_p6 }
  0x14   : > { %p4753_p9 = pneg %p4752_p8 }
  0x16   : > { %p4758_p11 = pnand %p4756_p10, %p4753_p9 }
  0x18   : > { %4761 = shalt.err (!%p4758_p11)
}
  0x19   : > { %s4762_s14 = scalar_lea.vmem %s5112_s15, 16  ;;  %s4769_s18 = scalar_lea.vmem %s5112_s15, 32 }
  0x1a   : > { %p4763_p12 = scmp.ne.s32.totalorder %s5112_s15, %s4762_s14  ;;  %p4770_p1 = scmp.lt.s32.totalorder %s5112_s15, %s5112_s15 }
  0x1b   : > { %p4771_p4 = scmp.lt.s32.totalorder %s4769_s18, %s4762_s14 }
  0x1c   : > { %p4765_p13 = pnand %p4763_p12, %p5140_p7 }
  0x1d   : > { %p4772_p6 = por %p4771_p4, %p4770_p1 }
  0x1e   : > { %p4766_p0 = pneg %p4765_p13 }
  0x20   : > { %p4773_p8 = pnand %p4772_p6, %p4766_p0 }
  0x22   : > { %4776 = shalt.err (!%p4773_p8)
}
  0x23   : > { %4661 = dma.hbm_to_vmem [thread:$0]  (!%p5124_p5), %s6402_s2, 16, %s5112_s15, [#allocation6]  }
  0x24   : > { %s4777_s27 = scalar_lea.hbm %s6404_s4, 32 }
  0x25   : > { %p4778_p9 = scmp.ne.s32.totalorder %s6404_s4, %s4777_s27  ;;  %p4784_p12 = scmp.lt.u32.totalorder %s4777_s27, %s6404_s4 }
  0x27   : > { %p4780_p10 = pnand %p4778_p9, %p5140_p7 }
  0x29   : > { %p4781_p11 = pneg %p4780_p10 }
  0x2b   : > { %p4786_p13 = pnand %p4784_p12, %p4781_p11 }
  0x2d   : > { %4789 = shalt.err (!%p4786_p13)
}
  0x2e   : > { %s4790_s15 = scalar_lea.vmem %s5120_s19, 32  ;;  %p4798_p6 = scmp.lt.s32.totalorder %s5120_s19, %s5120_s19 }
  0x2f   : > { %p4791_p0 = scmp.ne.s32.totalorder %s5120_s19, %s4790_s15  ;;  %p4799_p8 = scmp.lt.s32.totalorder %s4790_s15, %s4790_s15 }
  0x31   : > { %p4793_p1 = pnand %p4791_p0, %p5140_p7  ;;  %p4800_p9 = por %p4799_p8, %p4798_p6 }
  0x33   : > { %p4794_p4 = pneg %p4793_p1 }
  0x35   : > { %p4801_p10 = pnand %p4800_p9, %p4794_p4 }
  0x37   : > { %4804 = shalt.err (!%p4801_p10)
}
  0x38   : > { %4667 = dma.hbm_to_vmem [thread:$0]  (!%p5124_p5), %s6404_s4, 32, %s5120_s19, [#allocation9]  }
  0x39   : > { %s4805_s25 = scalar_lea.hbm %s6406_s6, 40960 }
  0x3a   : > { %p4806_p11 = scmp.ne.s32.totalorder %s6406_s6, %s4805_s25  ;;  %p4812_p0 = scmp.lt.u32.totalorder %s4805_s25, %s6406_s6 }
  0x3c   : > { %p4808_p12 = pnand %p4806_p11, %p5140_p7 }
  0x3e   : > { %p4809_p13 = pneg %p4808_p12 }
  0x40   : > { %p4814_p1 = pnand %p4812_p0, %p4809_p13 }
  0x42   : > { %4817 = shalt.err (!%p4814_p1)
}
  0x43   : > { %s4818_s19 = scalar_lea.vmem %s5128_s22, 40960  ;;  %p4826_p9 = scmp.lt.s32.totalorder %s5128_s22, %s5128_s22 }
  0x44   : > { %p4819_p4 = scmp.ne.s32.totalorder %s5128_s22, %s4818_s19  ;;  %p4827_p10 = scmp.lt.s32.totalorder %s4818_s19, %s4818_s19 }
  0x46   : > { %p4821_p6 = pnand %p4819_p4, %p5140_p7  ;;  %p4828_p11 = por %p4827_p10, %p4826_p9 }
  0x48   : > { %p4822_p8 = pneg %p4821_p6 }
  0x4a   : > { %p4829_p12 = pnand %p4828_p11, %p4822_p8 }
  0x4c   : > { %4832 = shalt.err (!%p4829_p12)
}
  0x4d   : > { %s6413_s11 = smov 256   ;;  %s5034_s12 = smov 16  }
  0x4e   : > { %4673 = dma.hbm_to_vmem [thread:$0]  (!%p5124_p5), %s6406_s6, 40960, %s5128_s22, [#allocation12], %s6413_s11, %s6413_s11, %s5034_s12  }
  0x4f   : > { %s4833_s23 = scalar_lea.hbm %s6408_s8, 12288 }
  0x50   : > { %p4834_p13 = scmp.ne.s32.totalorder %s6408_s8, %s4833_s23  ;;  %p4840_p4 = scmp.lt.u32.totalorder %s4833_s23, %s6408_s8 }
  0x52   : > { %p4836_p0 = pnand %p4834_p13, %p5140_p7 }
  0x54   : > { %p4837_p1 = pneg %p4836_p0 }
  0x56   : > { %p4842_p6 = pnand %p4840_p4, %p4837_p1 }
  0x58   : > { %4845 = shalt.err (!%p4842_p6)
}
  0x59   : > { %s4846_s29 = scalar_lea.vmem %s369_s24, 12288  ;;  %p4854_p11 = scmp.lt.s32.totalorder %s369_s24, %s369_s24 }
  0x5a   : > { %p4847_p8 = scmp.ne.s32.totalorder %s369_s24, %s4846_s29  ;;  %p4855_p12 = scmp.lt.s32.totalorder %s4846_s29, %s4846_s29 }
  0x5c   : > { %p4849_p9 = pnand %p4847_p8, %p5140_p7  ;;  %p4856_p2 = por %p4855_p12, %p4854_p11 }
  0x5e   : > { %p4850_p10 = pneg %p4849_p9 }
  0x60   : > { %p4857_p3 = pnand %p4856_p2, %p4850_p10 }
  0x62   : > { %4860 = shalt.err (!%p4857_p3)
}
  0x63   : > { %s5035_s22 = smov 384   ;;  %s5036_s19 = smov 24  }
  0x64   : > { %4679 = dma.hbm_to_vmem [thread:$0]  (!%p5124_p5), %s6408_s8, 12288, %s369_s24, [#allocation15], %s5035_s22, %s5035_s22, %s5036_s19  }
  0x65   : > { %s5037_s18 = smov [#allocation3]   ;;  %s4861_s26 = scalar_lea.hbm %s6401_s1, 768 }
  0x66   : > { %s283_s21 = sshll.u32 %s5037_s18, 4  ;;  %p4862_p2 = scmp.ne.s32.totalorder %s6401_s1, %s4861_s26  ;;  %s284_s21 = int_to_ptr.vmem [resolvable:$true] %s283_s21 }
  0x67   : > { %p4868_p0 = scmp.lt.u32.totalorder %s4861_s26, %s6401_s1 }
  0x68   : > { %p4864_p3 = pnand %p4862_p2, %p5140_p7 }
  0x6a   : > { %p4865_p13 = pneg %p4864_p3 }
  0x6c   : > { %p4870_p1 = pnand %p4868_p0, %p4865_p13 }
  0x6e   : > { %4873 = shalt.err (!%p4870_p1)
}
  0x6f   : > { %s4874_s24 = scalar_lea.vmem %s284_s21, 768  ;;  %p4882_p9 = scmp.lt.s32.totalorder %s284_s21, %s284_s21 }
  0x70   : > { %p4875_p4 = scmp.ne.s32.totalorder %s284_s21, %s4874_s24  ;;  %p4883_p10 = scmp.lt.s32.totalorder %s4874_s24, %s4874_s24 }
  0x72   : > { %p4877_p6 = pnand %p4875_p4, %p5140_p7  ;;  %p4884_p11 = por %p4883_p10, %p4882_p9 }
  0x74   : > { %p4878_p8 = pneg %p4877_p6 }
  0x76   : > { %p4885_p12 = pnand %p4884_p11, %p4878_p8 }
  0x78   : > { %4888 = shalt.err (!%p4885_p12)
}
  0x79   : > { %s5038_s22 = smov 128   ;;  %s5039_s19 = smov 8  }
  0x7a   : > { %4658 = dma.hbm_to_vmem [thread:$0]  (!%p5124_p5), %s6401_s1, 768, %s284_s21, [#allocation4], %s5038_s22, %s5038_s22, %s5039_s19  }
  0x7b   : > { %s5040_s14 = smov [#allocation7]   ;;  %s5041_s23 = smov [#allocation10]  }
  0x7c   : > { %s307_s18 = sshll.u32 %s5040_s14, 4  ;;  %s331_s25 = sshll.u32 %s5041_s23, 4  ;;  %s308_s18 = int_to_ptr.vmem [resolvable:$true] %s307_s18  ;;  %s5248_s25 = int_to_ptr.vmem [resolvable:$true] %s331_s25 }
  0x7d   : > { %s4889_s28 = scalar_lea.hbm %s6403_s3, 12288 }
  0x7e   : > { %p4890_p2 = scmp.ne.s32.totalorder %s6403_s3, %s4889_s28  ;;  %p4896_p0 = scmp.lt.u32.totalorder %s4889_s28, %s6403_s3 }
  0x80   : > { %p4892_p3 = pnand %p4890_p2, %p5140_p7 }
  0x82   : > { %p4893_p13 = pneg %p4892_p3 }
  0x84   : > { %p4898_p1 = pnand %p4896_p0, %p4893_p13 }
  0x86   : > { %4901 = shalt.err (!%p4898_p1)
}
  0x87   : > { %s4902_s22 = scalar_lea.vmem %s308_s18, 12288  ;;  %p4910_p9 = scmp.lt.s32.totalorder %s308_s18, %s308_s18 }
  0x88   : > { %p4903_p4 = scmp.ne.s32.totalorder %s308_s18, %s4902_s22  ;;  %p4911_p10 = scmp.lt.s32.totalorder %s4902_s22, %s4902_s22 }
  0x8a   : > { %p4905_p6 = pnand %p4903_p4, %p5140_p7  ;;  %p4912_p11 = por %p4911_p10, %p4910_p9 }
  0x8c   : > { %p4906_p8 = pneg %p4905_p6 }
  0x8e   : > { %p4913_p12 = pnand %p4912_p11, %p4906_p8 }
  0x90   : > { %4916 = shalt.err (!%p4913_p12)
}
  0x91   : > { %s6422_s19 = smov 256   ;;  %s4917_s27 = scalar_lea.hbm %s6405_s5, 1280 }
  0x92   : > { %4664 = dma.hbm_to_vmem [thread:$0]  (!%p5124_p5), %s6403_s3, 12288, %s308_s18, [#allocation6], %s6422_s19, %s6422_s19, %s5034_s12  }
  0x93   : > { %p4918_p2 = scmp.ne.s32.totalorder %s6405_s5, %s4917_s27  ;;  %p4924_p0 = scmp.lt.u32.totalorder %s4917_s27, %s6405_s5 }
  0x95   : > { %p4920_p3 = pnand %p4918_p2, %p5140_p7 }
  0x97   : > { %p4921_p13 = pneg %p4920_p3 }
  0x99   : > { %p4926_p1 = pnand %p4924_p0, %p4921_p13 }
  0x9b   : > { %4929 = shalt.err (!%p4926_p1)
}
  0x9c   : > { %s4930_s18 = scalar_lea.vmem %s5248_s25, 1280  ;;  %p4938_p9 = scmp.lt.s32.totalorder %s5248_s25, %s5248_s25 }
  0x9d   : > { %p4931_p4 = scmp.ne.s32.totalorder %s5248_s25, %s4930_s18  ;;  %p4939_p10 = scmp.lt.s32.totalorder %s4930_s18, %s4930_s18 }
  0x9f   : > { %p4933_p6 = pnand %p4931_p4, %p5140_p7  ;;  %p4940_p11 = por %p4939_p10, %p4938_p9 }
  0xa1   : > { %p4934_p8 = pneg %p4933_p6 }
  0xa3   : > { %p4941_p12 = pnand %p4940_p11, %p4934_p8 }
  0xa5   : > { %4944 = shalt.err (!%p4941_p12)
}
  0xa6   : > { %4670 = dma.hbm_to_vmem [thread:$0]  (!%p5124_p5), %s6405_s5, 1280, %s5248_s25, [#allocation9], %s6422_s19, %s6422_s19, %s5034_s12  }
  0xa7   : > { %s5042_s15 = smov [#allocation13]   ;;  %s5043_s23 = smov [#allocation16]  }
  0xa8   : > { %s358_s14 = sshll.u32 %s5042_s15, 4  ;;  %s382_s26 = sshll.u32 %s5043_s23, 4  ;;  %s359_s14 = int_to_ptr.vmem [resolvable:$true] %s358_s14  ;;  %s5297_s26 = int_to_ptr.vmem [resolvable:$true] %s382_s26 }
  0xa9   : > { %s4945_s29 = scalar_lea.hbm %s6407_s7, 32 }
  0xaa   : > { %p4946_p2 = scmp.ne.s32.totalorder %s6407_s7, %s4945_s29  ;;  %p4952_p0 = scmp.lt.u32.totalorder %s4945_s29, %s6407_s7 }
  0xac   : > { %p4948_p3 = pnand %p4946_p2, %p5140_p7 }
  0xae   : > { %p4949_p13 = pneg %p4948_p3 }
  0xb0   : > { %p4954_p1 = pnand %p4952_p0, %p4949_p13 }
  0xb2   : > { %4957 = shalt.err (!%p4954_p1)
}
  0xb3   : > { %s4958_s25 = scalar_lea.vmem %s359_s14, 32  ;;  %p4966_p9 = scmp.lt.s32.totalorder %s359_s14, %s359_s14 }
  0xb4   : > { %p4959_p4 = scmp.ne.s32.totalorder %s359_s14, %s4958_s25  ;;  %p4967_p10 = scmp.lt.s32.totalorder %s4958_s25, %s4958_s25 }
  0xb6   : > { %p4961_p6 = pnand %p4959_p4, %p5140_p7  ;;  %p4968_p11 = por %p4967_p10, %p4966_p9 }
  0xb8   : > { %p4962_p8 = pneg %p4961_p6 }
  0xba   : > { %p4969_p12 = pnand %p4968_p11, %p4962_p8 }
  0xbc   : > { %4972 = shalt.err (!%p4969_p12)
}
  0xbd   : > { %4676 = dma.hbm_to_vmem [thread:$0]  (!%p5124_p5), %s6407_s7, 32, %s359_s14, [#allocation12]  }
  0xbe   : > { %s4973_s23 = scalar_lea.hbm %s6409_s9, 48 }
  0xbf   : > { %p4974_p2 = scmp.ne.s32.totalorder %s6409_s9, %s4973_s23  ;;  %p4980_p0 = scmp.lt.u32.totalorder %s4973_s23, %s6409_s9 }
  0xc1   : > { %p4976_p3 = pnand %p4974_p2, %p5140_p7 }
  0xc3   : > { %p4977_p13 = pneg %p4976_p3 }
  0xc5   : > { %p4982_p1 = pnand %p4980_p0, %p4977_p13 }
  0xc7   : > { %4985 = shalt.err (!%p4982_p1)
}
  0xc8   : > { %s4986_s14 = scalar_lea.vmem %s5297_s26, 48  ;;  %s4993_s11 = scalar_lea.vmem %s5297_s26, 64 }
  0xc9   : > { %p4987_p4 = scmp.ne.s32.totalorder %s5297_s26, %s4986_s14  ;;  %p4994_p9 = scmp.lt.s32.totalorder %s5297_s26, %s5297_s26 }
  0xca   : > { %p4995_p10 = scmp.lt.s32.totalorder %s4993_s11, %s4986_s14 }
  0xcb   : > { %p4989_p6 = pnand %p4987_p4, %p5140_p7 }
  0xcc   : > { %p4996_p11 = por %p4995_p10, %p4994_p9 }
  0xcd   : > { %p4990_p8 = pneg %p4989_p6 }
  0xcf   : > { %p4997_p12 = pnand %p4996_p11, %p4990_p8 }
  0xd1   : > { %5000 = shalt.err (!%p4997_p12)
}
  0xd2   : > { %4682 = dma.hbm_to_vmem [thread:$0]  (!%p5124_p5), %s6409_s9, 48, %s5297_s26, [#allocation15]  }
  0xd3   : > { %p6423_p2 = scmp.ne.s32.totalorder %s6419_s17, 0 }
  0xd5   : > { %404 = sbr.rel (%p6423_p2) target bundleno = 2104 (0x838), region = 60 }
  0xdc   : > { %p6424_p7 = scmp.eq.s32.totalorder %s5107_s16, 0 }
  0xde   : > { %5006 = dma.done.wait (%p6424_p7), [#allocation4], 768   ;;  %p6425_p3 = pmov %p6424_p7 }
  0xe0   : > { %5008 = vsyncadd (%p6425_p3), [#allocation4], 4294966528  ;;  %p6426_p13 = pmov %p6425_p3 }
  0xe1   : > { %p6427_p0 = pmov %p6425_p3 }
  0xe2   : > { %5010 = dma.done.wait (%p6426_p13), [#allocation6], 12304  }
  0xe3   : > { %5012 = vsyncadd (%p6427_p0), [#allocation6], 4294954992  ;;  %p6428_p1 = pmov %p6427_p0 }
  0xe4   : > { %p6429_p5 = pmov %p6427_p0 }
  0xe5   : > { %5014 = dma.done.wait (%p6428_p1), [#allocation9], 1312  }
  0xe6   : > { %5016 = vsyncadd (%p6429_p5), [#allocation9], 4294965984  ;;  %p6430_p4 = pmov %p6427_p0 }
  0xe7   : > { %p6431_p6 = pmov %p6427_p0 }
  0xe8   : > { %5018 = dma.done.wait (%p6430_p4), [#allocation12], 40992  }
  0xe9   : > { %5020 = vsyncadd (%p6431_p6), [#allocation12], 4294926304  ;;  %p6432_p8 = pmov %p6427_p0 }
  0xea   : > { %p6433_p9 = pmov %p6427_p0 }
  0xeb   : > { %5022 = dma.done.wait (%p6432_p8), [#allocation15], 12336  }
  0xec   : > { %5024 = vsyncadd (%p6433_p9), [#allocation15], 4294954960  ;;  %s474_s17 = smul.u32 18, %s5107_s16  ;;  %vm526_vm0 = vcmask 130048   ;;  %v524_v0 = vld [vmem:[#allocation3 + $0x10] sm:$0xff]  ;;  %v525_v1 = vld [vmem:[#allocation3 + $0x18] sm:$0xff] }
  0xed   : > { %v503_v2 = vld [vmem:[#allocation3] sm:$0xff]  ;;  %v3900_v3 = vpack.c.bf16 %v525_v1, %v524_v0  ;;  %v504_v5 = vld [vmem:[#allocation3 + $0x8] sm:$0xff]  ;;  %v1668_v27 = vld [vmem:[#allocation7 + $0x100] sm:$0xff]  ;;  %p480_p11 = scmp.lt.s32.totalorder %s5107_s16, 1 }
  0xee   : > { %p475_p10 = scmp.lt.s32.totalorder %s474_s17, 35  ;;  %v3904_v6 = vpack.c.bf16 %v504_v5, %v503_v2  ;;  %v964_v7 = vld [vmem:[#allocation3 + $0x20] sm:$0xff]  ;;  %v965_v8 = vld [vmem:[#allocation3 + $0x28] sm:$0xff]  ;;  %v1672_v35 = vld [vmem:[#allocation7 + $0x120] sm:$0xff] }
  0xef   : > { %3901 = vmatprep.subr.bf16.mxu0 %v3900_v3  ;;  %4462 = vmatprep.subr.bf16.mxu1 %v3900_v3  ;;  %v3908_v11 = vpack.c.bf16 %v965_v8, %v964_v7  ;;  %v1669_v25 = vld [vmem:[#allocation7 + $0x108] sm:$0xff]  ;;  %v1671_v26 = vld [vmem:[#allocation7 + $0x118] sm:$0xff]  ;;  %v1670_v31 = vld [vmem:[#allocation7 + $0x110] sm:$0xff]  ;;  %s6513_s16 = smov (!%p480_p11, %s5107_s16), 1 }
  0xf0   : > { %s6511_s17 = smov (!%p475_p10, %s474_s17), 35  ;;  %3903 = vmatpush3.bf16.msra.mxu0 %v3900_v3  ;;  %4463 = vmatpush3.bf16.msra.mxu1 %v3900_v3  ;;  %v3912_v30 = vpack.c.bf16 %v1671_v26, %v1669_v25  ;;  %v3914_v32 = vpack.c.bf16 %v1670_v31, %v1668_v27  ;;  %v1673_v33 = vld [vmem:[#allocation7 + $0x128] sm:$0xff]  ;;  %v1675_v34 = vld [vmem:[#allocation7 + $0x138] sm:$0xff]  ;;  %v1674_v36 = vld [vmem:[#allocation7 + $0x130] sm:$0xff]  ;;  %s4582_s19 = smul.u32 24, %s6513_s16 }
  0xf1   : > { %s3646_s20 = sshll.u32 %s6511_s17, 3  ;;  %3905 = vmatprep.subr.bf16.mxu0 %v3904_v6  ;;  %v3916_v41 = vpack.c.bf16 %v1675_v34, %v1673_v33  ;;  %v3918_v42 = vpack.c.bf16 %v1674_v36, %v1672_v35  ;;  %v1677_v43 = vld [vmem:[#allocation7 + $0x148] sm:$0xff]  ;;  %v1679_v44 = vld [vmem:[#allocation7 + $0x158] sm:$0xff]  ;;  %v1676_v45 = vld [vmem:[#allocation7 + $0x140] sm:$0xff] }
  0xf2   : > { %s5367_s25 = scalar_lea.vmem %s6400_s0, %s3646_s20  ;;  %3913 = vmatprep.subr.bf16.mxu1 %v3912_v30  ;;  %v1678_v46 = vld [vmem:[#allocation7 + $0x150] sm:$0xff]  ;;  %v3920_v51 = vpack.c.bf16 %v1679_v44, %v1677_v43  ;;  %v1681_v53 = vld [vmem:[#allocation7 + $0x168] sm:$0xff]  ;;  %v1683_v54 = vld [vmem:[#allocation7 + $0x178] sm:$0xff]  ;;  %s484_s15 = scalar_lea.vmem %s6410_s10, %s4582_s19 }
  0xf3   : > { %v505_v4 = vld [vmem:[%s5367_s25 + $0x1] sm:$0xff]  ;;  %v506_v9 = vld [vmem:[%s5367_s25 + $0x9] sm:$0xff]  ;;  %v507_v12 = vld [vmem:[%s5367_s25 + $0x11] sm:$0xff]  ;;  %v3922_v52 = vpack.c.bf16 %v1678_v46, %v1676_v45  ;;  %v3924_v61 = vpack.c.bf16 %v1683_v54, %v1681_v53 }
  0xf4   : > { %3811 = vmatprep.mubr.msk.f32.mxu0 %vm526_vm0, %v505_v4  ;;  %v485_v10 = vld [vmem:[%s5367_s25] sm:$0xff]  ;;  %3814 = vmatprep.mubr.msk.f32.mxu1 %vm526_vm0, %v507_v12  ;;  %v486_v15 = vld [vmem:[%s5367_s25 + $0x8] sm:$0xff]  ;;  %v487_v17 = vld [vmem:[%s5367_s25 + $0x10] sm:$0xff] }
  0xf5   : > { %3812 = vmatmul.mubr.msk.f32.vlgmr.msra.gmra.mrb[0].mxu0 %vm526_vm0, %v506_v9  ;;  %v508_v13 = vld [vmem:[%s5367_s25 + $0x19] sm:$0xff]  ;;  %v509_v14 = vld [vmem:[%s5367_s25 + $0x21] sm:$0xff]  ;;  %v510_v16 = vld [vmem:[%s5367_s25 + $0x29] sm:$0xff] }
  0xf6   : > { %3907 = vmatpush3.bf16.msra.mxu0 %v3904_v6  ;;  %3842 = vmatprep.mubr.msk.f32.mxu0 %vm526_vm0, %v485_v10  ;;  %v511_v18 = vld [vmem:[%s5367_s25 + $0x31] sm:$0xff]  ;;  %v512_v20 = vld [vmem:[%s5367_s25 + $0x39] sm:$0xff]  ;;  %v513_v22 = vld [vmem:[%s5367_s25 + $0x41] sm:$0xff] }
  0xf7   : > { %3909 = vmatprep.subr.bf16.mxu0 %v3908_v11  ;;  %3815 = vmatmul.mubr.msk.f32.vlgmr.msra.gmra.mrb[0].mxu1 %vm526_vm0, %v508_v13  ;;  %v488_v19 = vld [vmem:[%s5367_s25 + $0x18] sm:$0xff]  ;;  %v489_v21 = vld [vmem:[%s5367_s25 + $0x20] sm:$0xff]  ;;  %v490_v23 = vld [vmem:[%s5367_s25 + $0x28] sm:$0xff] }
  0xf8   : > { %3817 = vmatprep.mubr.msk.f32.mxu1 %vm526_vm0, %v509_v14  ;;  %v514_v24 = vld [vmem:[%s5367_s25 + $0x49] sm:$0xff]  ;;  %v515_v29 = vld [vmem:[%s5367_s25 + $0x51] sm:$0xff]  ;;  %v516_v38 = vld [vmem:[%s5367_s25 + $0x59] sm:$0xff]  ;;  %3915 = vmatpush1.bf16.msra.mxu1 %v3914_v32 }
  0xf9   : > { %v491_v28 = vld [vmem:[%s5367_s25 + $0x30] sm:$0xff]  ;;  %v492_v37 = vld [vmem:[%s5367_s25 + $0x38] sm:$0xff]  ;;  %v493_v39 = vld [vmem:[%s5367_s25 + $0x40] sm:$0xff]  ;;  %3917 = vmatprep.subr.bf16.mxu1 %v3916_v41 }
  0xfa   : > { %v517_v40 = vld [vmem:[%s5367_s25 + $0x61] sm:$0xff]  ;;  %v518_v48 = vld [vmem:[%s5367_s25 + $0x69] sm:$0xff]  ;;  %v519_v50 = vld [vmem:[%s5367_s25 + $0x71] sm:$0xff] }
  0xfb   : > { %3818 = vmatmul.mubr.msk.f32.gmra.mrb[2].mxu1 %vm526_vm0, %v510_v16  ;;  %v494_v47 = vld [vmem:[%s5367_s25 + $0x48] sm:$0xff]  ;;  %v495_v49 = vld [vmem:[%s5367_s25 + $0x50] sm:$0xff]  ;;  %v496_v57 = vld [vmem:[%s5367_s25 + $0x58] sm:$0xff] }
  0xfc   : > { %3820 = vmatprep.mubr.msk.f32.mxu1 %vm526_vm0, %v511_v18  ;;  %3919 = vmatpush1.bf16.msra.mxu1 %v3918_v42  ;;  %v1680_v55 = vld [vmem:[#allocation7 + $0x160] sm:$0xff]  ;;  %v1682_v56 = vld [vmem:[#allocation7 + $0x170] sm:$0xff]  ;;  %v1685_v62 = vld [vmem:[#allocation7 + $0x188] sm:$0xff] }
  0xfd   : > { %3843 = vmatmul.mubr.msk.f32.vlgmr.msra.gmra.mrb[0].mxu0 %vm526_vm0, %v486_v15  ;;  %v497_v58 = vld [vmem:[%s5367_s25 + $0x60] sm:$0xff]  ;;  %3921 = vmatprep.subr.bf16.mxu1 %v3920_v51  ;;  %v3926_v0 = vpack.c.bf16 %v1682_v56, %v1680_v55  ;;  %v498_v1 = vld [vmem:[%s5367_s25 + $0x68] sm:$0xff]  ;;  %v499_v4 = vld [vmem:[%s5367_s25 + $0x70] sm:$0xff]  ;;  %v1236_v51 = vlaneseq }
  0xfe   : > { %3911 = vmatpush3.bf16.msra.mxu0 %v3908_v11  ;;  %3845 = vmatprep.mubr.msk.f32.mxu0 %vm526_vm0, %v487_v17  ;;  %v520_v59 = vld [vmem:[%s5367_s25 + $0x79] sm:$0xff]  ;;  %v521_v60 = vld [vmem:[%s5367_s25 + $0x81] sm:$0xff]  ;;  %v522_v2 = vld [vmem:[%s5367_s25 + $0x89] sm:$0x3f] }
  0xff   : > { %3821 = vmatmul.mubr.msk.f32.gmra.mrb[4].mxu1 %vm526_vm0, %v512_v20  ;;  %v1687_v63 = vld [vmem:[#allocation7 + $0x198] sm:$0xff]  ;;  %v502_v7 = vld [vmem:[%s5367_s25 + $0x88] sm:$0x3f]  ;;  %v947_v10 = vld [vmem:[%s5367_s25 + $0x12] sm:$0xff] }
 0x100   : > { %3823 = vmatprep.mubr.msk.f32.mxu1 %vm526_vm0, %v513_v22  ;;  %3923 = vmatpush1.bf16.msra.mxu1 %v3922_v52  ;;  %v3928_v3 = vpack.c.bf16 %v1687_v63, %v1685_v62  ;;  %v500_v5 = vld [vmem:[%s5367_s25 + $0x78] sm:$0xff]  ;;  %v501_v6 = vld [vmem:[%s5367_s25 + $0x80] sm:$0xff]  ;;  %v946_v9 = vld [vmem:[%s5367_s25 + $0xa] sm:$0xff]  ;;  %v5480_v52 = vshrl.u32 %v1236_v51, 7 }
 0x101   : > { %3846 = vmatmul.mubr.msk.f32.gmra.mrb[2].mxu0 %vm526_vm0, %v488_v19  ;;  %3925 = vmatprep.subr.bf16.mxu1 %v3924_v61  ;;  %v945_v8 = vld [vmem:[%s5367_s25 + $0x2] sm:$0xff]  ;;  %v948_v11 = vld [vmem:[%s5367_s25 + $0x1a] sm:$0xff]  ;;  %v950_v13 = vld [vmem:[%s5367_s25 + $0x2a] sm:$0xff] }
 0x102   : > { %3848 = vmatprep.mubr.msk.f32.mxu0 %vm526_vm0, %v489_v21  ;;  %v949_v12 = vld [vmem:[%s5367_s25 + $0x22] sm:$0xff]  ;;  %v951_v14 = vld [vmem:[%s5367_s25 + $0x32] sm:$0xff]  ;;  %v952_v15 = vld [vmem:[%s5367_s25 + $0x3a] sm:$0xff]  ;;  %6434 = vst [vmem:[#allocation22_spill] sm:$0xff] %v5480_v52  ;;  %v1238_v53 = vadd.s32 8, %v5480_v52  ;;  %v5498_v61 = vadd.s32 16, %v5480_v52 }
 0x103   : > { %3824 = vmatmul.mubr.msk.f32.gmra.mrb[6].mxu1 %vm526_vm0, %v514_v24  ;;  %v953_v16 = vld [vmem:[%s5367_s25 + $0x42] sm:$0xff]  ;;  %v954_v17 = vld [vmem:[%s5367_s25 + $0x4a] sm:$0xff]  ;;  %v955_v18 = vld [vmem:[%s5367_s25 + $0x52] sm:$0xff]  ;;  %v5503_v63 = vadd.s32 40, %v5480_v52 }
 0x104   : > { %3826 = vmatprep.mubr.msk.f32.mxu1 %vm526_vm0, %v515_v29  ;;  %3927 = vmatpush1.bf16.msra.mxu1 %v3926_v0  ;;  %v956_v19 = vld [vmem:[%s5367_s25 + $0x5a] sm:$0xff]  ;;  %v957_v20 = vld [vmem:[%s5367_s25 + $0x62] sm:$0xff]  ;;  %v958_v21 = vld [vmem:[%s5367_s25 + $0x6a] sm:$0xff]  ;;  %v5483_v54 = vmul.u32.u64.low 3817748708, %v1238_v53  ;;  %v5484_v55 = vmul.u32.u64.high 3817748708, %v1238_v53, %v5483_v54 }
 0x105   : > { %3849 = vmatmul.mubr.msk.f32.gmra.mrb[4].mxu0 %vm526_vm0, %v490_v23  ;;  %3929 = vmatprep.subr.bf16.mxu1 %v3928_v3  ;;  %v959_v22 = vld [vmem:[%s5367_s25 + $0x72] sm:$0xff]  ;;  %v960_v23 = vld [vmem:[%s5367_s25 + $0x7a] sm:$0xff]  ;;  %v961_v24 = vld [vmem:[%s5367_s25 + $0x82] sm:$0xff] }
 0x106   : > { %3851 = vmatprep.mubr.msk.f32.mxu0 %vm526_vm0, %v491_v28  ;;  %v962_v25 = vld [vmem:[%s5367_s25 + $0x8a] sm:$0x3f]  ;;  %v1684_v26 = vld [vmem:[#allocation7 + $0x180] sm:$0xff]  ;;  %v1686_v27 = vld [vmem:[#allocation7 + $0x190] sm:$0xff] }
 0x107   : > { %3827 = vmatmul.mubr.msk.f32.gmra.mrb[8].mxu1 %vm526_vm0, %v516_v38  ;;  %v3930_v28 = vpack.c.bf16 %v1686_v27, %v1684_v26  ;;  %v1689_v29 = vld [vmem:[#allocation7 + $0x1a8] sm:$0xff]  ;;  %v1691_v30 = vld [vmem:[#allocation7 + $0x1b8] sm:$0xff]  ;;  %v1688_v32 = vld [vmem:[#allocation7 + $0x1a0] sm:$0xff] }
 0x108   : > { %3829 = vmatprep.mubr.msk.f32.mxu1 %vm526_vm0, %v517_v40  ;;  %v3932_v31 = vpack.c.bf16 %v1691_v30, %v1689_v29  ;;  %v1690_v33 = vld [vmem:[#allocation7 + $0x1b0] sm:$0xff]  ;;  %v1693_v35 = vld [vmem:[#allocation7 + $0x1c8] sm:$0xff]  ;;  %v1695_v36 = vld [vmem:[#allocation7 + $0x1d8] sm:$0xff] }
 0x109   : > { %3852 = vmatmul.mubr.msk.f32.gmra.mrb[6].mxu0 %vm526_vm0, %v492_v37  ;;  %3931 = vmatpush1.bf16.msra.mxu1 %v3930_v28  ;;  %v3934_v34 = vpack.c.bf16 %v1690_v33, %v1688_v32  ;;  %v3936_v37 = vpack.c.bf16 %v1695_v36, %v1693_v35  ;;  %v1692_v38 = vld [vmem:[#allocation7 + $0x1c0] sm:$0xff]  ;;  %v1697_v41 = vld [vmem:[#allocation7 + $0x1e8] sm:$0xff]  ;;  %v1699_v42 = vld [vmem:[#allocation7 + $0x1f8] sm:$0xff] }
 0x10a   : > { %3854 = vmatprep.mubr.msk.f32.mxu0 %vm526_vm0, %v493_v39  ;;  %3933 = vmatprep.subr.bf16.mxu1 %v3932_v31  ;;  %v1694_v39 = vld [vmem:[#allocation7 + $0x1d0] sm:$0xff]  ;;  %v1696_v43 = vld [vmem:[#allocation7 + $0x1e0] sm:$0xff]  ;;  %v3940_v45 = vpack.c.bf16 %v1699_v42, %v1697_v41 }
 0x10b   : > { %3830 = vmatmul.mubr.msk.f32.gmra.mrb[10].mxu1 %vm526_vm0, %v518_v48  ;;  %v3938_v40 = vpack.c.bf16 %v1694_v39, %v1692_v38  ;;  %v1698_v44 = vld [vmem:[#allocation7 + $0x1f0] sm:$0xff]  ;;  %v1618_v48 = vld [vmem:[#allocation7 + $0x8] sm:$0xff] }
 0x10c   : > { %3832 = vmatprep.mubr.msk.f32.mxu1 %vm526_vm0, %v519_v50  ;;  %v3942_v46 = vpack.c.bf16 %v1698_v44, %v1696_v43  ;;  %v5589_v43 = vadd.s32 80, %v5480_v52 }
 0x10d   : > { %3855 = vmatmul.mubr.msk.f32.gmra.mrb[8].mxu0 %vm526_vm0, %v494_v47  ;;  %3935 = vmatpush1.bf16.msra.mxu1 %v3934_v34  ;;  %v6415_v47 = vmov 0.0  }
 0x10e   : > { %3857 = vmatprep.mubr.msk.f32.mxu0 %vm526_vm0, %v495_v49  ;;  %3937 = vmatprep.subr.bf16.mxu1 %v3936_v37  ;;  %1579 = vst [vmem:[#allocation2] sm:$0x1] %v6415_v47  ;;  %1580 = vst [vmem:[#allocation2 + $0x8f] sm:$0x1] %v6415_v47  ;;  %v1620_v49 = vld [vmem:[#allocation7 + $0x18] sm:$0xff] }
 0x10f   : > { %3833 = vmatmul.mubr.msk.f32.gmra.mrb[12].mxu1 %vm526_vm0, %v520_v59  ;;  %v3944_v50 = vpack.c.bf16 %v1620_v49, %v1618_v48 }
 0x110   : > { %3835 = vmatprep.mubr.msk.f32.mxu1 %vm526_vm0, %v521_v60  ;;  %v5495_v60 = vadd.s32 24, %v5480_v52 }
 0x111   : > { %3858 = vmatmul.mubr.msk.f32.gmra.mrb[10].mxu0 %vm526_vm0, %v496_v57  ;;  %3939 = vmatpush1.bf16.msra.mxu1 %v3938_v40  ;;  %v5487_v56 = vmul.u32.u64.low 3817748708, %v5480_v52  ;;  %v5488_v57 = vmul.u32.u64.high 3817748708, %v5480_v52, %v5487_v56 }
 0x112   : > { %3860 = vmatprep.mubr.msk.f32.mxu0 %vm526_vm0, %v497_v58  ;;  %3941 = vmatprep.subr.bf16.mxu1 %v3940_v45 }
 0x113   : > { %3836 = vmatmul.mubr.msk.f32.gmra.mrb[14].mxu1 %vm526_vm0, %v522_v2  ;;  %v5509_v2 = vmul.u32.u64.low 3817748708, %v5495_v60  ;;  %v5510_v3 = vmul.u32.u64.high 3817748708, %v5495_v60, %v5509_v2 }
 0x114   : > { %1764 = vmatprep.mubr.f32.mxu1 %v6415_v47 }
 0x115   : > { %3861 = vmatmul.mubr.msk.f32.gmra.mrb[12].mxu0 %vm526_vm0, %v498_v1  ;;  %3943 = vmatpush1.bf16.msra.mxu1 %v3942_v46  ;;  %v1272_v1 = vshrl.u32 %v5484_v55, 4  ;;  %v1294_v30 = vshrl.u32 %v5510_v3, 4 }
 0x116   : > { %3863 = vmatprep.mubr.msk.f32.mxu0 %vm526_vm0, %v499_v4  ;;  %3945 = vmatprep.subr.bf16.mxu1 %v3944_v50  ;;  %v5513_v4 = vadd.s32 32, %v5480_v52 }
 0x117   : > { %v1295_v40 = vmul.u32 18, %v1294_v30 }
 0x119   : > { %3864 = vmatmul.mubr.msk.f32.gmra.mrb[14].mxu0 %vm526_vm0, %v500_v5  ;;  %v1261_v5 = vshrl.u32 %v5488_v57, 4  ;;  %v5615_v56 = vsub.s32 %v5495_v60, %v1295_v40  ;;  %v5631_v60 = vadd.s32 104, %v5480_v52 }
 0x11a   : > { %3866 = vmatprep.mubr.msk.f32.mxu0 %vm526_vm0, %v501_v6 }
 0x11b   : > { %vm1456_vm7 = vcmp.ne.s32.totalorder %v5615_v56, 0  ;;  %vm1474_vm8 = vcmp.lt.s32.totalorder %v5615_v56, 0 }
 0x11c   : > { %vm5688_vm15 = vmand %vm1474_vm8, %vm1456_vm7 }
 0x11d   : > { %3867 = vmatmul.mubr.msk.f32.gmra.mrb[16].mxu0 %vm526_vm0, %v502_v7  ;;  %v5517_v6 = vmul.u32.u64.low 3817748708, %v5498_v61  ;;  %v5518_v7 = vmul.u32.u64.high 3817748708, %v5498_v61, %v5517_v6 }
 0x11e   : > { %3873 = vmatprep.mubr.msk.f32.mxu0 %vm526_vm0, %v945_v8 }
 0x11f   : > { %v1283_v32 = vshrl.u32 %v5518_v7, 4 }
 0x121   : > { %3874 = vmatmul.mubr.msk.f32.vlgmr.msra.gmra.mrb[0].mxu0 %vm526_vm0, %v946_v9  ;;  %v5523_v9 = vadd.s32 56, %v5480_v52  ;;  %v1284_v42 = vmul.u32 18, %v1283_v32 }
 0x122   : > { %3876 = vmatprep.mubr.msk.f32.mxu0 %vm526_vm0, %v947_v10 }
 0x125   : > { %3877 = vmatmul.mubr.msk.f32.gmra.mrb[2].mxu0 %vm526_vm0, %v948_v11  ;;  %v5526_v10 = vmul.u32.u64.low 3817748708, %v5503_v63  ;;  %v5527_v11 = vmul.u32.u64.high 3817748708, %v5503_v63, %v5526_v10 }
 0x126   : > { %3879 = vmatprep.mubr.msk.f32.mxu0 %vm526_vm0, %v949_v12 }
 0x127   : > { %v1316_v38 = vshrl.u32 %v5527_v11, 4 }
 0x129   : > { %3880 = vmatmul.mubr.msk.f32.gmra.mrb[4].mxu0 %vm526_vm0, %v950_v13  ;;  %v5532_v13 = vadd.s32 48, %v5480_v52  ;;  %v1317_v50 = vmul.u32 18, %v1316_v38 }
 0x12a   : > { %3882 = vmatprep.mubr.msk.f32.mxu0 %vm526_vm0, %v951_v14  ;;  %v5535_v14 = vadd.s32 72, %v5480_v52 }
 0x12c   : > { %v5558_v26 = vmul.u32.u64.low 3817748708, %v5535_v14  ;;  %v5559_v27 = vmul.u32.u64.high 3817748708, %v5535_v14, %v5558_v26 }
 0x12d   : > { %3883 = vmatmul.mubr.msk.f32.gmra.mrb[6].mxu0 %vm526_vm0, %v952_v15  ;;  %v1273_v15 = vmul.u32 18, %v1272_v1  ;;  %v5618_v1 = vsub.s32 %v5498_v61, %v1284_v42 }
 0x12e   : > { %3885 = vmatprep.mubr.msk.f32.mxu0 %vm526_vm0, %v953_v16 }
 0x12f   : > { %v5563_v29 = vsub.s32 %v1238_v53, %v1273_v15  ;;  %v1360_v53 = vshrl.u32 %v5559_v27, 4  ;;  %v5640_v15 = vsub.s32 %v5503_v63, %v1317_v50  ;;  %vm1455_vm9 = vcmp.ne.s32.totalorder %v5618_v1, 0 }
 0x130   : > { %vm1473_vm10 = vcmp.lt.s32.totalorder %v5618_v1, 0  ;;  %v5864_v50 = vadd.s32 136, %v5480_v52 }
 0x131   : > { %3886 = vmatmul.mubr.msk.f32.gmra.mrb[8].mxu0 %vm526_vm0, %v954_v17  ;;  %v5538_v16 = vmul.u32.u64.low 3817748708, %v5513_v4  ;;  %v5539_v17 = vmul.u32.u64.high 3817748708, %v5513_v4, %v5538_v16  ;;  %vm1454_vm1 = vcmp.ne.s32.totalorder %v5563_v29, 0  ;;  %vm1472_vm2 = vcmp.lt.s32.totalorder %v5563_v29, 0 }
 0x132   : > { %3888 = vmatprep.mubr.msk.f32.mxu0 %vm526_vm0, %v955_v18  ;;  %v1262_v18 = vmul.u32 18, %v1261_v5  ;;  %v5592_v44 = vadd.s32 18, %v5563_v29  ;;  %vm5597_vm5 = vmand %vm1472_vm2, %vm1454_vm1  ;;  %v5622_v3 = vmul.u32.u64.low 3817748708, %v5589_v43  ;;  %v5623_v5 = vmul.u32.u64.high 3817748708, %v5589_v43, %v5622_v3 }
 0x133   : > { %v1305_v41 = vshrl.u32 %v5539_v17, 4  ;;  %v1361_v17 = vmul.u32 18, %v1360_v53  ;;  %vm1458_vm11 = vcmp.ne.s32.totalorder %v5640_v15, 0  ;;  %vm1476_vm12 = vcmp.lt.s32.totalorder %v5640_v15, 0 }
 0x134   : > { %v5567_v31 = vsub.s32 %v5480_v52, %v1262_v18  ;;  %v1526_v6 = vsel %vm5597_vm5, %v5592_v44, %v5563_v29  ;;  %v5661_v27 = vmul.u32.u64.low 3817748708, %v5631_v60  ;;  %v5662_v29 = vmul.u32.u64.high 3817748708, %v5631_v60, %v5661_v27 }
 0x135   : > { %3889 = vmatmul.mubr.msk.f32.gmra.mrb[10].mxu0 %vm526_vm0, %v956_v19  ;;  %v5542_v19 = vadd.s32 64, %v5480_v52  ;;  %v1306_v57 = vmul.u32 18, %v1305_v41  ;;  %v5674_v32 = vsub.s32 %v5535_v14, %v1361_v17  ;;  %v5709_v40 = vadd.s32 18, %v5640_v15  ;;  %v5793_v17 = vld [vmem:[#allocation5] ss:$0 sm:$0xff] }
 0x136   : > { %3891 = vmatprep.mubr.msk.f32.mxu0 %vm526_vm0, %v957_v20  ;;  %vm1453_vm3 = vcmp.ne.s32.totalorder %v5567_v31, 0  ;;  %vm1471_vm4 = vcmp.lt.s32.totalorder %v5567_v31, 0  ;;  %v5602_v49 = vadd.s32 18, %v5567_v31  ;;  %vm5728_vm7 = vcmp.lt.s32.totalorder %v1526_v6, 16  ;;  %v2067_v6 = vld [vmem:[#allocation7 + $0x210] sm:$0xff] }
 0x137   : > { %v5571_v33 = vmul.u32.u64.low 3817748708, %v5542_v19  ;;  %v5572_v34 = vmul.u32.u64.high 3817748708, %v5542_v19, %v5571_v33  ;;  %vm5610_vm6 = vmand %vm1471_vm4, %vm1453_vm3 }
 0x138   : > { %v1525_v61 = vsel %vm5610_vm6, %v5602_v49, %v5567_v31  ;;  %v5682_v33 = vadd.s32 120, %v5480_v52  ;;  %vm5718_vm3 = vmand %vm1476_vm12, %vm1458_vm11  ;;  %vm1462_vm6 = vcmp.ne.s32.totalorder %v5674_v32, 0  ;;  %v5746_v49 = vadd.s32 112, %v5480_v52 }
 0x139   : > { %3892 = vmatmul.mubr.msk.f32.gmra.mrb[12].mxu0 %vm526_vm0, %v958_v21  ;;  %v5545_v20 = vmul.u32.u64.low 3817748708, %v5523_v9  ;;  %v5546_v21 = vmul.u32.u64.high 3817748708, %v5523_v9, %v5545_v20  ;;  %v1349_v2 = vshrl.u32 %v5572_v34, 4  ;;  %v1371_v34 = vshrl.u32 %v5623_v5, 4 }
 0x13a   : > { %3894 = vmatprep.mubr.msk.f32.mxu0 %vm526_vm0, %v959_v22  ;;  %v5647_v20 = vadd.s32 18, %v5615_v56 }
 0x13b   : > { %v1338_v45 = vshrl.u32 %v5546_v21, 4  ;;  %v5650_v21 = vsub.s32 %v5513_v4, %v1306_v57  ;;  %v1350_v63 = vmul.u32 18, %v1349_v2  ;;  %v5667_v4 = vadd.s32 18, %v5618_v1 }
 0x13c   : > { %v1372_v53 = vmul.u32 18, %v1371_v34  ;;  %v1404_v2 = vshrl.u32 %v5662_v29, 4  ;;  %v1528_v5 = vsel %vm5688_vm15, %v5647_v20, %v5615_v56  ;;  %v1634_v20 = vld [vmem:[#allocation7 + $0x88] sm:$0xff] }
 0x13d   : > { %3895 = vmatmul.mubr.msk.f32.gmra.mrb[14].mxu0 %vm526_vm0, %v960_v23  ;;  %v5551_v23 = vadd.s32 88, %v5480_v52  ;;  %v1339_v7 = vmul.u32 18, %v1338_v45  ;;  %vm1457_vm13 = vcmp.ne.s32.totalorder %v5650_v21, 0  ;;  %vm1475_vm14 = vcmp.lt.s32.totalorder %v5650_v21, 0 }
 0x13e   : > { %3897 = vmatprep.mubr.msk.f32.mxu0 %vm526_vm0, %v961_v24  ;;  %v5693_v14 = vsub.s32 %v5542_v19, %v1350_v63  ;;  %v5723_v42 = vadd.s32 18, %v5650_v21  ;;  %vm5736_vm8 = vmand %vm1475_vm14, %vm1457_vm13  ;;  %v5742_v45 = vmul.u32.u64.low 3817748708, %v5682_v33  ;;  %v5743_v48 = vmul.u32.u64.high 3817748708, %v5682_v33, %v5742_v45 }
 0x13f   : > { %v5577_v36 = vmul.u32.u64.low 3817748708, %v5551_v23  ;;  %v5578_v37 = vmul.u32.u64.high 3817748708, %v5551_v23, %v5577_v36  ;;  %v1624_v45 = vld [vmem:[#allocation7 + $0x38] sm:$0xff] }
 0x140   : > { %vm1461_vm11 = vcmp.ne.s32.totalorder %v5693_v14, 0  ;;  %vm1479_vm12 = vcmp.lt.s32.totalorder %v5693_v14, 0  ;;  %v1529_v29 = vsel %vm5736_vm8, %v5723_v42, %v5650_v21  ;;  %v1426_v55 = vshrl.u32 %v5743_v48, 4 }
 0x141   : > { %3898 = vmatmul.mubr.msk.f32.gmra.mrb[16].mxu0 %vm526_vm0, %v962_v25  ;;  %v5554_v24 = vmul.u32.u64.low 3817748708, %v5532_v13  ;;  %v5555_v25 = vmul.u32.u64.high 3817748708, %v5532_v13, %v5554_v24  ;;  %v1382_v10 = vshrl.u32 %v5578_v37, 4  ;;  %vm5704_vm0 = vmand %vm1473_vm10, %vm1455_vm9  ;;  %vm1480_vm9 = vcmp.lt.s32.totalorder %v5674_v32, 0 }
 0x142   : > { %v5655_v24 = vadd.s32 96, %v5480_v52  ;;  %v1527_v56 = vsel %vm5704_vm0, %v5667_v4, %v5618_v1  ;;  %vm5803_vm15 = vmand %vm1479_vm12, %vm1461_vm11  ;;  %v1530_v1 = vsel %vm5718_vm3, %v5709_v40, %v5640_v15  ;;  %vm5834_vm3 = vcmp.lt.s32.totalorder %v1528_v5, 16  ;;  %v2072_v4 = vld [vmem:[#allocation7 + $0x238] sm:$0xff] }
 0x143   : > { %v1327_v51 = vshrl.u32 %v5555_v25, 4  ;;  %v5658_v25 = vsub.s32 %v5523_v9, %v1339_v7  ;;  %v1383_v26 = vmul.u32 18, %v1382_v10  ;;  %v5784_v7 = vadd.s32 18, %v5674_v32  ;;  %v5786_v10 = vld [vmem:[#allocation7] sm:$0xff] }
 0x144   : > { %v5697_v36 = vmul.u32.u64.low 3817748708, %v5655_v24  ;;  %v5698_v37 = vmul.u32.u64.high 3817748708, %v5655_v24, %v5697_v36  ;;  %v1405_v40 = vmul.u32 18, %v1404_v2 }
 0x145   : > { %v1328_v16 = vmul.u32 18, %v1327_v51  ;;  %vm1460_vm1 = vcmp.ne.s32.totalorder %v5658_v25, 0  ;;  %vm1478_vm2 = vcmp.lt.s32.totalorder %v5658_v25, 0  ;;  %v5714_v19 = vsub.s32 %v5551_v23, %v1383_v26  ;;  %v1622_v23 = vld [vmem:[#allocation7 + $0x28] sm:$0xff] }
 0x146   : > { %vm5748_vm10 = vmand %vm1478_vm2, %vm1460_vm1  ;;  %v5753_v51 = vadd.s32 18, %v5658_v25  ;;  %vm5767_vm2 = vcmp.lt.s32.totalorder %v1525_v61, 16  ;;  %v5788_v61 = vld [vmem:[#allocation7 + $0x10] sm:$0xff]  ;;  %v5811_v26 = vmul.u32.u64.low 3817748708, %v5746_v49  ;;  %v5812_v27 = vmul.u32.u64.high 3817748708, %v5746_v49, %v5811_v26 }
 0x147   : > { %v5671_v31 = vsub.s32 %v5532_v13, %v1328_v16  ;;  %vm1464_vm14 = vcmp.ne.s32.totalorder %v5714_v19, 0  ;;  %vm1482_vm1 = vcmp.lt.s32.totalorder %v5714_v19, 0  ;;  %v5791_v16 = vadd.s32 18, %v5693_v14 }
 0x148   : > { %v5808_v63 = vadd.s32 18, %v5714_v19  ;;  %vm5826_vm0 = vmand %vm1482_vm1, %vm1464_vm14  ;;  %v5831_v13 = vsub.s32 %v5589_v43, %v1372_v53  ;;  %v1393_v34 = vshrl.u32 %v5698_v37, 4  ;;  %v1532_v21 = vsel %vm5748_vm10, %v5753_v51, %v5658_v25 }
 0x149   : > { %vm1459_vm4 = vcmp.ne.s32.totalorder %v5671_v31, 0  ;;  %vm1477_vm5 = vcmp.lt.s32.totalorder %v5671_v31, 0  ;;  %v5762_v57 = vadd.s32 18, %v5671_v31  ;;  %v3946_v43 = vpack.c.bf16 %v5788_v61, %v5786_v10 }
 0x14a   : > { %vm5757_vm13 = vmand %vm1477_vm5, %vm1459_vm4  ;;  %vm5851_vm5 = vcmp.lt.s32.totalorder %v1527_v56, 16  ;;  %vm1481_vm8 = vcmp.lt.s32.totalorder %v5831_v13, 0  ;;  %v1394_v5 = vmul.u32 18, %v1393_v34  ;;  %v5883_v26 = vadd.s32 18, %v5831_v13 }
 0x14b   : > { %vm5779_vm4 = vmand %vm1480_vm9, %vm1462_vm6  ;;  %v1531_v38 = vsel %vm5757_vm13, %v5762_v57, %v5671_v31  ;;  %v5873_v57 = vadd.s32 128, %v5480_v52  ;;  %vm1463_vm6 = vcmp.ne.s32.totalorder %v5831_v13, 0  ;;  %vm5878_vm9 = vcmp.lt.s32.totalorder %v1530_v1, 16  ;;  %v1621_v1 = vld [vmem:[#allocation7 + $0x20] sm:$0xff] }
 0x14c   : > { %v5886_v48 = vsub.s32 %v5631_v60, %v1405_v40  ;;  %vm5891_vm10 = vcmp.lt.s32.totalorder %v1529_v29, 16  ;;  %v5896_v31 = vmul.u32.u64.low 3817748708, %v5864_v50  ;;  %v5897_v25 = vmul.u32.u64.high 3817748708, %v5864_v50, %v5896_v31  ;;  %vm5906_vm11 = vmand %vm1481_vm8, %vm1463_vm6 }
 0x14d   : > { %v1427_v29 = vmul.u32 18, %v1426_v55  ;;  %vm5924_vm12 = vcmp.lt.s32.totalorder %v1532_v21, 16  ;;  %vm5933_vm1 = vcmp.lt.s32.totalorder %v1531_v38, 16  ;;  %v1535_v21 = vsel %vm5906_vm11, %v5883_v26, %v5831_v13  ;;  %v1632_v38 = vld [vmem:[#allocation7 + $0x78] sm:$0xff] }
 0x14e   : > { %vm1466_vm13 = vcmp.ne.s32.totalorder %v5886_v48, 0  ;;  %vm1484_vm14 = vcmp.lt.s32.totalorder %v5886_v48, 0  ;;  %vm6036_vm11 = vcmp.lt.s32.totalorder %v1535_v21, 16 }
 0x1ca   : > { %v5490_v58 = vpop.f32.mrb[0].mxu1 }
 0x1cb   : > { %v5492_v59 = vpop.f32.mrb[1].mxu1 }
 0x1ce   : > { %v5500_v62 = vpop.f32.mrb[2].mxu1 }
 0x1cf   : > { %v5505_v0 = vpop.f32.mrb[3].mxu1 }
 0x1d2   : > { %v5520_v8 = vpop.f32.mrb[4].mxu1 }
 0x1d3   : > { %v5529_v12 = vpop.f32.mrb[5].mxu1 }
 0x1d6   : > { %v5548_v22 = vpop.f32.mrb[6].mxu1 }
 0x1d7   : > { %v5561_v28 = vpop.f32.mrb[7].mxu1 }
 0x1da   : > { %v5574_v35 = vpop.f32.mrb[8].mxu1 }
 0x1db   : > { %v5581_v39 = vpop.f32.mrb[9].mxu1 }
 0x1de   : > { %v5595_v46 = vpop.f32.mrb[10].mxu1 }
 0x1df   : > { %v5606_v54 = vpop.f32.mrb[11].mxu1 }
 0x1e2   : > { %v5633_v11 = vpop.f32.mrb[12].mxu1 }
 0x1e3   : > { %v5642_v18 = vpop.f32.mrb[13].mxu1 }
 0x1e6   : > { %v5664_v30 = vpop.f32.mrb[14].mxu1 }
 0x1e7   : > { %v5676_v9 = vpop.f32.mrb[15].mxu1 }
 0x1f4   : > { %v3875_v36 = vpop.f32.mrb[0].mxu0 }
 0x1f5   : > { %v5849_v37 = vadd.f32 %v3875_v36, %v5793_v17  ;;  %v1086_v41 = vpop.f32.mrb[1].mxu0  ;;  %v3948_v36 = vpack.c.bf16 %v1624_v45, %v1622_v23  ;;  %v1415_v23 = vshrl.u32 %v5812_v27, 4  ;;  %v1626_v45 = vld [vmem:[#allocation7 + $0x48] sm:$0xff] }
 0x1f6   : > { %v1200_v51 = vadd.f32 %v5793_v17, %v1086_v41 }
 0x1f7   : > { %v1219_v2 = vmax.f32 %v5849_v37, 0.0 }
 0x1f8   : > { %v1218_v10 = vmax.f32 %v1200_v51, 0.0  ;;  %v3878_v61 = vpop.f32.mrb[2].mxu0  ;;  %v1623_v51 = vld [vmem:[#allocation7 + $0x30] sm:$0xff] }
 0x1f9   : > { %v1562_v37 = vsel %vm5728_vm7, %v1219_v2, 0.0  ;;  %v4464_v41 = vadd.f32 %v3878_v61, %v5490_v58  ;;  %v1096_v53 = vpop.f32.mrb[3].mxu0  ;;  %v1628_v61 = vld [vmem:[#allocation7 + $0x58] sm:$0xff] }
 0x1fa   : > { %1582 = vst [vmem:[#allocation2 + $0x9] sm:$0xff] %v1562_v37  ;;  %v1561_v60 = vsel %vm5767_vm2, %v1218_v10, 0.0  ;;  %v4465_v40 = vadd.f32 %v1096_v53, %v5492_v59  ;;  %4732 = vmatmul.mubr.msk.f32.vlgmr.msra.gmra.mrb[16].mxu1 %vm5767_vm2, %v1218_v10  ;;  %v5917_v59 = vsub.s32 %v5655_v24, %v1394_v5  ;;  %v3950_v24 = vpack.c.bf16 %v1623_v51, %v1621_v1  ;;  %vm5961_vm2 = vmand %vm1484_vm14, %vm1466_vm13 }
 0x1fb   : > { %1581 = vst [vmem:[#allocation2 + $0x1] sm:$0xff] %v1561_v60  ;;  %v5912_v31 = vadd.f32 %v4464_v41, %v5793_v17  ;;  %v5920_v53 = vmul.u32.u64.low 3817748708, %v5873_v57  ;;  %v5921_v37 = vmul.u32.u64.high 3817748708, %v5873_v57, %v5920_v53  ;;  %3947 = vmatpush1.bf16.msra.mxu1 %v3946_v43  ;;  %v6473_v41 = vmov 0.0  }
 0x1fc   : > { %v1202_v55 = vadd.f32 %v4465_v40, %v5793_v17  ;;  %v3881_v47 = vpop.f32.mrb[4].mxu0  ;;  %1770 = vmatprep.mubr.f32.mxu1 %v6473_v41  ;;  %3949 = vmatprep.subr.bf16.mxu1 %v3948_v36  ;;  %v3952_v43 = vpack.c.bf16 %v1628_v61, %v1626_v45  ;;  %v1625_v40 = vld [vmem:[#allocation7 + $0x40] sm:$0xff]  ;;  %v1627_v53 = vld [vmem:[#allocation7 + $0x50] sm:$0xff]  ;;  %v5943_v51 = vadd.s32 18, %v5886_v48  ;;  %vm1465_vm6 = vcmp.ne.s32.totalorder %v5917_v59, 0 }
 0x1fd   : > { %v1221_v3 = vmax.f32 %v5912_v31, 0.0  ;;  %v4466_v5 = vadd.f32 %v3881_v47, %v5500_v62  ;;  %v1106_v10 = vpop.f32.mrb[5].mxu0  ;;  %v5946_v47 = vsub.s32 %v5682_v33, %v1427_v29  ;;  %v1630_v62 = vld [vmem:[#allocation7 + $0x68] sm:$0xff]  ;;  %v1416_v33 = vmul.u32 18, %v1415_v23  ;;  %v2065_v29 = vld [vmem:[#allocation7 + $0x200] sm:$0xff] }
 0x1fe   : > { %v1220_v52 = vmax.f32 %v1202_v55, 0.0  ;;  %v4467_v1 = vadd.f32 %v1106_v10, %v5505_v0  ;;  %4733 = vmatmul.mubr.msk.f32.gmra.mrb[18].mxu1 %vm5728_vm7, %v1219_v2  ;;  %v6478_v2 = vsel %vm5779_vm4, %v5784_v7, %v5674_v32  ;;  %vm1483_vm8 = vcmp.lt.s32.totalorder %v5917_v59, 0  ;;  %v1631_v10 = vld [vmem:[#allocation7 + $0x70] sm:$0xff] }
 0x1ff   : > { %v1564_v13 = vsel %vm5834_vm3, %v1221_v3, 0.0  ;;  %v5953_v26 = vadd.f32 %v4466_v5, %v5793_v17  ;;  %vm5976_vm7 = vcmp.lt.s32.totalorder %v6478_v2, 16  ;;  %1776 = vmatprep.mubr.f32.mxu1 %v6473_v41  ;;  %3951 = vmatpush1.bf16.msra.mxu1 %v3950_v24  ;;  %v3954_v23 = vpack.c.bf16 %v1627_v53, %v1625_v40  ;;  %v1629_v5 = vld [vmem:[#allocation7 + $0x60] sm:$0xff]  ;;  %v1636_v53 = vld [vmem:[#allocation7 + $0x98] sm:$0xff]  ;;  %vm6047_vm13 = vmand %vm1483_vm8, %vm1465_vm6 }
 0x200   : > { %1584 = vst [vmem:[#allocation2 + $0x19] sm:$0xff] %v1564_v13  ;;  %v1563_v36 = vsel %vm5851_vm5, %v1220_v52, 0.0  ;;  %v5969_v58 = vadd.f32 %v4467_v1, %v5793_v17  ;;  %v3884_v44 = vpop.f32.mrb[6].mxu0  ;;  %v6481_v32 = vsel %vm5803_vm15, %v5791_v16, %v5693_v14  ;;  %v5994_v7 = vadd.s32 18, %v5917_v59  ;;  %3953 = vmatprep.subr.bf16.mxu1 %v3952_v43 }
 0x201   : > { %1583 = vst [vmem:[#allocation2 + $0x11] sm:$0xff] %v1563_v36  ;;  %v1223_v45 = vmax.f32 %v5953_v26, 0.0  ;;  %v4468_v61 = vadd.f32 %v3884_v44, %v5520_v8  ;;  %v1116_v55 = vpop.f32.mrb[7].mxu0  ;;  %vm5989_vm4 = vcmp.lt.s32.totalorder %v6481_v32, 16  ;;  %v3956_v24 = vpack.c.bf16 %v1632_v38, %v1630_v62  ;;  %v1635_v44 = vld [vmem:[#allocation7 + $0x90] sm:$0xff]  ;;  %v1640_v32 = vld [vmem:[#allocation7 + $0xb8] sm:$0xff] }
 0x202   : > { %v1222_v40 = vmax.f32 %v5969_v58, 0.0  ;;  %v4469_v8 = vadd.f32 %v1116_v55, %v5529_v12  ;;  %v1538_v14 = vsel %vm5961_vm2, %v5943_v51, %v5886_v48  ;;  %v1448_v16 = vshrl.u32 %v5897_v25, 4  ;;  %4734 = vmatmul.mubr.msk.f32.gmra.mrb[20].mxu1 %vm5851_vm5, %v1220_v52  ;;  %v1638_v55 = vld [vmem:[#allocation7 + $0xa8] sm:$0xff] }
 0x203   : > { %v1566_v43 = vsel %vm5878_vm9, %v1223_v45, 0.0  ;;  %v6008_v1 = vadd.f32 %v4468_v61, %v5793_v17  ;;  %v6013_v12 = vsub.s32 %v5746_v49, %v1416_v33  ;;  %v1437_v62 = vshrl.u32 %v5921_v37, 4  ;;  %1782 = vmatprep.mubr.f32.mxu1 %v6473_v41  ;;  %3955 = vmatpush1.bf16.msra.mxu1 %v3954_v23 }
 0x204   : > { %1586 = vst [vmem:[#allocation2 + $0x29] sm:$0xff] %v1566_v43  ;;  %v1565_v25 = vsel %vm5891_vm10, %v1222_v40, 0.0  ;;  %v6021_v38 = vadd.f32 %v4469_v8, %v5793_v17  ;;  %v3887_v13 = vpop.f32.mrb[8].mxu0  ;;  %v6484_v52 = vsel %vm5826_vm0, %v5808_v63, %v5714_v19  ;;  %vm1468_vm5 = vcmp.ne.s32.totalorder %v5946_v47, 0  ;;  %3957 = vmatprep.subr.bf16.mxu1 %v3956_v24  ;;  %v1633_v63 = vld [vmem:[#allocation7 + $0x80] sm:$0xff] }
 0x205   : > { %vm6028_vm15 = vcmp.lt.s32.totalorder %v6484_v52, 16  ;;  %v3958_v42 = vpack.c.bf16 %v1631_v10, %v1629_v5  ;;  %1585 = vst [vmem:[#allocation2 + $0x21] sm:$0xff] %v1565_v25  ;;  %v1225_v37 = vmax.f32 %v6008_v1, 0.0  ;;  %v4470_v33 = vadd.f32 %v3887_v13, %v5548_v22  ;;  %v1126_v36 = vpop.f32.mrb[9].mxu0  ;;  %v1639_v25 = vld [vmem:[#allocation7 + $0xb0] sm:$0xff]  ;;  %v1641_v22 = vld [vmem:[#allocation7 + $0xc0] sm:$0xff] }
 0x206   : > { %vm1486_vm0 = vcmp.lt.s32.totalorder %v5946_v47, 0  ;;  %v3960_v19 = vpack.c.bf16 %v1636_v53, %v1634_v20  ;;  %v1224_v2 = vmax.f32 %v6021_v38, 0.0  ;;  %v4471_v23 = vadd.f32 %v1126_v36, %v5561_v28  ;;  %4735 = vmatmul.mubr.msk.f32.gmra.mrb[22].mxu1 %vm5834_vm3, %v1221_v3 }
 0x207   : > { %v6052_v21 = vadd.s32 18, %v5946_v47  ;;  %v1449_v61 = vmul.u32 18, %v1448_v16  ;;  %v1568_v24 = vsel %vm5924_vm12, %v1225_v37, 0.0  ;;  %v6059_v28 = vadd.f32 %v4470_v33, %v5793_v17  ;;  %1788 = vmatprep.mubr.f32.mxu1 %v6473_v41  ;;  %3959 = vmatpush1.bf16.msra.mxu1 %v3958_v42  ;;  %vm6087_vm3 = vmand %vm1486_vm0, %vm1468_vm5  ;;  %v1644_v33 = vld [vmem:[#allocation7 + $0xd8] sm:$0xff] }
 0x208   : > { %vm1467_vm14 = vcmp.ne.s32.totalorder %v6013_v12, 0  ;;  %v1438_v5 = vmul.u32 18, %v1437_v62  ;;  %1588 = vst [vmem:[#allocation2 + $0x39] sm:$0xff] %v1568_v24  ;;  %v1567_v10 = vsel %vm5933_vm1, %v1224_v2, 0.0  ;;  %v6071_v8 = vadd.f32 %v4471_v23, %v5793_v17  ;;  %v3890_v16 = vpop.f32.mrb[10].mxu0  ;;  %3961 = vmatprep.subr.bf16.mxu1 %v3960_v19  ;;  %v1637_v62 = vld [vmem:[#allocation7 + $0xa0] sm:$0xff] }
 0x209   : > { %vm1485_vm6 = vcmp.lt.s32.totalorder %v6013_v12, 0  ;;  %v3962_v15 = vpack.c.bf16 %v1635_v44, %v1633_v63  ;;  %1587 = vst [vmem:[#allocation2 + $0x31] sm:$0xff] %v1567_v10  ;;  %v1227_v31 = vmax.f32 %v6059_v28, 0.0  ;;  %v4472_v3 = vadd.f32 %v3890_v16, %v5574_v35  ;;  %v1136_v20 = vpop.f32.mrb[11].mxu0  ;;  %v2068_v35 = vld [vmem:[#allocation7 + $0x218] sm:$0xff]  ;;  %v2074_v19 = vld [vmem:[#allocation7 + $0x248] sm:$0xff] }
 0x20a   : > { %v1537_v53 = vsel %vm6047_vm13, %v5994_v7, %v5917_v59  ;;  %v3964_v43 = vpack.c.bf16 %v1640_v32, %v1638_v55  ;;  %v1226_v13 = vmax.f32 %v6071_v8, 0.0  ;;  %v4473_v52 = vadd.f32 %v1136_v20, %v5581_v39  ;;  %v1642_v7 = vld [vmem:[#allocation7 + $0xc8] sm:$0xff]  ;;  %vm6117_vm5 = vmand %vm1485_vm6, %vm1467_vm14  ;;  %4736 = vmatmul.mubr.msk.f32.gmra.mrb[24].mxu1 %vm5891_vm10, %v1222_v40  ;;  %v1645_v20 = vld [vmem:[#allocation7 + $0xe0] sm:$0xff] }
 0x20b   : > { %v6092_v42 = vadd.s32 18, %v6013_v12  ;;  %v6095_v59 = vsub.s32 %v5864_v50, %v1449_v61  ;;  %v1570_v39 = vsel %vm5976_vm7, %v1227_v31, 0.0  ;;  %v6102_v36 = vadd.f32 %v4472_v3, %v5793_v17  ;;  %1794 = vmatprep.mubr.f32.mxu1 %v6473_v41  ;;  %3963 = vmatpush1.bf16.msra.mxu1 %v3962_v15  ;;  %v1643_v61 = vld [vmem:[#allocation7 + $0xd0] sm:$0xff] }
 0x20c   : > { %vm6109_vm8 = vcmp.lt.s32.totalorder %v1538_v14, 16  ;;  %v6126_v0 = vsub.s32 %v5873_v57, %v1438_v5  ;;  %1590 = vst [vmem:[#allocation2 + $0x49] sm:$0xff] %v1570_v39  ;;  %v1569_v48 = vsel %vm5989_vm4, %v1226_v13, 0.0  ;;  %v6133_v51 = vadd.f32 %v4473_v52, %v5793_v17  ;;  %v3893_v14 = vpop.f32.mrb[12].mxu0  ;;  %3965 = vmatprep.subr.bf16.mxu1 %v3964_v43  ;;  %v1648_v5 = vld [vmem:[#allocation7 + $0xf8] sm:$0xff]  ;;  %v2066_v52 = vld [vmem:[#allocation7 + $0x208] sm:$0xff] }
 0x20d   : > { %vm6135_vm2 = vcmp.lt.s32.totalorder %v1537_v53, 16  ;;  %v3966_v34 = vpack.c.bf16 %v1639_v25, %v1637_v62  ;;  %1589 = vst [vmem:[#allocation2 + $0x41] sm:$0xff] %v1569_v48  ;;  %v1229_v57 = vmax.f32 %v6102_v36, 0.0  ;;  %v4474_v58 = vadd.f32 %v3893_v14, %v5595_v46  ;;  %v1146_v40 = vpop.f32.mrb[13].mxu0  ;;  %v1646_v46 = vld [vmem:[#allocation7 + $0xe8] sm:$0xff]  ;;  %v1647_v53 = vld [vmem:[#allocation7 + $0xf0] sm:$0xff] }
 0x20e   : > { %v1540_v44 = vsel %vm6087_vm3, %v6052_v21, %v5946_v47  ;;  %v3968_v23 = vpack.c.bf16 %v1644_v33, %v1642_v7  ;;  %v1228_v55 = vmax.f32 %v6133_v51, 0.0  ;;  %v4475_v32 = vadd.f32 %v1146_v40, %v5606_v54  ;;  %4737 = vmatmul.mubr.msk.f32.gmra.mrb[26].mxu1 %vm5878_vm9, %v1223_v45  ;;  %v1599_v36 = vld [vmem:[#allocation2] sm:$0xff]  ;;  %v2091_v48 = vld [vmem:[#allocation7 + $0x2d0] sm:$0xff] }
 0x20f   : > { %v1539_v24 = vsel %vm6117_vm5, %v6092_v42, %v6013_v12  ;;  %vm1470_vm10 = vcmp.ne.s32.totalorder %v6095_v59, 0  ;;  %v1572_v47 = vsel %vm6028_vm15, %v1229_v57, 0.0  ;;  %v6158_v21 = vadd.f32 %v4474_v58, %v5793_v17  ;;  %1800 = vmatprep.mubr.f32.mxu1 %v6473_v41  ;;  %3967 = vmatpush1.bf16.msra.mxu1 %v3966_v34  ;;  %v2076_v51 = vld [vmem:[#allocation7 + $0x258] sm:$0xff] }
 0x210   : > { %vm1488_vm0 = vcmp.lt.s32.totalorder %v6095_v59, 0  ;;  %vm1469_vm13 = vcmp.ne.s32.totalorder %v6126_v0, 0  ;;  %1592 = vst [vmem:[#allocation2 + $0x59] sm:$0xff] %v1572_v47  ;;  %v1571_v54 = vsel %vm6036_vm11, %v1228_v55, 0.0  ;;  %v6171_v12 = vadd.f32 %v4475_v32, %v5793_v17  ;;  %v3896_v10 = vpop.f32.mrb[14].mxu0  ;;  %3969 = vmatprep.subr.bf16.mxu1 %v3968_v23  ;;  %v2080_v47 = vld [vmem:[#allocation7 + $0x278] sm:$0xff] }
 0x211   : > { %vm1487_vm14 = vcmp.lt.s32.totalorder %v6126_v0, 0  ;;  %v3970_v16 = vpack.c.bf16 %v1643_v61, %v1641_v22  ;;  %1591 = vst [vmem:[#allocation2 + $0x51] sm:$0xff] %v1571_v54  ;;  %v1231_v56 = vmax.f32 %v6158_v21, 0.0  ;;  %v4476_v26 = vadd.f32 %v3896_v10, %v5633_v11  ;;  %v1156_v45 = vpop.f32.mrb[15].mxu0  ;;  %vm6184_vm9 = vmand %vm1488_vm0, %vm1470_vm10  ;;  %v2079_v10 = vld [vmem:[#allocation7 + $0x270] sm:$0xff] }
 0x212   : > { %v1524_v15 = vadd.s32 18, %v6095_v59  ;;  %v3972_v3 = vpack.c.bf16 %v1648_v5, %v1646_v46  ;;  %v1230_v43 = vmax.f32 %v6171_v12, 0.0  ;;  %v4477_v62 = vadd.f32 %v1156_v45, %v5642_v18  ;;  %vm6202_vm3 = vmand %vm1487_vm14, %vm1469_vm13  ;;  %4738 = vmatmul.mubr.msk.f32.gmra.mrb[28].mxu1 %vm5933_vm1, %v1224_v2  ;;  %v1600_v46 = vld [vmem:[#allocation2 + $0x8] sm:$0xff]  ;;  %v2092_v18 = vld [vmem:[#allocation7 + $0x2d8] sm:$0xff] }
 0x213   : > { %v1523_v11 = vadd.s32 18, %v6126_v0  ;;  %v1574_v42 = vsel %vm6109_vm8, %v1231_v56, 0.0  ;;  %v1215_v7 = vadd.f32 %v4476_v26, %v5793_v17  ;;  %vm6194_vm6 = vcmp.lt.s32.totalorder %v1540_v44, 16  ;;  %1806 = vmatprep.mubr.f32.mxu1 %v6473_v41  ;;  %3971 = vmatpush1.bf16.msra.mxu1 %v3970_v16  ;;  %v2078_v5 = vld [vmem:[#allocation7 + $0x268] sm:$0xff]  ;;  %v2077_v12 = vld [vmem:[#allocation7 + $0x260] sm:$0xff]  ;;  %v2084_v26 = vld [vmem:[#allocation7 + $0x298] sm:$0xff] }
 0x214   : > { %1594 = vst [vmem:[#allocation2 + $0x69] sm:$0xff] %v1574_v42  ;;  %v1573_v39 = vsel %vm6135_vm2, %v1230_v43, 0.0  ;;  %v1214_v50 = vadd.f32 %v4477_v62, %v5793_v17  ;;  %vm6213_vm5 = vcmp.lt.s32.totalorder %v1539_v24, 16  ;;  %v3899_v14 = vpop.f32.mrb[16].mxu0  ;;  %v3974_v34 = vpack.c.bf16 %v1647_v53, %v1645_v20  ;;  %3973 = vmatprep.subr.bf16.mxu1 %v3972_v3  ;;  %v2075_v24 = vld [vmem:[#allocation7 + $0x250] sm:$0xff]  ;;  %v2081_v3 = vld [vmem:[#allocation7 + $0x280] sm:$0xff] }
 0x215   : > { %1593 = vst [vmem:[#allocation2 + $0x61] sm:$0xff] %v1573_v39  ;;  %v1233_v38 = vmax.f32 %v1215_v7, 0.0  ;;  %v4478_v60 = vadd.f32 %v3899_v14, %v5664_v30  ;;  %v1542_v2 = vsel %vm6184_vm9, %v1524_v15, %v6095_v59  ;;  %v1166_v58 = vpop.f32.mrb[17].mxu0  ;;  %v3976_v40 = vpack.c.bf16 %v2068_v35, %v2066_v52  ;;  %v1601_v16 = vld [vmem:[#allocation2 + $0x10] sm:$0xff]  ;;  %v1602_v53 = vld [vmem:[#allocation2 + $0x18] sm:$0xff]  ;;  %v2085_v52 = vld [vmem:[#allocation7 + $0x2a0] sm:$0xff] }
 0x216   : > { %v1232_v44 = vmax.f32 %v1214_v50, 0.0  ;;  %v4479_v23 = vadd.f32 %v1166_v58, %v5676_v9  ;;  %v1541_v22 = vsel %vm6202_vm3, %v1523_v11, %v6126_v0  ;;  %4739 = vmatmul.mubr.msk.f32.gmra.mrb[30].mxu1 %vm5924_vm12, %v1225_v37  ;;  %vm1560_vm1 = vcmp.lt.s32.totalorder %v1542_v2, 16  ;;  %v2070_v37 = vld [vmem:[#allocation7 + $0x228] sm:$0xff]  ;;  %v2083_v20 = vld [vmem:[#allocation7 + $0x290] sm:$0xff]  ;;  %v2088_v62 = vld [vmem:[#allocation7 + $0x2b8] sm:$0xff] }
 0x217   : > { %v1576_v61 = vsel %vm6194_vm6, %v1233_v38, 0.0  ;;  %v1217_v32 = vadd.f32 %v4478_v60, %v5793_v17  ;;  %1812 = vmatprep.mubr.f32.mxu1 %v6473_v41  ;;  %3975 = vmatpush1.bf16.msra.mxu1 %v3974_v34  ;;  %vm6237_vm10 = vcmp.lt.s32.totalorder %v1541_v22, 16  ;;  %v3978_v28 = vpack.c.bf16 %v2067_v6, %v2065_v29  ;;  %v2087_v35 = vld [vmem:[#allocation7 + $0x2b0] sm:$0xff]  ;;  %v1603_v42 = vld [vmem:[#allocation2 + $0x20] sm:$0xff]  ;;  %v2090_v7 = vld [vmem:[#allocation7 + $0x2c8] sm:$0xff] }
 0x218   : > { %1596 = vst [vmem:[#allocation2 + $0x79] sm:$0xff] %v1576_v61  ;;  %v1575_v30 = vsel %vm6213_vm5, %v1232_v44, 0.0  ;;  %v1216_v9 = vadd.f32 %v4479_v23, %v5793_v17  ;;  %3977 = vmatprep.subr.bf16.mxu1 %v3976_v40  ;;  %v3980_v8 = vpack.c.bf16 %v2072_v4, %v2070_v37  ;;  %v3988_v54 = vpack.c.bf16 %v2080_v47, %v2078_v5  ;;  %v2089_v50 = vld [vmem:[#allocation7 + $0x2c0] sm:$0xff]  ;;  %v2094_v34 = vld [vmem:[#allocation7 + $0x2e8] sm:$0xff]  ;;  %v2095_v40 = vld [vmem:[#allocation7 + $0x2f0] sm:$0xff] }
 0x219   : > { %1595 = vst [vmem:[#allocation2 + $0x71] sm:$0xff] %v1575_v30  ;;  %v1235_v59 = vmax.f32 %v1217_v32, 0.0  ;;  %v3990_v45 = vpack.c.bf16 %v2079_v10, %v2077_v12  ;;  %v3994_v25 = vpack.c.bf16 %v2083_v20, %v2081_v3  ;;  %v3998_v33 = vpack.c.bf16 %v2087_v35, %v2085_v52  ;;  %v1604_v14 = vld [vmem:[#allocation2 + $0x28] sm:$0xff]  ;;  %v1606_v22 = vld [vmem:[#allocation2 + $0x38] sm:$0xff]  ;;  %v1607_v61 = vld [vmem:[#allocation2 + $0x40] sm:$0xff] }
 0x21a   : > { %v1234_v1 = vmax.f32 %v1216_v9, 0.0  ;;  %4740 = vmatmul.mubr.msk.f32.gmra.mrb[32].mxu1 %vm5989_vm4, %v1226_v13  ;;  %v2071_v13 = vld [vmem:[#allocation7 + $0x230] sm:$0xff]  ;;  %v4000_v39 = vpack.c.bf16 %v2092_v18, %v2090_v7  ;;  %v4002_v60 = vpack.c.bf16 %v2091_v48, %v2089_v50  ;;  %v2093_v58 = vld [vmem:[#allocation7 + $0x2e0] sm:$0xff]  ;;  %v2049_v4 = vld [vmem:[#allocation2 + $0x1a] sm:$0xff]  ;;  %vm2400_vm12 = vcmask 113664  }
 0x21b   : > { %v1578_v27 = vsel %vm1560_vm1, %v1235_v59, 0.0  ;;  %1818 = vmatprep.mubr.f32.mxu1 %v6473_v41  ;;  %v4006_v23 = vpack.c.bf16 %v2095_v40, %v2093_v58  ;;  %v1608_v32 = vld [vmem:[#allocation2 + $0x48] sm:$0xff]  ;;  %v1609_v30 = vld [vmem:[#allocation2 + $0x50] sm:$0xff]  ;;  %v1610_v9 = vld [vmem:[#allocation2 + $0x58] sm:$0xff]  ;;  %vm5045_vm4 = vmmov 1  }
 0x21c   : > { %1598 = vst [vmem:[#allocation2 + $0x89] sm:$0x3f] %v1578_v27  ;;  %v1577_v17 = vsel %vm6237_vm10, %v1234_v1, 0.0  ;;  %v1611_v59 = vld [vmem:[#allocation2 + $0x60] sm:$0xff]  ;;  %v1612_v0 = vld [vmem:[#allocation2 + $0x68] sm:$0xff]  ;;  %v2048_v37 = vld [vmem:[#allocation2 + $0x12] sm:$0xff] }
 0x21d   : > { %1597 = vst [vmem:[#allocation2 + $0x81] sm:$0xff] %v1577_v17  ;;  %v2046_v6 = vld [vmem:[#allocation2 + $0x2] sm:$0xff]  ;;  %v2521_v12 = vld [vmem:[#allocation11 + $0x18] sm:$0xff]  ;;  %v2518_v10 = vld [vmem:[#allocation11] sm:$0xff] }
 0x21e   : > { %4741 = vmatmul.mubr.msk.f32.gmra.mrb[34].mxu1 %vm5976_vm7, %v1227_v31  ;;  %v2069_v31 = vld [vmem:[#allocation7 + $0x220] sm:$0xff]  ;;  %v2522_v20 = vld [vmem:[#allocation11 + $0x20] sm:$0xff]  ;;  %v2537_v48 = vld [vmem:[#allocation11 + $0x98] sm:$0xff]  ;;  %vm2416_vm7 = vcmask 1045504  }
 0x21f   : > { %1824 = vmatprep.mubr.f32.mxu1 %v6473_v41  ;;  %v3982_v63 = vpack.c.bf16 %v2071_v13, %v2069_v31  ;;  %v2052_v31 = vld [vmem:[#allocation2 + $0x32] sm:$0xff]  ;;  %v2053_v13 = vld [vmem:[#allocation2 + $0x3a] sm:$0xff]  ;;  %v2528_v52 = vld [vmem:[#allocation11 + $0x50] sm:$0xff] }
 0x220   : > { %v1614_v27 = vld [vmem:[#allocation2 + $0x78] sm:$0xff]  ;;  %v2541_v58 = vld [vmem:[#allocation11 + $0xb8] sm:$0xff] }
 0x221   : > { %v2531_v35 = vld [vmem:[#allocation11 + $0x68] sm:$0xff] }
 0x222   : > { %4742 = vmatmul.mubr.msk.f32.gmra.mrb[36].mxu1 %vm6036_vm11, %v1228_v55  ;;  %v2073_v55 = vld [vmem:[#allocation7 + $0x240] sm:$0xff] }
 0x223   : > { %1830 = vmatprep.mubr.f32.mxu1 %v6473_v41  ;;  %v1666_v49 = vld [vmem:[#allocation2 + $0x89] sm:$0x3f]  ;;  %v3986_v21 = vpack.c.bf16 %v2075_v24, %v2073_v55  ;;  %v2060_v24 = vld [vmem:[#allocation2 + $0x72] sm:$0xff]  ;;  %v2535_v50 = vld [vmem:[#allocation11 + $0x88] sm:$0xff] }
 0x224   : > { %v1615_v17 = vld [vmem:[#allocation2 + $0x80] sm:$0xff]  ;;  %v1616_v29 = vld [vmem:[#allocation2 + $0x88] sm:$0x3f] }
 0x225   : > { %v2059_v55 = vld [vmem:[#allocation2 + $0x6a] sm:$0xff]  ;;  %v2062_v5 = vld [vmem:[#allocation2 + $0x82] sm:$0xff] }
 0x226   : > { %4743 = vmatmul.mubr.msk.f32.gmra.mrb[38].mxu1 %vm6028_vm15, %v1229_v57  ;;  %v3984_v57 = vpack.c.bf16 %v2076_v51, %v2074_v19  ;;  %v2055_v19 = vld [vmem:[#allocation2 + $0x4a] sm:$0xff]  ;;  %v2056_v51 = vld [vmem:[#allocation2 + $0x52] sm:$0xff]  ;;  %vm4041_vm15 = vmpackc.low %vm2416_vm7, %vm5045_vm4 }
 0x227   : > { %1836 = vmatprep.mubr.f32.mxu1 %v6473_v41  ;;  %v2063_v47 = vld [vmem:[#allocation2 + $0x8a] sm:$0x3f] }
 0x22a   : > { %4744 = vmatmul.mubr.msk.f32.gmra.mrb[40].mxu1 %vm6135_vm2, %v1230_v43  ;;  %v2086_v43 = vld [vmem:[#allocation7 + $0x2a8] sm:$0xff] }
 0x22b   : > { %1842 = vmatprep.mubr.f32.mxu1 %v6473_v41  ;;  %v3996_v11 = vpack.c.bf16 %v2088_v62, %v2086_v43  ;;  %v2527_v43 = vld [vmem:[#allocation11 + $0x48] sm:$0xff]  ;;  %v2529_v62 = vld [vmem:[#allocation11 + $0x58] sm:$0xff] }
 0x22e   : > { %4745 = vmatmul.mubr.msk.f32.gmra.mrb[42].mxu1 %vm6109_vm8, %v1231_v56  ;;  %v2082_v56 = vld [vmem:[#allocation7 + $0x288] sm:$0xff] }
 0x22f   : > { %1848 = vmatprep.mubr.f32.mxu1 %v6473_v41  ;;  %v3992_v15 = vpack.c.bf16 %v2084_v26, %v2082_v56  ;;  %v2520_v56 = vld [vmem:[#allocation11 + $0x10] sm:$0xff] }
 0x230   : > { %v4048_v26 = vpack.c.bf16 %v2520_v56, %v2518_v10 }
 0x232   : > { %4746 = vmatmul.mubr.msk.f32.gmra.mrb[44].mxu1 %vm6213_vm5, %v1232_v44  ;;  %v1605_v44 = vld [vmem:[#allocation2 + $0x30] sm:$0xff] }
 0x233   : > { %1854 = vmatprep.mubr.f32.mxu1 %v6473_v41 }
 0x236   : > { %4747 = vmatmul.mubr.msk.f32.gmra.mrb[46].mxu1 %vm6194_vm6, %v1233_v38  ;;  %v2096_v38 = vld [vmem:[#allocation7 + $0x2f8] sm:$0xff] }
 0x237   : > { %1860 = vmatprep.mubr.f32.mxu1 %v6473_v41  ;;  %v4004_v2 = vpack.c.bf16 %v2096_v38, %v2094_v34  ;;  %v4062_v34 = vpack.c.bf16 %v2537_v48, %v2535_v50  ;;  %v2534_v38 = vld [vmem:[#allocation11 + $0x80] sm:$0xff] }
 0x23a   : > { %4748 = vmatmul.mubr.msk.f32.gmra.mrb[48].mxu1 %vm6237_vm10, %v1234_v1  ;;  %v1613_v1 = vld [vmem:[#allocation2 + $0x70] sm:$0xff] }
 0x23b   : > { %1866 = vmatprep.mubr.f32.mxu1 %v6473_v41 }
 0x23e   : > { %1867 = vmatmul.mubr.f32.gmra.mrb[50].mxu1 %v1666_v49  ;;  %v2047_v49 = vld [vmem:[#allocation2 + $0xa] sm:$0xff] }
 0x23f   : > { %1937 = vmatprep.mubr.f32.mxu1 %v6473_v41 }
 0x242   : > { %1938 = vmatmul.mubr.f32.vlgmr.msra.gmra.mrb[16].mxu1 %v1599_v36  ;;  %v2054_v36 = vld [vmem:[#allocation2 + $0x42] sm:$0xff] }
 0x243   : > { %3979 = vmatpush1.bf16.msra.mxu1 %v3978_v28  ;;  %1943 = vmatprep.mubr.f32.mxu1 %v6473_v41  ;;  %v2050_v28 = vld [vmem:[#allocation2 + $0x22] sm:$0xff] }
 0x244   : > { %3981 = vmatprep.subr.bf16.mxu1 %v3980_v8  ;;  %v2051_v8 = vld [vmem:[#allocation2 + $0x2a] sm:$0xff] }
 0x246   : > { %1944 = vmatmul.mubr.f32.gmra.mrb[18].mxu1 %v1600_v46  ;;  %v2061_v46 = vld [vmem:[#allocation2 + $0x7a] sm:$0xff] }
 0x247   : > { %1949 = vmatprep.mubr.f32.mxu1 %v6473_v41  ;;  %3983 = vmatpush1.bf16.msra.mxu1 %v3982_v63  ;;  %v2057_v63 = vld [vmem:[#allocation2 + $0x5a] sm:$0xff] }
 0x248   : > { %3985 = vmatprep.subr.bf16.mxu1 %v3984_v57  ;;  %v2058_v57 = vld [vmem:[#allocation2 + $0x62] sm:$0xff] }
 0x24a   : > { %1950 = vmatmul.mubr.f32.gmra.mrb[20].mxu1 %v1601_v16 }
 0x24b   : > { %1955 = vmatprep.mubr.f32.mxu1 %v6473_v41  ;;  %3987 = vmatpush1.bf16.msra.mxu1 %v3986_v21  ;;  %v2391_v21 = vld [vmem:[#allocation10 + $0x8] sm:$0xff] }
 0x24c   : > { %3989 = vmatprep.subr.bf16.mxu1 %v3988_v54  ;;  %3705 = vmatprep.mubr.msk.f32.mxu0 %vm2400_vm12, %v2391_v21  ;;  %v2519_v54 = vld [vmem:[#allocation11 + $0x8] sm:$0xff] }
 0x24d   : > { %v4046_v16 = vpack.c.bf16 %v2521_v12, %v2519_v54  ;;  %v2559_v21 = vld [vmem:[#allocation11 + $0x148] sm:$0xff]  ;;  %v2561_v54 = vld [vmem:[#allocation11 + $0x158] sm:$0xff] }
 0x24e   : > { %1956 = vmatmul.mubr.f32.gmra.mrb[22].mxu1 %v1602_v53  ;;  %v2524_v53 = vld [vmem:[#allocation11 + $0x30] sm:$0xff] }
 0x24f   : > { %1961 = vmatprep.mubr.f32.mxu1 %v6473_v41  ;;  %3991 = vmatpush1.bf16.msra.mxu1 %v3990_v45  ;;  %v2523_v45 = vld [vmem:[#allocation11 + $0x28] sm:$0xff] }
 0x250   : > { %3993 = vmatprep.subr.bf16.mxu1 %v3992_v15  ;;  %v2525_v15 = vld [vmem:[#allocation11 + $0x38] sm:$0xff] }
 0x251   : > { %v4050_v3 = vpack.c.bf16 %v2525_v15, %v2523_v45  ;;  %v4086_v45 = vpack.c.bf16 %v2561_v54, %v2559_v21  ;;  %v2558_v15 = vld [vmem:[#allocation11 + $0x140] sm:$0xff]  ;;  %v2579_v54 = vld [vmem:[#allocation11 + $0x1e8] sm:$0xff] }
 0x252   : > { %1962 = vmatmul.mubr.f32.gmra.mrb[24].mxu1 %v1603_v42  ;;  %v2533_v42 = vld [vmem:[#allocation11 + $0x78] sm:$0xff] }
 0x253   : > { %1967 = vmatprep.mubr.f32.mxu1 %v6473_v41  ;;  %3995 = vmatpush1.bf16.msra.mxu1 %v3994_v25  ;;  %v4054_v25 = vpack.c.bf16 %v2529_v62, %v2527_v43  ;;  %v4058_v18 = vpack.c.bf16 %v2533_v42, %v2531_v35  ;;  %v2562_v42 = vld [vmem:[#allocation11 + $0x160] sm:$0xff] }
 0x254   : > { %3997 = vmatprep.subr.bf16.mxu1 %v3996_v11  ;;  %v2526_v11 = vld [vmem:[#allocation11 + $0x40] sm:$0xff] }
 0x255   : > { %v4056_v7 = vpack.c.bf16 %v2528_v52, %v2526_v11 }
 0x256   : > { %1968 = vmatmul.mubr.f32.gmra.mrb[26].mxu1 %v1604_v14 }
 0x257   : > { %1973 = vmatprep.mubr.f32.mxu1 %v6473_v41  ;;  %3999 = vmatpush1.bf16.msra.mxu1 %v3998_v33  ;;  %v2530_v33 = vld [vmem:[#allocation11 + $0x60] sm:$0xff] }
 0x258   : > { %4001 = vmatprep.subr.bf16.mxu1 %v4000_v39  ;;  %v2532_v39 = vld [vmem:[#allocation11 + $0x70] sm:$0xff] }
 0x259   : > { %v4060_v14 = vpack.c.bf16 %v2532_v39, %v2530_v33  ;;  %v2567_v33 = vld [vmem:[#allocation11 + $0x188] sm:$0xff]  ;;  %v2569_v39 = vld [vmem:[#allocation11 + $0x198] sm:$0xff] }
 0x25a   : > { %1974 = vmatmul.mubr.f32.gmra.mrb[28].mxu1 %v1605_v44 }
 0x25b   : > { %1979 = vmatprep.mubr.f32.mxu1 %v6473_v41  ;;  %4003 = vmatpush1.bf16.msra.mxu1 %v4002_v60  ;;  %v2536_v60 = vld [vmem:[#allocation11 + $0x90] sm:$0xff] }
 0x25c   : > { %4005 = vmatprep.subr.bf16.mxu1 %v4004_v2  ;;  %v2539_v2 = vld [vmem:[#allocation11 + $0xa8] sm:$0xff]  ;;  %v4064_v40 = vpack.c.bf16 %v2536_v60, %v2534_v38 }
 0x25d   : > { %v4066_v44 = vpack.c.bf16 %v2541_v58, %v2539_v2 }
 0x25e   : > { %1980 = vmatmul.mubr.f32.gmra.mrb[30].mxu1 %v1606_v22  ;;  %v2540_v22 = vld [vmem:[#allocation11 + $0xb0] sm:$0xff] }
 0x25f   : > { %1985 = vmatprep.mubr.f32.mxu1 %v6473_v41  ;;  %4007 = vmatpush1.bf16.msra.mxu1 %v4006_v23  ;;  %v2538_v23 = vld [vmem:[#allocation11 + $0xa0] sm:$0xff] }
 0x260   : > { %4047 = vmatprep.subr.bf16.mxu1 %v4046_v16 }
 0x262   : > { %1986 = vmatmul.mubr.f32.gmra.mrb[32].mxu1 %v1607_v61  ;;  %v2543_v61 = vld [vmem:[#allocation11 + $0xc8] sm:$0xff] }
 0x263   : > { %1991 = vmatprep.mubr.f32.mxu1 %v6473_v41 }
 0x266   : > { %1992 = vmatmul.mubr.f32.gmra.mrb[34].mxu1 %v1608_v32  ;;  %v2545_v32 = vld [vmem:[#allocation11 + $0xd8] sm:$0xff] }
 0x267   : > { %1997 = vmatprep.mubr.f32.mxu1 %v6473_v41 }
 0x26a   : > { %1998 = vmatmul.mubr.f32.gmra.mrb[36].mxu1 %v1609_v30  ;;  %v4068_v30 = vpack.c.bf16 %v2540_v22, %v2538_v23  ;;  %v2568_v23 = vld [vmem:[#allocation11 + $0x190] sm:$0xff] }
 0x26b   : > { %2003 = vmatprep.mubr.f32.mxu1 %v6473_v41 }
 0x26e   : > { %2004 = vmatmul.mubr.f32.gmra.mrb[38].mxu1 %v1610_v9  ;;  %v4070_v9 = vpack.c.bf16 %v2545_v32, %v2543_v61  ;;  %v2571_v61 = vld [vmem:[#allocation11 + $0x1a8] sm:$0xff]  ;;  %v2573_v32 = vld [vmem:[#allocation11 + $0x1b8] sm:$0xff] }
 0x26f   : > { %2009 = vmatprep.mubr.f32.mxu1 %v6473_v41 }
 0x272   : > { %2010 = vmatmul.mubr.f32.gmra.mrb[40].mxu1 %v1611_v59  ;;  %v2542_v59 = vld [vmem:[#allocation11 + $0xc0] sm:$0xff] }
 0x273   : > { %2015 = vmatprep.mubr.f32.mxu1 %v6473_v41 }
 0x276   : > { %2016 = vmatmul.mubr.f32.gmra.mrb[42].mxu1 %v1612_v0  ;;  %v2544_v0 = vld [vmem:[#allocation11 + $0xd0] sm:$0xff] }
 0x277   : > { %2021 = vmatprep.mubr.f32.mxu1 %v6473_v41 }
 0x27a   : > { %2022 = vmatmul.mubr.f32.gmra.mrb[44].mxu1 %v1613_v1  ;;  %v2547_v1 = vld [vmem:[#allocation11 + $0xe8] sm:$0xff] }
 0x27b   : > { %2027 = vmatprep.mubr.f32.mxu1 %v6473_v41 }
 0x27e   : > { %2028 = vmatmul.mubr.f32.gmra.mrb[46].mxu1 %v1614_v27  ;;  %v2549_v27 = vld [vmem:[#allocation11 + $0xf8] sm:$0xff] }
 0x27f   : > { %2033 = vmatprep.mubr.f32.mxu1 %v6473_v41 }
 0x282   : > { %2034 = vmatmul.mubr.f32.gmra.mrb[48].mxu1 %v1615_v17  ;;  %v4072_v17 = vpack.c.bf16 %v2544_v0, %v2542_v59 }
 0x283   : > { %2039 = vmatprep.mubr.f32.mxu1 %v6473_v41 }
 0x286   : > { %2040 = vmatmul.mubr.f32.gmra.mrb[50].mxu1 %v1616_v29  ;;  %v4074_v29 = vpack.c.bf16 %v2549_v27, %v2547_v1 }
 0x287   : > { %2161 = vmatprep.mubr.f32.mxu1 %v6473_v41 }
 0x28a   : > { %2162 = vmatmul.mubr.f32.vlgmr.msra.gmra.mrb[16].mxu1 %v2046_v6  ;;  %v2546_v6 = vld [vmem:[#allocation11 + $0xe0] sm:$0xff] }
 0x28b   : > { %2167 = vmatprep.mubr.f32.mxu1 %v6473_v41  ;;  %4049 = vmatpush1.bf16.msra.mxu1 %v4048_v26 }
 0x28c   : > { %4051 = vmatprep.subr.bf16.mxu1 %v4050_v3  ;;  %v2560_v3 = vld [vmem:[#allocation11 + $0x150] sm:$0xff] }
 0x28e   : > { %2168 = vmatmul.mubr.f32.gmra.mrb[18].mxu1 %v2047_v49  ;;  %v2548_v49 = vld [vmem:[#allocation11 + $0xf0] sm:$0xff] }
 0x28f   : > { %2173 = vmatprep.mubr.f32.mxu1 %v6473_v41 }
 0x292   : > { %2174 = vmatmul.mubr.f32.gmra.mrb[20].mxu1 %v2048_v37  ;;  %v2551_v37 = vld [vmem:[#allocation11 + $0x108] sm:$0xff] }
 0x293   : > { %2179 = vmatprep.mubr.f32.mxu1 %v6473_v41 }
 0x296   : > { %2180 = vmatmul.mubr.f32.gmra.mrb[22].mxu1 %v2049_v4  ;;  %v2553_v4 = vld [vmem:[#allocation11 + $0x118] sm:$0xff] }
 0x297   : > { %2185 = vmatprep.mubr.f32.mxu1 %v6473_v41 }
 0x29a   : > { %2186 = vmatmul.mubr.f32.gmra.mrb[24].mxu1 %v2050_v28  ;;  %v4076_v28 = vpack.c.bf16 %v2548_v49, %v2546_v6  ;;  %v2572_v6 = vld [vmem:[#allocation11 + $0x1b0] sm:$0xff] }
 0x29b   : > { %2191 = vmatprep.mubr.f32.mxu1 %v6473_v41 }
 0x29e   : > { %2192 = vmatmul.mubr.f32.gmra.mrb[26].mxu1 %v2051_v8  ;;  %v4078_v8 = vpack.c.bf16 %v2553_v4, %v2551_v37  ;;  %v2575_v37 = vld [vmem:[#allocation11 + $0x1c8] sm:$0xff]  ;;  %v2577_v4 = vld [vmem:[#allocation11 + $0x1d8] sm:$0xff] }
 0x29f   : > { %2197 = vmatprep.mubr.f32.mxu1 %v6473_v41 }
 0x2a2   : > { %2198 = vmatmul.mubr.f32.gmra.mrb[28].mxu1 %v2052_v31  ;;  %v2550_v31 = vld [vmem:[#allocation11 + $0x100] sm:$0xff] }
 0x2a3   : > { %2203 = vmatprep.mubr.f32.mxu1 %v6473_v41 }
 0x2a6   : > { %2204 = vmatmul.mubr.f32.gmra.mrb[30].mxu1 %v2053_v13  ;;  %v2552_v13 = vld [vmem:[#allocation11 + $0x110] sm:$0xff] }
 0x2a7   : > { %2209 = vmatprep.mubr.f32.mxu1 %v6473_v41 }
 0x2aa   : > { %2210 = vmatmul.mubr.f32.gmra.mrb[32].mxu1 %v2054_v36  ;;  %v2555_v36 = vld [vmem:[#allocation11 + $0x128] sm:$0xff] }
 0x2ab   : > { %2215 = vmatprep.mubr.f32.mxu1 %v6473_v41 }
 0x2ae   : > { %2216 = vmatmul.mubr.f32.gmra.mrb[34].mxu1 %v2055_v19  ;;  %v2557_v19 = vld [vmem:[#allocation11 + $0x138] sm:$0xff] }
 0x2af   : > { %2221 = vmatprep.mubr.f32.mxu1 %v6473_v41 }
 0x2b2   : > { %2222 = vmatmul.mubr.f32.gmra.mrb[36].mxu1 %v2056_v51  ;;  %v6509_v51 = vld [vmem:[#allocation22_spill] sm:$0xff] }
 0x2b3   : > { %2227 = vmatprep.mubr.f32.mxu1 %v6473_v41 }
 0x2b6   : > { %2228 = vmatmul.mubr.f32.gmra.mrb[38].mxu1 %v2057_v63  ;;  %v6318_v63 = vsub.s32 0, %v6509_v51 }
 0x2b7   : > { %2233 = vmatprep.mubr.f32.mxu1 %v6473_v41 }
 0x2ba   : > { %2234 = vmatmul.mubr.f32.gmra.mrb[40].mxu1 %v2058_v57  ;;  %v2306_v57 = vld [vmem:[#allocation8] sm:$0x3] }
 0x2bb   : > { %2239 = vmatprep.mubr.f32.mxu1 %v6473_v41  ;;  %v6324_v12 = vrot.slane %v2306_v57, %v6318_v63 }
 0x2be   : > { %2240 = vmatmul.mubr.f32.gmra.mrb[42].mxu1 %v2059_v55  ;;  %v6321_v55 = vsub.s32 1, %v6509_v51 }
 0x2bf   : > { %2245 = vmatprep.mubr.f32.mxu1 %v6473_v41 }
 0x2c0   : > { %v6327_v16 = vrot.slane %v2306_v57, %v6321_v55 }
 0x2c2   : > { %2246 = vmatmul.mubr.f32.gmra.mrb[44].mxu1 %v2060_v24  ;;  %v4080_v24 = vpack.c.bf16 %v2552_v13, %v2550_v31 }
 0x2c3   : > { %2251 = vmatprep.mubr.f32.mxu1 %v6473_v41 }
 0x2c6   : > { %2252 = vmatmul.mubr.f32.gmra.mrb[46].mxu1 %v2061_v46  ;;  %v4082_v46 = vpack.c.bf16 %v2557_v19, %v2555_v36 }
 0x2c7   : > { %2257 = vmatprep.mubr.f32.mxu1 %v6473_v41 }
 0x2ca   : > { %2258 = vmatmul.mubr.f32.gmra.mrb[48].mxu1 %v2062_v5  ;;  %v2554_v5 = vld [vmem:[#allocation11 + $0x120] sm:$0xff] }
 0x2cb   : > { %2263 = vmatprep.mubr.f32.mxu1 %v6473_v41  ;;  %v4052_v41 = vpack.c.bf16 %v2524_v53, %v2522_v20  ;;  %v2563_v20 = vld [vmem:[#allocation11 + $0x168] sm:$0xff]  ;;  %v2565_v53 = vld [vmem:[#allocation11 + $0x178] sm:$0xff] }
 0x2cc   : > { %v4090_v35 = vpack.c.bf16 %v2565_v53, %v2563_v20 }
 0x2cd   : > { %4053 = vmatpush1.bf16.msra.mxu1 %v4052_v41 }
 0x2ce   : > { %2264 = vmatmul.mubr.f32.gmra.mrb[50].mxu1 %v2063_v47  ;;  %4055 = vmatprep.subr.bf16.mxu1 %v4054_v25  ;;  %v2556_v47 = vld [vmem:[#allocation11 + $0x130] sm:$0xff]  ;;  %v4088_v25 = vpack.c.bf16 %v2560_v3, %v2558_v15 }
 0x2cf   : > { %v4084_v56 = vpack.c.bf16 %v2556_v47, %v2554_v5  ;;  %v2574_v5 = vld [vmem:[#allocation11 + $0x1c0] sm:$0xff]  ;;  %v2576_v47 = vld [vmem:[#allocation11 + $0x1d0] sm:$0xff] }
 0x2d0   : > { %v4104_v15 = vpack.c.bf16 %v2576_v47, %v2574_v5 }
 0x2d1   : > { %4057 = vmatpush1.bf16.msra.mxu1 %v4056_v7  ;;  %v2564_v7 = vld [vmem:[#allocation11 + $0x170] sm:$0xff] }
 0x2d2   : > { %4059 = vmatprep.subr.bf16.mxu1 %v4058_v18  ;;  %v4092_v60 = vpack.c.bf16 %v2564_v7, %v2562_v42 }
 0x2d5   : > { %4061 = vmatpush1.bf16.msra.mxu1 %v4060_v14 }
 0x2d6   : > { %4063 = vmatprep.subr.bf16.mxu1 %v4062_v34 }
 0x2d9   : > { %4065 = vmatpush1.bf16.msra.mxu1 %v4064_v40  ;;  %v4094_v40 = vpack.c.bf16 %v2569_v39, %v2567_v33 }
 0x2da   : > { %4067 = vmatprep.subr.bf16.mxu1 %v4066_v44  ;;  %v2566_v44 = vld [vmem:[#allocation11 + $0x180] sm:$0xff] }
 0x2db   : > { %v4096_v0 = vpack.c.bf16 %v2568_v23, %v2566_v44 }
 0x2dd   : > { %4069 = vmatpush1.bf16.msra.mxu1 %v4068_v30 }
 0x2de   : > { %4071 = vmatprep.subr.bf16.mxu1 %v4070_v9 }
 0x2e1   : > { %4073 = vmatpush1.bf16.msra.mxu1 %v4072_v17  ;;  %v4098_v17 = vpack.c.bf16 %v2573_v32, %v2571_v61 }
 0x2e2   : > { %4075 = vmatprep.subr.bf16.mxu1 %v4074_v29  ;;  %v2570_v29 = vld [vmem:[#allocation11 + $0x1a0] sm:$0xff] }
 0x2e3   : > { %v4100_v19 = vpack.c.bf16 %v2572_v6, %v2570_v29 }
 0x2e5   : > { %4077 = vmatpush1.bf16.msra.mxu1 %v4076_v28 }
 0x2e6   : > { %4079 = vmatprep.subr.bf16.mxu1 %v4078_v8 }
 0x2e9   : > { %4081 = vmatpush1.bf16.msra.mxu1 %v4080_v24 }
 0x2ea   : > { %4083 = vmatprep.subr.bf16.mxu1 %v4082_v46  ;;  %v4102_v46 = vpack.c.bf16 %v2577_v4, %v2575_v37 }
 0x2ed   : > { %4085 = vmatpush1.bf16.msra.mxu1 %v4084_v56 }
 0x2ee   : > { %4087 = vmatprep.subr.bf16.mxu1 %v4086_v45 }
 0x2f1   : > { %4089 = vmatpush1.bf16.msra.mxu1 %v4088_v25 }
 0x2f2   : > { %4091 = vmatprep.subr.bf16.mxu1 %v4090_v35 }
 0x2f5   : > { %4093 = vmatpush1.bf16.msra.mxu1 %v4092_v60 }
 0x2f6   : > { %4095 = vmatprep.subr.bf16.mxu1 %v4094_v40 }
 0x2f9   : > { %4097 = vmatpush1.bf16.msra.mxu1 %v4096_v0 }
 0x2fa   : > { %4099 = vmatprep.subr.bf16.mxu1 %v4098_v17 }
 0x2fd   : > { %4101 = vmatpush1.bf16.msra.mxu1 %v4100_v19 }
 0x2fe   : > { %4103 = vmatprep.subr.bf16.mxu1 %v4102_v46 }
 0x301   : > { %4105 = vmatpush1.bf16.msra.mxu1 %v4104_v15 }
 0x35d   : > { %v2163_v10 = vpop.f32.mrb[16].mxu1 }
 0x35e   : > { %v2165_v26 = vpop.f32.mrb[17].mxu1  ;;  %v2318_v41 = vadd.f32 %v6324_v12, %v2163_v10  ;;  %v2581_v10 = vld [vmem:[#allocation11 + $0x1f8] sm:$0xff] }
 0x35f   : > { %v2319_v43 = vadd.f32 %v6327_v16, %v2165_v26  ;;  %v4106_v53 = vpack.c.bf16 %v2581_v10, %v2579_v54 }
 0x360   : > { %v2354_v50 = vmax.f32 %v2318_v41, 0.0 }
 0x361   : > { %v2169_v62 = vpop.f32.mrb[18].mxu1  ;;  %v2355_v14 = vmax.f32 %v2319_v43, 0.0  ;;  %4107 = vmatprep.subr.bf16.mxu1 %v4106_v53 }
 0x362   : > { %v2320_v11 = vadd.f32 %v6324_v12, %v2169_v62  ;;  %v2171_v52 = vpop.f32.mrb[19].mxu1 }
 0x363   : > { %v2321_v18 = vadd.f32 %v6327_v16, %v2171_v52 }
 0x364   : > { %v2356_v48 = vmax.f32 %v2320_v11, 0.0 }
 0x365   : > { %v2357_v34 = vmax.f32 %v2321_v18, 0.0  ;;  %v2175_v38 = vpop.f32.mrb[20].mxu1 }
 0x366   : > { %v4010_v2 = vpack.c.bf16 %v2356_v48, %v2354_v50  ;;  %v2177_v58 = vpop.f32.mrb[21].mxu1  ;;  %v2322_v30 = vadd.f32 %v6324_v12, %v2175_v38 }
 0x367   : > { %v4008_v22 = vpack.c.bf16 %v2357_v34, %v2355_v14  ;;  %v2323_v9 = vadd.f32 %v6327_v16, %v2177_v58 }
 0x368   : > { %v2358_v28 = vmax.f32 %v2322_v30, 0.0 }
 0x369   : > { %v2181_v59 = vpop.f32.mrb[22].mxu1  ;;  %4009 = vmatprep.subr.bf16.mxu0 %v4008_v22  ;;  %v2359_v31 = vmax.f32 %v2323_v9, 0.0 }
 0x36a   : > { %v2324_v1 = vadd.f32 %v6324_v12, %v2181_v59  ;;  %v2183_v27 = vpop.f32.mrb[23].mxu1  ;;  %4011 = vmatpush1.bf16.msra.mxu0 %v4010_v2 }
 0x36b   : > { %v2325_v49 = vadd.f32 %v6327_v16, %v2183_v27 }
 0x36c   : > { %v2360_v8 = vmax.f32 %v2324_v1, 0.0 }
 0x36d   : > { %v2361_v13 = vmax.f32 %v2325_v49, 0.0  ;;  %v2187_v36 = vpop.f32.mrb[24].mxu1 }
 0x36e   : > { %v4014_v57 = vpack.c.bf16 %v2360_v8, %v2358_v28  ;;  %v2189_v24 = vpop.f32.mrb[25].mxu1  ;;  %v2326_v56 = vadd.f32 %v6324_v12, %v2187_v36 }
 0x36f   : > { %v4012_v21 = vpack.c.bf16 %v2361_v13, %v2359_v31  ;;  %v2327_v26 = vadd.f32 %v6327_v16, %v2189_v24 }
 0x370   : > { %v2362_v43 = vmax.f32 %v2326_v56, 0.0 }
 0x371   : > { %v2193_v45 = vpop.f32.mrb[26].mxu1  ;;  %4013 = vmatprep.subr.bf16.mxu0 %v4012_v21  ;;  %v2363_v25 = vmax.f32 %v2327_v26, 0.0 }
 0x372   : > { %v2328_v3 = vadd.f32 %v6324_v12, %v2193_v45  ;;  %v2195_v20 = vpop.f32.mrb[27].mxu1  ;;  %4015 = vmatpush1.bf16.msra.mxu0 %v4014_v57 }
 0x373   : > { %v2329_v41 = vadd.f32 %v6327_v16, %v2195_v20 }
 0x374   : > { %v2364_v62 = vmax.f32 %v2328_v3, 0.0 }
 0x375   : > { %v2365_v11 = vmax.f32 %v2329_v41, 0.0  ;;  %v2199_v52 = vpop.f32.mrb[28].mxu1 }
 0x376   : > { %v4018_v35 = vpack.c.bf16 %v2364_v62, %v2362_v43  ;;  %v2201_v42 = vpop.f32.mrb[29].mxu1  ;;  %v2330_v18 = vadd.f32 %v6324_v12, %v2199_v52 }
 0x377   : > { %v4016_v7 = vpack.c.bf16 %v2365_v11, %v2363_v25  ;;  %v2331_v33 = vadd.f32 %v6327_v16, %v2201_v42 }
 0x378   : > { %v2366_v34 = vmax.f32 %v2330_v18, 0.0 }
 0x379   : > { %v2205_v39 = vpop.f32.mrb[30].mxu1  ;;  %4017 = vmatprep.subr.bf16.mxu0 %v4016_v7  ;;  %v2367_v60 = vmax.f32 %v2331_v33, 0.0 }
 0x37a   : > { %v2332_v50 = vadd.f32 %v6324_v12, %v2205_v39  ;;  %v2207_v48 = vpop.f32.mrb[31].mxu1  ;;  %4019 = vmatpush1.bf16.msra.mxu0 %v4018_v35 }
 0x37b   : > { %v2333_v14 = vadd.f32 %v6327_v16, %v2207_v48 }
 0x37c   : > { %v2368_v38 = vmax.f32 %v2332_v50, 0.0 }
 0x37d   : > { %v2369_v2 = vmax.f32 %v2333_v14, 0.0  ;;  %v2211_v58 = vpop.f32.mrb[32].mxu1 }
 0x37e   : > { %v4022_v40 = vpack.c.bf16 %v2368_v38, %v2366_v34  ;;  %v2213_v44 = vpop.f32.mrb[33].mxu1  ;;  %v2334_v22 = vadd.f32 %v6324_v12, %v2211_v58 }
 0x37f   : > { %v4020_v23 = vpack.c.bf16 %v2369_v2, %v2367_v60  ;;  %v2335_v61 = vadd.f32 %v6327_v16, %v2213_v44 }
 0x380   : > { %v2370_v0 = vmax.f32 %v2334_v22, 0.0 }
 0x381   : > { %v2217_v32 = vpop.f32.mrb[34].mxu1  ;;  %4021 = vmatprep.subr.bf16.mxu0 %v4020_v23  ;;  %v2371_v27 = vmax.f32 %v2335_v61, 0.0 }
 0x382   : > { %v2336_v30 = vadd.f32 %v6324_v12, %v2217_v32  ;;  %v2219_v9 = vpop.f32.mrb[35].mxu1  ;;  %4023 = vmatpush1.bf16.msra.mxu0 %v4022_v40 }
 0x383   : > { %v2337_v59 = vadd.f32 %v6327_v16, %v2219_v9 }
 0x384   : > { %v2372_v1 = vmax.f32 %v2336_v30, 0.0 }
 0x385   : > { %v2373_v17 = vmax.f32 %v2337_v59, 0.0  ;;  %v2223_v29 = vpop.f32.mrb[36].mxu1  ;;  %v2583_v59 = vld [vmem:[#allocation11 + $0x208] sm:$0xff] }
 0x386   : > { %v4026_v6 = vpack.c.bf16 %v2372_v1, %v2370_v0  ;;  %v2225_v49 = vpop.f32.mrb[37].mxu1  ;;  %v2338_v4 = vadd.f32 %v6324_v12, %v2223_v29  ;;  %v2585_v0 = vld [vmem:[#allocation11 + $0x218] sm:$0xff] }
 0x387   : > { %v4024_v37 = vpack.c.bf16 %v2373_v17, %v2371_v27  ;;  %v2339_v28 = vadd.f32 %v6327_v16, %v2225_v49  ;;  %v2582_v49 = vld [vmem:[#allocation11 + $0x200] sm:$0xff] }
 0x388   : > { %v2374_v19 = vmax.f32 %v2338_v4, 0.0  ;;  %v2587_v4 = vld [vmem:[#allocation11 + $0x228] sm:$0xff] }
 0x389   : > { %v2229_v8 = vpop.f32.mrb[38].mxu1  ;;  %4025 = vmatprep.subr.bf16.mxu0 %v4024_v37  ;;  %v2375_v24 = vmax.f32 %v2339_v28, 0.0  ;;  %v2584_v37 = vld [vmem:[#allocation11 + $0x210] sm:$0xff] }
 0x38a   : > { %v2340_v31 = vadd.f32 %v6324_v12, %v2229_v8  ;;  %v2231_v13 = vpop.f32.mrb[39].mxu1  ;;  %4027 = vmatpush1.bf16.msra.mxu0 %v4026_v6  ;;  %v4110_v6 = vpack.c.bf16 %v2585_v0, %v2583_v59  ;;  %v2390_v28 = vld [vmem:[#allocation10] sm:$0xff]  ;;  %v2393_v8 = vld [vmem:[#allocation10 + $0x18] sm:$0xff]  ;;  %v2617_v59 = vld [vmem:[#allocation11 + $0x318] sm:$0xff] }
 0x38b   : > { %v2341_v36 = vadd.f32 %v6327_v16, %v2231_v13  ;;  %v2586_v13 = vld [vmem:[#allocation11 + $0x220] sm:$0xff] }
 0x38c   : > { %v2376_v57 = vmax.f32 %v2340_v31, 0.0 }
 0x38d   : > { %v2377_v46 = vmax.f32 %v2341_v36, 0.0  ;;  %v2235_v5 = vpop.f32.mrb[40].mxu1  ;;  %v2588_v36 = vld [vmem:[#allocation11 + $0x230] sm:$0xff] }
 0x38e   : > { %v4030_v47 = vpack.c.bf16 %v2376_v57, %v2374_v19  ;;  %v2237_v21 = vpop.f32.mrb[41].mxu1  ;;  %v2342_v10 = vadd.f32 %v6324_v12, %v2235_v5  ;;  %v2591_v19 = vld [vmem:[#allocation11 + $0x248] sm:$0xff]  ;;  %v2593_v57 = vld [vmem:[#allocation11 + $0x258] sm:$0xff] }
 0x38f   : > { %v4028_v54 = vpack.c.bf16 %v2377_v46, %v2375_v24  ;;  %v2343_v56 = vadd.f32 %v6327_v16, %v2237_v21  ;;  %v2392_v24 = vld [vmem:[#allocation10 + $0x10] sm:$0xff]  ;;  %v4116_v46 = vpack.c.bf16 %v2588_v36, %v2586_v13  ;;  %v2395_v5 = vld [vmem:[#allocation10 + $0x28] sm:$0xff]  ;;  %v2624_v36 = vld [vmem:[#allocation11 + $0x350] sm:$0xff] }
 0x390   : > { %v2378_v20 = vmax.f32 %v2342_v10, 0.0  ;;  %v2590_v21 = vld [vmem:[#allocation11 + $0x240] sm:$0xff]  ;;  %v2595_v10 = vld [vmem:[#allocation11 + $0x268] sm:$0xff] }
 0x391   : > { %v2241_v26 = vpop.f32.mrb[42].mxu1  ;;  %4029 = vmatprep.subr.bf16.mxu0 %v4028_v54  ;;  %v2379_v41 = vmax.f32 %v2343_v56, 0.0  ;;  %v2592_v54 = vld [vmem:[#allocation11 + $0x250] sm:$0xff]  ;;  %v2597_v56 = vld [vmem:[#allocation11 + $0x278] sm:$0xff]  ;;  %v2622_v13 = vld [vmem:[#allocation11 + $0x340] sm:$0xff] }
 0x392   : > { %v2344_v45 = vadd.f32 %v6324_v12, %v2241_v26  ;;  %v2243_v15 = vpop.f32.mrb[43].mxu1  ;;  %4031 = vmatpush1.bf16.msra.mxu0 %v4030_v47  ;;  %v4118_v47 = vpack.c.bf16 %v2593_v57, %v2591_v19  ;;  %v2394_v26 = vld [vmem:[#allocation10 + $0x20] sm:$0xff]  ;;  %v2627_v19 = vld [vmem:[#allocation11 + $0x368] sm:$0xff]  ;;  %v2629_v57 = vld [vmem:[#allocation11 + $0x378] sm:$0xff] }
 0x393   : > { %v2345_v3 = vadd.f32 %v6327_v16, %v2243_v15  ;;  %v2397_v15 = vld [vmem:[#allocation10 + $0x38] sm:$0xff] }
 0x394   : > { %v2380_v53 = vmax.f32 %v2344_v45, 0.0  ;;  %v4120_v45 = vpack.c.bf16 %v2592_v54, %v2590_v21  ;;  %v2631_v21 = vld [vmem:[#allocation11 + $0x388] sm:$0xff]  ;;  %v2633_v54 = vld [vmem:[#allocation11 + $0x398] sm:$0xff] }
 0x395   : > { %v2381_v43 = vmax.f32 %v2345_v3, 0.0  ;;  %v2247_v62 = vpop.f32.mrb[44].mxu1  ;;  %v4122_v3 = vpack.c.bf16 %v2597_v56, %v2595_v10  ;;  %v4158_v56 = vpack.c.bf16 %v2633_v54, %v2631_v21 }
 0x396   : > { %v4034_v25 = vpack.c.bf16 %v2380_v53, %v2378_v20  ;;  %v2249_v11 = vpop.f32.mrb[45].mxu1  ;;  %v2346_v35 = vadd.f32 %v6324_v12, %v2247_v62  ;;  %v2594_v20 = vld [vmem:[#allocation11 + $0x260] sm:$0xff]  ;;  %v2596_v53 = vld [vmem:[#allocation11 + $0x270] sm:$0xff] }
 0x397   : > { %v4032_v52 = vpack.c.bf16 %v2381_v43, %v2379_v41  ;;  %v2347_v42 = vadd.f32 %v6327_v16, %v2249_v11  ;;  %v2599_v41 = vld [vmem:[#allocation11 + $0x288] sm:$0xff]  ;;  %v2601_v43 = vld [vmem:[#allocation11 + $0x298] sm:$0xff]  ;;  %v2396_v62 = vld [vmem:[#allocation10 + $0x30] sm:$0xff] }
 0x398   : > { %v2382_v50 = vmax.f32 %v2346_v35, 0.0  ;;  %v4126_v11 = vpack.c.bf16 %v2601_v43, %v2599_v41  ;;  %v2600_v35 = vld [vmem:[#allocation11 + $0x290] sm:$0xff]  ;;  %v2634_v41 = vld [vmem:[#allocation11 + $0x3a0] sm:$0xff] }
 0x399   : > { %v2253_v7 = vpop.f32.mrb[46].mxu1  ;;  %4033 = vmatprep.subr.bf16.mxu0 %v4032_v52  ;;  %v2383_v14 = vmax.f32 %v2347_v42, 0.0  ;;  %v2598_v52 = vld [vmem:[#allocation11 + $0x280] sm:$0xff]  ;;  %v2399_v42 = vld [vmem:[#allocation10 + $0x48] sm:$0xff]  ;;  %v2636_v43 = vld [vmem:[#allocation11 + $0x3b0] sm:$0xff] }
 0x39a   : > { %v2348_v18 = vadd.f32 %v6324_v12, %v2253_v7  ;;  %v2255_v33 = vpop.f32.mrb[47].mxu1  ;;  %4035 = vmatpush1.bf16.msra.mxu0 %v4034_v25  ;;  %v4124_v25 = vpack.c.bf16 %v2596_v53, %v2594_v20  ;;  %v2603_v7 = vld [vmem:[#allocation11 + $0x2a8] sm:$0xff] }
 0x39b   : > { %v2349_v39 = vadd.f32 %v6327_v16, %v2255_v33  ;;  %v4128_v33 = vpack.c.bf16 %v2600_v35, %v2598_v52  ;;  %v2638_v35 = vld [vmem:[#allocation11 + $0x3c0] sm:$0xff] }
 0x39c   : > { %v2384_v48 = vmax.f32 %v2348_v18, 0.0  ;;  %v2605_v18 = vld [vmem:[#allocation11 + $0x2b8] sm:$0xff] }
 0x39d   : > { %v2385_v34 = vmax.f32 %v2349_v39, 0.0  ;;  %v2259_v38 = vpop.f32.mrb[48].mxu1  ;;  %v2398_v39 = vld [vmem:[#allocation10 + $0x40] sm:$0xff] }
 0x39e   : > { %v4038_v60 = vpack.c.bf16 %v2384_v48, %v2382_v50  ;;  %v2350_v2 = vadd.f32 %v6324_v12, %v2259_v38  ;;  %v2261_v58 = vpop.f32.mrb[49].mxu1  ;;  %v4130_v50 = vpack.c.bf16 %v2605_v18, %v2603_v7  ;;  %v2602_v48 = vld [vmem:[#allocation11 + $0x2a0] sm:$0xff]  ;;  %v2609_v38 = vld [vmem:[#allocation11 + $0x2d8] sm:$0xff] }
 0x39f   : > { %v4036_v40 = vpack.c.bf16 %v2385_v34, %v2383_v14  ;;  %v2351_v44 = vadd.f32 %v6327_v16, %v2261_v58  ;;  %v2604_v14 = vld [vmem:[#allocation11 + $0x2b0] sm:$0xff]  ;;  %v2607_v34 = vld [vmem:[#allocation11 + $0x2c8] sm:$0xff]  ;;  %v2606_v58 = vld [vmem:[#allocation11 + $0x2c0] sm:$0xff] }
 0x3a0   : > { %v2386_v30 = vmax.f32 %v2350_v2, 0.0  ;;  %v4134_v2 = vpack.c.bf16 %v2609_v38, %v2607_v34  ;;  %v2578_v18 = vld [vmem:[#allocation11 + $0x1e0] sm:$0xff]  ;;  %v2644_v38 = vld [vmem:[#allocation11 + $0x3f0] sm:$0xff] }
 0x3a1   : > { %v2265_v23 = vpop.f32.mrb[50].mxu1  ;;  %4037 = vmatprep.subr.bf16.mxu0 %v4036_v40  ;;  %v2387_v1 = vmax.f32 %v2351_v44, 0.0  ;;  %v2608_v40 = vld [vmem:[#allocation11 + $0x2d0] sm:$0xff]  ;;  %v2611_v44 = vld [vmem:[#allocation11 + $0x2e8] sm:$0xff]  ;;  %v2642_v34 = vld [vmem:[#allocation11 + $0x3e0] sm:$0xff] }
 0x3a2   : > { %v2352_v22 = vadd.f32 %v6324_v12, %v2265_v23  ;;  %v2267_v61 = vpop.f32.mrb[51].mxu1  ;;  %4039 = vmatpush1.bf16.msra.mxu0 %v4038_v60  ;;  %v2589_v12 = vld [vmem:[#allocation11 + $0x238] sm:$0xff]  ;;  %v4132_v60 = vpack.c.bf16 %v2604_v14, %v2602_v48 }
 0x3a3   : > { %v2353_v32 = vadd.f32 %v6327_v16, %v2267_v61  ;;  %v4112_v16 = vpack.c.bf16 %v2584_v37, %v2582_v49  ;;  %v4114_v31 = vpack.c.bf16 %v2589_v12, %v2587_v4  ;;  %v2613_v23 = vld [vmem:[#allocation11 + $0x2f8] sm:$0xff]  ;;  %v2618_v4 = vld [vmem:[#allocation11 + $0x320] sm:$0xff]  ;;  %v2620_v12 = vld [vmem:[#allocation11 + $0x330] sm:$0xff] }
 0x3a4   : > { %v2388_v9 = vmax.f32 %v2352_v22, 0.0  ;;  %v4136_v22 = vpack.c.bf16 %v2608_v40, %v2606_v58  ;;  %v4138_v61 = vpack.c.bf16 %v2613_v23, %v2611_v44  ;;  %v2645_v48 = vld [vmem:[#allocation11 + $0x3f8] sm:$0xff] }
 0x3a5   : > { %v2389_v27 = vmax.f32 %v2353_v32, 0.0  ;;  %v2610_v32 = vld [vmem:[#allocation11 + $0x2e0] sm:$0xff]  ;;  %v2649_v58 = vld [vmem:[#allocation11 + $0x418] sm:$0xff] }
 0x3a6   : > { %v4043_v17 = vpack.c.bf16 %v2388_v9, %v2386_v30  ;;  %v2612_v30 = vld [vmem:[#allocation11 + $0x2f0] sm:$0xff]  ;;  %v2615_v9 = vld [vmem:[#allocation11 + $0x308] sm:$0xff] }
 0x3a7   : > { %v4040_v29 = vpack.c.bf16 %v2389_v27, %v2387_v1  ;;  %v4140_v0 = vpack.c.bf16 %v2612_v30, %v2610_v32  ;;  %v4142_v1 = vpack.c.bf16 %v2617_v59, %v2615_v9  ;;  %v2614_v27 = vld [vmem:[#allocation11 + $0x300] sm:$0xff]  ;;  %v2651_v32 = vld [vmem:[#allocation11 + $0x428] sm:$0xff]  ;;  %v2653_v30 = vld [vmem:[#allocation11 + $0x438] sm:$0xff] }
 0x3a9   : > { %4042 = vmatprep.subr.msk.bf16.mxu0 %vm4041_vm15, %v4040_v29  ;;  %v2619_v29 = vld [vmem:[#allocation11 + $0x328] sm:$0xff] }
 0x3aa   : > { %4045 = vmatpush1.bf16.msk.msra.mxu0 %vm4041_vm15, %v4043_v17  ;;  %v2616_v17 = vld [vmem:[#allocation11 + $0x310] sm:$0xff] }
 0x3ab   : > { %4111 = vmatprep.subr.bf16.mxu0 %v4110_v6  ;;  %v2621_v6 = vld [vmem:[#allocation11 + $0x338] sm:$0xff]  ;;  %v4144_v49 = vpack.c.bf16 %v2616_v17, %v2614_v27  ;;  %v2650_v27 = vld [vmem:[#allocation11 + $0x420] sm:$0xff]  ;;  %v2652_v17 = vld [vmem:[#allocation11 + $0x430] sm:$0xff] }
 0x3ac   : > { %v4146_v37 = vpack.c.bf16 %v2621_v6, %v2619_v29  ;;  %v2655_v29 = vld [vmem:[#allocation11 + $0x448] sm:$0xff]  ;;  %v2657_v6 = vld [vmem:[#allocation11 + $0x458] sm:$0xff] }
 0x3ad   : > { %2488 = vmatmul.mubr.f32.vlgmr.msra.gmra.mrb[18].mxu0 %v2390_v28  ;;  %v2623_v28 = vld [vmem:[#allocation11 + $0x348] sm:$0xff] }
 0x3ae   : > { %3706 = vmatprep.mubr.msk.f32.mxu0 %vm2400_vm12, %v2393_v8  ;;  %4113 = vmatpush1.bf16.msra.mxu0 %v4112_v16  ;;  %v2625_v16 = vld [vmem:[#allocation11 + $0x358] sm:$0xff]  ;;  %v4148_v8 = vpack.c.bf16 %v2620_v12, %v2618_v4  ;;  %v4182_v4 = vpack.c.bf16 %v2657_v6, %v2655_v29  ;;  %v2654_v12 = vld [vmem:[#allocation11 + $0x440] sm:$0xff] }
 0x3af   : > { %4115 = vmatprep.subr.bf16.mxu0 %v4114_v31  ;;  %v4150_v31 = vpack.c.bf16 %v2625_v16, %v2623_v28  ;;  %v2656_v28 = vld [vmem:[#allocation11 + $0x450] sm:$0xff]  ;;  %v2690_v6 = vld [vmem:[#allocation11 + $0x560] sm:$0xff] }
 0x3b1   : > { %2494 = vmatmul.mubr.f32.gmra.mrb[20].mxu0 %v2392_v24  ;;  %v4152_v24 = vpack.c.bf16 %v2624_v36, %v2622_v13  ;;  %v4184_v13 = vpack.c.bf16 %v2656_v28, %v2654_v12  ;;  %v2697_v12 = vld [vmem:[#allocation11 + $0x598] sm:$0xff] }
 0x3b2   : > { %3707 = vmatprep.mubr.msk.f32.mxu0 %vm2400_vm12, %v2395_v5  ;;  %4117 = vmatpush1.bf16.msra.mxu0 %v4116_v46  ;;  %v4154_v46 = vpack.c.bf16 %v2629_v57, %v2627_v19  ;;  %v2626_v5 = vld [vmem:[#allocation11 + $0x360] sm:$0xff] }
 0x3b3   : > { %4119 = vmatprep.subr.bf16.mxu0 %v4118_v47  ;;  %v2628_v47 = vld [vmem:[#allocation11 + $0x370] sm:$0xff]  ;;  %v2658_v57 = vld [vmem:[#allocation11 + $0x460] sm:$0xff] }
 0x3b4   : > { %v4156_v10 = vpack.c.bf16 %v2628_v47, %v2626_v5  ;;  %v2663_v5 = vld [vmem:[#allocation11 + $0x488] sm:$0xff]  ;;  %v2665_v47 = vld [vmem:[#allocation11 + $0x498] sm:$0xff] }
 0x3b5   : > { %2500 = vmatmul.mubr.f32.gmra.mrb[22].mxu0 %v2394_v26  ;;  %v2630_v26 = vld [vmem:[#allocation11 + $0x380] sm:$0xff]  ;;  %v4190_v54 = vpack.c.bf16 %v2665_v47, %v2663_v5  ;;  %v2700_v47 = vld [vmem:[#allocation11 + $0x5b0] sm:$0xff] }
 0x3b6   : > { %3708 = vmatprep.mubr.msk.f32.mxu0 %vm2400_vm12, %v2397_v15  ;;  %4121 = vmatpush1.bf16.msra.mxu0 %v4120_v45  ;;  %v2632_v45 = vld [vmem:[#allocation11 + $0x390] sm:$0xff]  ;;  %v2635_v15 = vld [vmem:[#allocation11 + $0x3a8] sm:$0xff]  ;;  %v2698_v5 = vld [vmem:[#allocation11 + $0x5a0] sm:$0xff] }
 0x3b7   : > { %4123 = vmatprep.subr.bf16.mxu0 %v4122_v3  ;;  %v2637_v3 = vld [vmem:[#allocation11 + $0x3b8] sm:$0xff]  ;;  %v4160_v20 = vpack.c.bf16 %v2632_v45, %v2630_v26  ;;  %v2667_v26 = vld [vmem:[#allocation11 + $0x4a8] sm:$0xff] }
 0x3b8   : > { %v4162_v53 = vpack.c.bf16 %v2637_v3, %v2635_v15  ;;  %v2669_v45 = vld [vmem:[#allocation11 + $0x4b8] sm:$0xff] }
 0x3b9   : > { %2506 = vmatmul.mubr.f32.gmra.mrb[24].mxu0 %v2396_v62  ;;  %v2639_v62 = vld [vmem:[#allocation11 + $0x3c8] sm:$0xff]  ;;  %v4194_v3 = vpack.c.bf16 %v2669_v45, %v2667_v26  ;;  %v2702_v26 = vld [vmem:[#allocation11 + $0x5c0] sm:$0xff]  ;;  %v2704_v45 = vld [vmem:[#allocation11 + $0x5d0] sm:$0xff] }
 0x3ba   : > { %4125 = vmatpush1.bf16.msra.mxu0 %v4124_v25  ;;  %3709 = vmatprep.mubr.msk.f32.mxu0 %vm2400_vm12, %v2399_v42  ;;  %v2641_v25 = vld [vmem:[#allocation11 + $0x3d8] sm:$0xff]  ;;  %v2640_v42 = vld [vmem:[#allocation11 + $0x3d0] sm:$0xff] }
 0x3bb   : > { %4127 = vmatprep.subr.bf16.mxu0 %v4126_v11  ;;  %v4164_v11 = vpack.c.bf16 %v2636_v43, %v2634_v41  ;;  %v4166_v52 = vpack.c.bf16 %v2641_v25, %v2639_v62  ;;  %v4168_v7 = vpack.c.bf16 %v2640_v42, %v2638_v35  ;;  %v2671_v41 = vld [vmem:[#allocation11 + $0x4c8] sm:$0xff]  ;;  %v2673_v43 = vld [vmem:[#allocation11 + $0x4d8] sm:$0xff] }
 0x3bc   : > { %v4198_v25 = vpack.c.bf16 %v2673_v43, %v2671_v41  ;;  %v2675_v35 = vld [vmem:[#allocation11 + $0x4e8] sm:$0xff]  ;;  %v2677_v42 = vld [vmem:[#allocation11 + $0x4f8] sm:$0xff]  ;;  %v2706_v41 = vld [vmem:[#allocation11 + $0x5e0] sm:$0xff] }
 0x3bd   : > { %2512 = vmatmul.mubr.f32.gmra.mrb[26].mxu0 %v2398_v39  ;;  %v2708_v43 = vld [vmem:[#allocation11 + $0x5f0] sm:$0xff] }
 0x3be   : > { %4129 = vmatpush1.bf16.msra.mxu0 %v4128_v33  ;;  %v2580_v33 = vld [vmem:[#allocation11 + $0x1f0] sm:$0xff] }
 0x3bf   : > { %4131 = vmatprep.subr.bf16.mxu0 %v4130_v50  ;;  %v4108_v39 = vpack.c.bf16 %v2580_v33, %v2578_v18  ;;  %v2643_v50 = vld [vmem:[#allocation11 + $0x3e8] sm:$0xff]  ;;  %v4202_v18 = vpack.c.bf16 %v2677_v42, %v2675_v35  ;;  %v2674_v33 = vld [vmem:[#allocation11 + $0x4e0] sm:$0xff]  ;;  %v2712_v42 = vld [vmem:[#allocation11 + $0x610] sm:$0xff] }
 0x3c0   : > { %v4170_v14 = vpack.c.bf16 %v2645_v48, %v2643_v50  ;;  %v2679_v50 = vld [vmem:[#allocation11 + $0x508] sm:$0xff]  ;;  %v2681_v48 = vld [vmem:[#allocation11 + $0x518] sm:$0xff]  ;;  %v2710_v35 = vld [vmem:[#allocation11 + $0x600] sm:$0xff] }
 0x3c1   : > { %4109 = vmatpush1.bf16.msra.mxu1 %v4108_v39  ;;  %v2676_v39 = vld [vmem:[#allocation11 + $0x4f0] sm:$0xff] }
 0x3c2   : > { %4133 = vmatpush1.bf16.msra.mxu0 %v4132_v60  ;;  %v4172_v60 = vpack.c.bf16 %v2644_v38, %v2642_v34  ;;  %v4206_v34 = vpack.c.bf16 %v2681_v48, %v2679_v50  ;;  %v2678_v38 = vld [vmem:[#allocation11 + $0x500] sm:$0xff] }
 0x3c3   : > { %4135 = vmatprep.subr.bf16.mxu0 %v4134_v2  ;;  %v2647_v2 = vld [vmem:[#allocation11 + $0x408] sm:$0xff] }
 0x3c4   : > { %v4174_v40 = vpack.c.bf16 %v2649_v58, %v2647_v2  ;;  %v2683_v2 = vld [vmem:[#allocation11 + $0x528] sm:$0xff]  ;;  %v2685_v58 = vld [vmem:[#allocation11 + $0x538] sm:$0xff] }
 0x3c6   : > { %4137 = vmatpush1.bf16.msra.mxu0 %v4136_v22  ;;  %v2646_v22 = vld [vmem:[#allocation11 + $0x400] sm:$0xff] }
 0x3c7   : > { %4139 = vmatprep.subr.bf16.mxu0 %v4138_v61  ;;  %v2648_v61 = vld [vmem:[#allocation11 + $0x410] sm:$0xff] }
 0x3c8   : > { %v4176_v59 = vpack.c.bf16 %v2648_v61, %v2646_v22  ;;  %v2684_v22 = vld [vmem:[#allocation11 + $0x530] sm:$0xff]  ;;  %v2687_v61 = vld [vmem:[#allocation11 + $0x548] sm:$0xff] }
 0x3ca   : > { %4141 = vmatpush1.bf16.msra.mxu0 %v4140_v0 }
 0x3cb   : > { %4143 = vmatprep.subr.bf16.mxu0 %v4142_v1  ;;  %v4178_v1 = vpack.c.bf16 %v2653_v30, %v2651_v32  ;;  %v2689_v32 = vld [vmem:[#allocation11 + $0x558] sm:$0xff] }
 0x3ce   : > { %4145 = vmatpush1.bf16.msra.mxu0 %v4144_v49  ;;  %v4180_v49 = vpack.c.bf16 %v2652_v17, %v2650_v27  ;;  %v2693_v27 = vld [vmem:[#allocation11 + $0x578] sm:$0xff] }
 0x3cf   : > { %4147 = vmatprep.subr.bf16.mxu0 %v4146_v37 }
 0x3d2   : > { %4149 = vmatpush1.bf16.msra.mxu0 %v4148_v8  ;;  %v2659_v8 = vld [vmem:[#allocation11 + $0x468] sm:$0xff] }
 0x3d3   : > { %4151 = vmatprep.subr.bf16.mxu0 %v4150_v31  ;;  %v2661_v31 = vld [vmem:[#allocation11 + $0x478] sm:$0xff] }
 0x3d4   : > { %v4186_v19 = vpack.c.bf16 %v2661_v31, %v2659_v8  ;;  %v2694_v8 = vld [vmem:[#allocation11 + $0x580] sm:$0xff]  ;;  %v2696_v31 = vld [vmem:[#allocation11 + $0x590] sm:$0xff] }
 0x3d6   : > { %4153 = vmatpush1.bf16.msra.mxu0 %v4152_v24  ;;  %v2660_v24 = vld [vmem:[#allocation11 + $0x470] sm:$0xff] }
 0x3d7   : > { %4155 = vmatprep.subr.bf16.mxu0 %v4154_v46  ;;  %v4188_v21 = vpack.c.bf16 %v2660_v24, %v2658_v57  ;;  %v4224_v57 = vpack.c.bf16 %v2696_v31, %v2694_v8  ;;  %v2734_v8 = vld [vmem:[#allocation11 + $0x6c0] sm:$0xff]  ;;  %v2736_v31 = vld [vmem:[#allocation11 + $0x6d0] sm:$0xff] }
 0x3da   : > { %4157 = vmatpush1.bf16.msra.mxu0 %v4156_v10  ;;  %v2662_v10 = vld [vmem:[#allocation11 + $0x480] sm:$0xff] }
 0x3db   : > { %4159 = vmatprep.subr.bf16.mxu0 %v4158_v56  ;;  %v2664_v56 = vld [vmem:[#allocation11 + $0x490] sm:$0xff] }
 0x3dc   : > { %v4192_v15 = vpack.c.bf16 %v2664_v56, %v2662_v10  ;;  %v4228_v10 = vpack.c.bf16 %v2700_v47, %v2698_v5  ;;  %v3211_v5 = vld [vmem:[#allocation14 + $0x20] sm:$0xff] }
 0x3dd   : > { %v3207_v47 = vld [vmem:[#allocation14] sm:$0xff] }
 0x3de   : > { %4161 = vmatpush1.bf16.msra.mxu0 %v4160_v20  ;;  %v2666_v20 = vld [vmem:[#allocation11 + $0x4a0] sm:$0xff] }
 0x3df   : > { %4163 = vmatprep.subr.bf16.mxu0 %v4162_v53  ;;  %v2668_v53 = vld [vmem:[#allocation11 + $0x4b0] sm:$0xff] }
 0x3e0   : > { %v4196_v62 = vpack.c.bf16 %v2668_v53, %v2666_v20  ;;  %v4232_v20 = vpack.c.bf16 %v2704_v45, %v2702_v26  ;;  %v3217_v26 = vld [vmem:[#allocation14 + $0x50] sm:$0xff] }
 0x3e2   : > { %4165 = vmatpush1.bf16.msra.mxu0 %v4164_v11  ;;  %v2670_v11 = vld [vmem:[#allocation11 + $0x4c0] sm:$0xff] }
 0x3e3   : > { %4167 = vmatprep.subr.bf16.mxu0 %v4166_v52  ;;  %v2672_v52 = vld [vmem:[#allocation11 + $0x4d0] sm:$0xff] }
 0x3e6   : > { %4169 = vmatpush1.bf16.msra.mxu0 %v4168_v7  ;;  %v4200_v7 = vpack.c.bf16 %v2672_v52, %v2670_v11  ;;  %v4236_v11 = vpack.c.bf16 %v2708_v43, %v2706_v41  ;;  %v3223_v41 = vld [vmem:[#allocation14 + $0x80] sm:$0xff]  ;;  %v4264_v43 = vpack.c.bf16 %v2736_v31, %v2734_v8 }
 0x3e7   : > { %4171 = vmatprep.subr.bf16.mxu0 %v4170_v14  ;;  %v4204_v14 = vpack.c.bf16 %v2676_v39, %v2674_v33  ;;  %v2717_v33 = vld [vmem:[#allocation11 + $0x638] sm:$0xff]  ;;  %v4240_v39 = vpack.c.bf16 %v2712_v42, %v2710_v35  ;;  %v2743_v35 = vld [vmem:[#allocation11 + $0x708] sm:$0xff] }
 0x3ea   : > { %4173 = vmatpush1.bf16.msra.mxu0 %v4172_v60  ;;  %v2680_v60 = vld [vmem:[#allocation11 + $0x510] sm:$0xff] }
 0x3eb   : > { %4175 = vmatprep.subr.bf16.mxu0 %v4174_v40  ;;  %v4208_v40 = vpack.c.bf16 %v2680_v60, %v2678_v38  ;;  %v2719_v38 = vld [vmem:[#allocation11 + $0x648] sm:$0xff]  ;;  %v2721_v60 = vld [vmem:[#allocation11 + $0x658] sm:$0xff] }
 0x480   : > { %v2489_v44 = vpop.f32.mrb[18].mxu0 }
 0x481   : > { %v2491_v23 = vpop.f32.mrb[19].mxu0 }
 0x482   : > { %2914 = vmatprep.mubr.f32.mxu1 %v2491_v23  ;;  %v2682_v23 = vld [vmem:[#allocation11 + $0x520] sm:$0xff] }
 0x483   : > { %2915 = vmatmul.mubr.f32.vlgmr.msra.gmra.mrb[52].mxu1 %v2489_v44  ;;  %v4210_v44 = vpack.c.bf16 %v2685_v58, %v2683_v2  ;;  %v4212_v30 = vpack.c.bf16 %v2684_v22, %v2682_v23  ;;  %v4246_v58 = vpack.c.bf16 %v2721_v60, %v2719_v38  ;;  %v2723_v23 = vld [vmem:[#allocation11 + $0x668] sm:$0xff]  ;;  %v2725_v22 = vld [vmem:[#allocation11 + $0x678] sm:$0xff]  ;;  %v2742_v38 = vld [vmem:[#allocation11 + $0x700] sm:$0xff] }
 0x484   : > { %v2495_v9 = vpop.f32.mrb[20].mxu0  ;;  %v2744_v60 = vld [vmem:[#allocation11 + $0x710] sm:$0xff] }
 0x485   : > { %v2497_v0 = vpop.f32.mrb[21].mxu0 }
 0x486   : > { %2985 = vmatprep.mubr.f32.mxu0 %v2497_v0  ;;  %v2688_v0 = vld [vmem:[#allocation11 + $0x550] sm:$0xff] }
 0x487   : > { %2986 = vmatmul.mubr.f32.vlgmr.msra.gmra.mrb[28].mxu0 %v2495_v9  ;;  %v4214_v9 = vpack.c.bf16 %v2689_v32, %v2687_v61  ;;  %v4250_v32 = vpack.c.bf16 %v2725_v22, %v2723_v23  ;;  %v3225_v23 = vld [vmem:[#allocation14 + $0x90] sm:$0xff]  ;;  %v3228_v22 = vld [vmem:[#allocation14 + $0xa8] sm:$0xff] }
 0x488   : > { %4177 = vmatpush1.bf16.msra.mxu0 %v4176_v59  ;;  %v6369_v37 = vpop.f32.mrb[22].mxu0  ;;  %v2686_v59 = vld [vmem:[#allocation11 + $0x540] sm:$0xff] }
 0x489   : > { %4179 = vmatprep.subr.bf16.mxu0 %v4178_v1  ;;  %v2503_v16 = vpop.f32.mrb[23].mxu0  ;;  %v2691_v1 = vld [vmem:[#allocation11 + $0x568] sm:$0xff]  ;;  %v4216_v17 = vpack.c.bf16 %v2688_v0, %v2686_v59  ;;  %v2729_v0 = vld [vmem:[#allocation11 + $0x698] sm:$0xff] }
 0x48a   : > { %3056 = vmatprep.mubr.f32.mxu0 %v2503_v16  ;;  %v4218_v29 = vpack.c.bf16 %v2693_v27, %v2691_v1  ;;  %v2727_v59 = vld [vmem:[#allocation11 + $0x688] sm:$0xff]  ;;  %v2726_v27 = vld [vmem:[#allocation11 + $0x680] sm:$0xff] }
 0x48b   : > { %v4254_v1 = vpack.c.bf16 %v2729_v0, %v2727_v59  ;;  %v2746_v59 = vld [vmem:[#allocation11 + $0x720] sm:$0xff]  ;;  %v2748_v0 = vld [vmem:[#allocation11 + $0x730] sm:$0xff] }
 0x48c   : > { %4181 = vmatpush1.bf16.msra.mxu0 %v4180_v49  ;;  %v6371_v36 = vpop.f32.mrb[24].mxu0  ;;  %v2692_v49 = vld [vmem:[#allocation11 + $0x570] sm:$0xff] }
 0x48d   : > { %4183 = vmatprep.subr.bf16.mxu0 %v4182_v4  ;;  %v6373_v46 = vpop.f32.mrb[25].mxu0  ;;  %v2695_v4 = vld [vmem:[#allocation11 + $0x588] sm:$0xff]  ;;  %v4220_v28 = vpack.c.bf16 %v2692_v49, %v2690_v6 }
 0x48e   : > { %v4222_v16 = vpack.c.bf16 %v2697_v12, %v2695_v4  ;;  %v2730_v4 = vld [vmem:[#allocation11 + $0x6a0] sm:$0xff]  ;;  %v2732_v12 = vld [vmem:[#allocation11 + $0x6b0] sm:$0xff] }
 0x490   : > { %4185 = vmatpush1.bf16.msra.mxu0 %v4184_v13  ;;  %v2699_v13 = vld [vmem:[#allocation11 + $0x5a8] sm:$0xff] }
 0x491   : > { %4187 = vmatprep.subr.bf16.mxu0 %v4186_v19  ;;  %v2701_v19 = vld [vmem:[#allocation11 + $0x5b8] sm:$0xff] }
 0x492   : > { %v4226_v24 = vpack.c.bf16 %v2701_v19, %v2699_v13  ;;  %v4260_v13 = vpack.c.bf16 %v2732_v12, %v2730_v4  ;;  %v2739_v19 = vld [vmem:[#allocation11 + $0x6e8] sm:$0xff]  ;;  %v3241_v4 = vld [vmem:[#allocation14 + $0x110] sm:$0xff]  ;;  %v4276_v12 = vpack.c.bf16 %v2748_v0, %v2746_v59 }
 0x493   : > { %v3265_v59 = vld [vmem:[#allocation14 + $0x1d0] sm:$0xff] }
 0x494   : > { %4189 = vmatpush1.bf16.msra.mxu0 %v4188_v21  ;;  %v2703_v21 = vld [vmem:[#allocation11 + $0x5c8] sm:$0xff] }
 0x495   : > { %4191 = vmatprep.subr.bf16.mxu0 %v4190_v54  ;;  %v2705_v54 = vld [vmem:[#allocation11 + $0x5d8] sm:$0xff] }
 0x496   : > { %v4230_v56 = vpack.c.bf16 %v2705_v54, %v2703_v21 }
 0x498   : > { %4193 = vmatpush1.bf16.msra.mxu0 %v4192_v15  ;;  %v2707_v15 = vld [vmem:[#allocation11 + $0x5e8] sm:$0xff] }
 0x499   : > { %4195 = vmatprep.subr.bf16.mxu0 %v4194_v3  ;;  %v2709_v3 = vld [vmem:[#allocation11 + $0x5f8] sm:$0xff] }
 0x49a   : > { %v4234_v53 = vpack.c.bf16 %v2709_v3, %v2707_v15  ;;  %v3213_v3 = vld [vmem:[#allocation14 + $0x30] sm:$0xff] }
 0x49c   : > { %4197 = vmatpush1.bf16.msra.mxu0 %v4196_v62  ;;  %v2711_v62 = vld [vmem:[#allocation11 + $0x608] sm:$0xff] }
 0x49d   : > { %4199 = vmatprep.subr.bf16.mxu0 %v4198_v25  ;;  %v2713_v25 = vld [vmem:[#allocation11 + $0x618] sm:$0xff] }
 0x49e   : > { %v4238_v52 = vpack.c.bf16 %v2713_v25, %v2711_v62  ;;  %v2738_v62 = vld [vmem:[#allocation11 + $0x6e0] sm:$0xff]  ;;  %v2740_v25 = vld [vmem:[#allocation11 + $0x6f0] sm:$0xff] }
 0x4a0   : > { %4201 = vmatpush1.bf16.msra.mxu0 %v4200_v7  ;;  %v6375_v7 = vpop.f32.mrb[26].mxu0 }
 0x4a1   : > { %4203 = vmatprep.subr.bf16.mxu0 %v4202_v18  ;;  %v2715_v18 = vld [vmem:[#allocation11 + $0x628] sm:$0xff]  ;;  %v6377_v50 = vpop.f32.mrb[27].mxu0 }
 0x4a2   : > { %v4242_v48 = vpack.c.bf16 %v2717_v33, %v2715_v18  ;;  %v3219_v18 = vld [vmem:[#allocation14 + $0x60] sm:$0xff]  ;;  %v3222_v33 = vld [vmem:[#allocation14 + $0x78] sm:$0xff] }
 0x4a4   : > { %4205 = vmatpush1.bf16.msra.mxu0 %v4204_v14  ;;  %v2714_v14 = vld [vmem:[#allocation11 + $0x620] sm:$0xff] }
 0x4a5   : > { %4207 = vmatprep.subr.bf16.mxu0 %v4206_v34  ;;  %v2716_v34 = vld [vmem:[#allocation11 + $0x630] sm:$0xff] }
 0x4a6   : > { %v4244_v2 = vpack.c.bf16 %v2716_v34, %v2714_v14  ;;  %v3229_v14 = vld [vmem:[#allocation14 + $0xb0] sm:$0xff]  ;;  %v4268_v34 = vpack.c.bf16 %v2740_v25, %v2738_v62 }
 0x4a7   : > { %v3253_v62 = vld [vmem:[#allocation14 + $0x170] sm:$0xff] }
 0x4a8   : > { %4209 = vmatpush1.bf16.msra.mxu0 %v4208_v40  ;;  %v2718_v40 = vld [vmem:[#allocation11 + $0x640] sm:$0xff] }
 0x4a9   : > { %4211 = vmatprep.subr.bf16.mxu0 %v4210_v44  ;;  %v2720_v44 = vld [vmem:[#allocation11 + $0x650] sm:$0xff] }
 0x4aa   : > { %v4248_v61 = vpack.c.bf16 %v2720_v44, %v2718_v40  ;;  %v2747_v40 = vld [vmem:[#allocation11 + $0x728] sm:$0xff] }
 0x4ac   : > { %4213 = vmatpush1.bf16.msra.mxu0 %v4212_v30  ;;  %v2722_v30 = vld [vmem:[#allocation11 + $0x660] sm:$0xff] }
 0x4ad   : > { %4215 = vmatprep.subr.bf16.mxu0 %v4214_v9  ;;  %v2724_v9 = vld [vmem:[#allocation11 + $0x670] sm:$0xff] }
 0x4b0   : > { %4217 = vmatpush1.bf16.msra.mxu0 %v4216_v17  ;;  %v2731_v17 = vld [vmem:[#allocation11 + $0x6a8] sm:$0xff] }
 0x4b1   : > { %4219 = vmatprep.subr.bf16.mxu0 %v4218_v29  ;;  %v2733_v29 = vld [vmem:[#allocation11 + $0x6b8] sm:$0xff] }
 0x4b2   : > { %v4258_v49 = vpack.c.bf16 %v2733_v29, %v2731_v17  ;;  %v3231_v17 = vld [vmem:[#allocation14 + $0xc0] sm:$0xff]  ;;  %v3234_v29 = vld [vmem:[#allocation14 + $0xd8] sm:$0xff] }
 0x4b3   : > { %v4384_v8 = vpack.c.bf16 %v3234_v29, %v3231_v17  ;;  %v2771_v17 = vld [vmem:[#allocation11 + $0x7e8] sm:$0xff] }
 0x4b4   : > { %4221 = vmatpush1.bf16.msra.mxu0 %v4220_v28  ;;  %v2735_v28 = vld [vmem:[#allocation11 + $0x6c8] sm:$0xff] }
 0x4b5   : > { %4223 = vmatprep.subr.bf16.mxu0 %v4222_v16  ;;  %v2737_v16 = vld [vmem:[#allocation11 + $0x6d8] sm:$0xff] }
 0x4b6   : > { %v4262_v21 = vpack.c.bf16 %v2737_v16, %v2735_v28  ;;  %v2750_v28 = vld [vmem:[#allocation11 + $0x740] sm:$0xff]  ;;  %v2752_v16 = vld [vmem:[#allocation11 + $0x750] sm:$0xff] }
 0x4b8   : > { %4225 = vmatpush1.bf16.msra.mxu0 %v4224_v57  ;;  %v2741_v57 = vld [vmem:[#allocation11 + $0x6f8] sm:$0xff] }
 0x4b9   : > { %4227 = vmatprep.subr.bf16.mxu0 %v4226_v24  ;;  %v3208_v24 = vld [vmem:[#allocation14 + $0x8] sm:$0xff] }
 0x4ba   : > { %v4366_v54 = vpack.c.bf16 %v3211_v5, %v3208_v24  ;;  %v3240_v24 = vld [vmem:[#allocation14 + $0x108] sm:$0xff]  ;;  %v2757_v5 = vld [vmem:[#allocation11 + $0x778] sm:$0xff] }
 0x4bc   : > { %4229 = vmatpush1.bf16.msra.mxu0 %v4228_v10  ;;  %v3210_v10 = vld [vmem:[#allocation14 + $0x18] sm:$0xff]  ;;  %4367 = vmatprep.subr.bf16.mxu1 %v4366_v54  ;;  %v4280_v54 = vpack.c.bf16 %v2752_v16, %v2750_v28  ;;  %v3271_v28 = vld [vmem:[#allocation14 + $0x200] sm:$0xff] }
 0x4bd   : > { %4231 = vmatprep.subr.bf16.mxu0 %v4230_v56  ;;  %v3214_v56 = vld [vmem:[#allocation14 + $0x38] sm:$0xff]  ;;  %v4368_v45 = vpack.c.bf16 %v3210_v10, %v3207_v47  ;;  %v3244_v47 = vld [vmem:[#allocation14 + $0x128] sm:$0xff] }
 0x4be   : > { %v4370_v15 = vpack.c.bf16 %v3217_v26, %v3214_v56  ;;  %v2754_v10 = vld [vmem:[#allocation11 + $0x760] sm:$0xff]  ;;  %v2756_v56 = vld [vmem:[#allocation11 + $0x770] sm:$0xff] }
 0x4bf   : > { %4369 = vmatpush1.bf16.msra.mxu1 %v4368_v45  ;;  %v4284_v25 = vpack.c.bf16 %v2756_v56, %v2754_v10  ;;  %v3277_v10 = vld [vmem:[#allocation14 + $0x230] sm:$0xff] }
 0x4c0   : > { %4233 = vmatpush1.bf16.msra.mxu0 %v4232_v20  ;;  %v3216_v20 = vld [vmem:[#allocation14 + $0x48] sm:$0xff]  ;;  %4371 = vmatprep.subr.bf16.mxu1 %v4370_v15 }
 0x4c1   : > { %4235 = vmatprep.subr.bf16.mxu0 %v4234_v53  ;;  %v3220_v53 = vld [vmem:[#allocation14 + $0x68] sm:$0xff] }
 0x4c2   : > { %v4374_v42 = vpack.c.bf16 %v3223_v41, %v3220_v53  ;;  %v2759_v15 = vld [vmem:[#allocation11 + $0x788] sm:$0xff]  ;;  %v3246_v53 = vld [vmem:[#allocation14 + $0x138] sm:$0xff] }
 0x4c3   : > { %v2761_v41 = vld [vmem:[#allocation11 + $0x798] sm:$0xff] }
 0x4c4   : > { %4237 = vmatpush1.bf16.msra.mxu0 %v4236_v11  ;;  %v4372_v11 = vpack.c.bf16 %v3216_v20, %v3213_v3  ;;  %v3243_v20 = vld [vmem:[#allocation14 + $0x120] sm:$0xff] }
 0x4c5   : > { %4239 = vmatprep.subr.bf16.mxu0 %v4238_v52  ;;  %v4266_v52 = vpack.c.bf16 %v2741_v57, %v2739_v19  ;;  %v3237_v57 = vld [vmem:[#allocation14 + $0xf0] sm:$0xff] }
 0x4c6   : > { %4373 = vmatpush1.bf16.msra.mxu1 %v4372_v11  ;;  %v4388_v26 = vpack.c.bf16 %v3240_v24, %v3237_v57  ;;  %v2758_v11 = vld [vmem:[#allocation11 + $0x780] sm:$0xff]  ;;  %v2775_v57 = vld [vmem:[#allocation11 + $0x808] sm:$0xff] }
 0x4c7   : > { %3057 = vmatmul.mubr.f32.vlgmr.msra.gmra.mrb[28].mxu0 %v6369_v37  ;;  %v4252_v37 = vpack.c.bf16 %v2724_v9, %v2722_v30  ;;  %4375 = vmatprep.subr.bf16.mxu1 %v4374_v42  ;;  %v3235_v30 = vld [vmem:[#allocation14 + $0xe0] sm:$0xff]  ;;  %v4272_v9 = vpack.c.bf16 %v2744_v60, %v2742_v38  ;;  %v4286_v42 = vpack.c.bf16 %v2761_v41, %v2759_v15  ;;  %v2781_v41 = vld [vmem:[#allocation11 + $0x838] sm:$0xff] }
 0x4c8   : > { %4241 = vmatpush1.bf16.msra.mxu0 %v4240_v39  ;;  %3127 = vmatprep.mubr.f32.mxu0 %v6373_v46  ;;  %v2728_v46 = vld [vmem:[#allocation11 + $0x690] sm:$0xff]  ;;  %v2745_v39 = vld [vmem:[#allocation11 + $0x718] sm:$0xff]  ;;  %v3259_v38 = vld [vmem:[#allocation14 + $0x1a0] sm:$0xff] }
 0x4c9   : > { %4243 = vmatprep.subr.bf16.mxu0 %v4242_v48  ;;  %v4256_v6 = vpack.c.bf16 %v2728_v46, %v2726_v27  ;;  %v3226_v48 = vld [vmem:[#allocation14 + $0x98] sm:$0xff]  ;;  %v2751_v27 = vld [vmem:[#allocation11 + $0x748] sm:$0xff] }
 0x4ca   : > { %v4378_v44 = vpack.c.bf16 %v3229_v14, %v3226_v48  ;;  %v3252_v48 = vld [vmem:[#allocation14 + $0x168] sm:$0xff]  ;;  %v2765_v14 = vld [vmem:[#allocation11 + $0x7b8] sm:$0xff]  ;;  %v2774_v15 = vld [vmem:[#allocation11 + $0x800] sm:$0xff] }
 0x4cc   : > { %4245 = vmatpush1.bf16.msra.mxu0 %v4244_v2  ;;  %v4376_v2 = vpack.c.bf16 %v3222_v33, %v3219_v18  ;;  %v2763_v18 = vld [vmem:[#allocation11 + $0x7a8] sm:$0xff] }
 0x4cd   : > { %4247 = vmatprep.subr.bf16.mxu0 %v4246_v58  ;;  %v4270_v58 = vpack.c.bf16 %v2745_v39, %v2743_v35  ;;  %v4392_v35 = vpack.c.bf16 %v3246_v53, %v3243_v20  ;;  %v3249_v39 = vld [vmem:[#allocation14 + $0x150] sm:$0xff]  ;;  %v2779_v20 = vld [vmem:[#allocation11 + $0x828] sm:$0xff] }
 0x4ce   : > { %4377 = vmatpush1.bf16.msra.mxu1 %v4376_v2  ;;  %v2762_v2 = vld [vmem:[#allocation11 + $0x7a0] sm:$0xff] }
 0x4cf   : > { %4379 = vmatprep.subr.bf16.mxu1 %v4378_v44  ;;  %v4290_v44 = vpack.c.bf16 %v2765_v14, %v2763_v18  ;;  %v2780_v18 = vld [vmem:[#allocation11 + $0x830] sm:$0xff] }
 0x4d0   : > { %4249 = vmatpush1.bf16.msra.mxu0 %v4248_v61  ;;  %v2749_v61 = vld [vmem:[#allocation11 + $0x738] sm:$0xff] }
 0x4d1   : > { %4251 = vmatprep.subr.bf16.mxu0 %v4250_v32  ;;  %v3232_v32 = vld [vmem:[#allocation14 + $0xc8] sm:$0xff] }
 0x4d2   : > { %v4382_v46 = vpack.c.bf16 %v3235_v30, %v3232_v32  ;;  %v3258_v32 = vld [vmem:[#allocation14 + $0x198] sm:$0xff] }
 0x4d3   : > { %v2769_v30 = vld [vmem:[#allocation11 + $0x7d8] sm:$0xff] }
 0x4d4   : > { %4253 = vmatpush1.bf16.msra.mxu0 %v4252_v37  ;;  %v4380_v37 = vpack.c.bf16 %v3228_v22, %v3225_v23  ;;  %v2767_v23 = vld [vmem:[#allocation11 + $0x7c8] sm:$0xff] }
 0x4d5   : > { %4255 = vmatprep.subr.bf16.mxu0 %v4254_v1  ;;  %v4274_v1 = vpack.c.bf16 %v2749_v61, %v2747_v40  ;;  %v4396_v40 = vpack.c.bf16 %v3252_v48, %v3249_v39  ;;  %v3255_v61 = vld [vmem:[#allocation14 + $0x180] sm:$0xff]  ;;  %v2785_v48 = vld [vmem:[#allocation11 + $0x858] sm:$0xff] }
 0x4d6   : > { %4381 = vmatpush1.bf16.msra.mxu1 %v4380_v37  ;;  %v2766_v37 = vld [vmem:[#allocation11 + $0x7c0] sm:$0xff] }
 0x4d7   : > { %4383 = vmatprep.subr.bf16.mxu1 %v4382_v46  ;;  %v4294_v46 = vpack.c.bf16 %v2769_v30, %v2767_v23  ;;  %v2784_v23 = vld [vmem:[#allocation11 + $0x850] sm:$0xff] }
 0x4d8   : > { %4257 = vmatpush1.bf16.msra.mxu0 %v4256_v6  ;;  %v2753_v6 = vld [vmem:[#allocation11 + $0x758] sm:$0xff] }
 0x4d9   : > { %4259 = vmatprep.subr.bf16.mxu0 %v4258_v49  ;;  %v3238_v49 = vld [vmem:[#allocation14 + $0xf8] sm:$0xff]  ;;  %v4278_v31 = vpack.c.bf16 %v2753_v6, %v2751_v27  ;;  %v4400_v27 = vpack.c.bf16 %v3258_v32, %v3255_v61  ;;  %v3261_v6 = vld [vmem:[#allocation14 + $0x1b0] sm:$0xff] }
 0x4da   : > { %v4386_v19 = vpack.c.bf16 %v3241_v4, %v3238_v49  ;;  %4385 = vmatpush1.bf16.msra.mxu1 %v4384_v8  ;;  %v3264_v49 = vld [vmem:[#allocation14 + $0x1c8] sm:$0xff]  ;;  %v2773_v4 = vld [vmem:[#allocation11 + $0x7f8] sm:$0xff]  ;;  %v2770_v8 = vld [vmem:[#allocation11 + $0x7e0] sm:$0xff] }
 0x4db   : > { %v2789_v32 = vld [vmem:[#allocation11 + $0x878] sm:$0xff] }
 0x4dc   : > { %4261 = vmatpush1.bf16.msra.mxu0 %v4260_v13  ;;  %v2755_v13 = vld [vmem:[#allocation11 + $0x768] sm:$0xff]  ;;  %4387 = vmatprep.subr.bf16.mxu1 %v4386_v19  ;;  %v4298_v19 = vpack.c.bf16 %v2773_v4, %v2771_v17  ;;  %v3294_v4 = vld [vmem:[#allocation14 + $0x2b8] sm:$0xff] }
 0x4dd   : > { %4263 = vmatprep.subr.bf16.mxu0 %v4262_v21  ;;  %v3247_v21 = vld [vmem:[#allocation14 + $0x140] sm:$0xff]  ;;  %v4282_v45 = vpack.c.bf16 %v2757_v5, %v2755_v13  ;;  %v4404_v13 = vpack.c.bf16 %v3264_v49, %v3261_v6 }
 0x4de   : > { %v4390_v3 = vpack.c.bf16 %v3247_v21, %v3244_v47  ;;  %4389 = vmatpush1.bf16.msra.mxu1 %v4388_v26  ;;  %v3267_v5 = vld [vmem:[#allocation14 + $0x1e0] sm:$0xff]  ;;  %v3270_v47 = vld [vmem:[#allocation14 + $0x1f8] sm:$0xff] }
 0x4df   : > { %v2777_v21 = vld [vmem:[#allocation11 + $0x818] sm:$0xff]  ;;  %v4408_v26 = vpack.c.bf16 %v3270_v47, %v3267_v5  ;;  %v3291_v49 = vld [vmem:[#allocation14 + $0x2a0] sm:$0xff]  ;;  %v2796_v47 = vld [vmem:[#allocation11 + $0x8b0] sm:$0xff] }
 0x4e0   : > { %4265 = vmatpush1.bf16.msra.mxu0 %v4264_v43  ;;  %v3250_v43 = vld [vmem:[#allocation14 + $0x158] sm:$0xff]  ;;  %4391 = vmatprep.subr.bf16.mxu1 %v4390_v3  ;;  %v2776_v3 = vld [vmem:[#allocation11 + $0x810] sm:$0xff] }
 0x4e1   : > { %4267 = vmatprep.subr.bf16.mxu0 %v4266_v52  ;;  %v2760_v52 = vld [vmem:[#allocation11 + $0x790] sm:$0xff]  ;;  %v4394_v33 = vpack.c.bf16 %v3253_v62, %v3250_v43  ;;  %v2794_v5 = vld [vmem:[#allocation11 + $0x8a0] sm:$0xff] }
 0x4e2   : > { %v4288_v60 = vpack.c.bf16 %v2760_v52, %v2758_v11  ;;  %4393 = vmatpush1.bf16.msra.mxu1 %v4392_v35  ;;  %v3273_v43 = vld [vmem:[#allocation14 + $0x210] sm:$0xff]  ;;  %v3276_v62 = vld [vmem:[#allocation14 + $0x228] sm:$0xff]  ;;  %v3283_v11 = vld [vmem:[#allocation14 + $0x260] sm:$0xff]  ;;  %v4304_v52 = vpack.c.bf16 %v2776_v3, %v2774_v15  ;;  %v4306_v35 = vpack.c.bf16 %v2781_v41, %v2779_v20 }
 0x4e3   : > { %4395 = vmatprep.subr.bf16.mxu1 %v4394_v33  ;;  %v2783_v33 = vld [vmem:[#allocation11 + $0x848] sm:$0xff]  ;;  %v4412_v39 = vpack.c.bf16 %v3276_v62, %v3273_v43  ;;  %v2805_v3 = vld [vmem:[#allocation11 + $0x8f8] sm:$0xff]  ;;  %v2802_v41 = vld [vmem:[#allocation11 + $0x8e0] sm:$0xff] }
 0x4e4   : > { %4269 = vmatpush1.bf16.msra.mxu0 %v4268_v34  ;;  %v3256_v34 = vld [vmem:[#allocation14 + $0x188] sm:$0xff] }
 0x4e5   : > { %4271 = vmatprep.subr.bf16.mxu0 %v4270_v58  ;;  %v2764_v58 = vld [vmem:[#allocation11 + $0x7b0] sm:$0xff]  ;;  %v4398_v22 = vpack.c.bf16 %v3259_v38, %v3256_v34  ;;  %v3279_v34 = vld [vmem:[#allocation14 + $0x240] sm:$0xff]  ;;  %v3282_v38 = vld [vmem:[#allocation14 + $0x258] sm:$0xff] }
 0x4e6   : > { %v4292_v0 = vpack.c.bf16 %v2764_v58, %v2762_v2  ;;  %4397 = vmatpush1.bf16.msra.mxu1 %v4396_v40  ;;  %v3289_v2 = vld [vmem:[#allocation14 + $0x290] sm:$0xff]  ;;  %v4310_v40 = vpack.c.bf16 %v2785_v48, %v2783_v33  ;;  %v4416_v61 = vpack.c.bf16 %v3282_v38, %v3279_v34  ;;  %v2803_v15 = vld [vmem:[#allocation11 + $0x8e8] sm:$0xff] }
 0x4e7   : > { %4399 = vmatprep.subr.bf16.mxu1 %v4398_v22  ;;  %v2787_v22 = vld [vmem:[#allocation11 + $0x868] sm:$0xff]  ;;  %v2804_v43 = vld [vmem:[#allocation11 + $0x8f0] sm:$0xff]  ;;  %v2813_v33 = vld [vmem:[#allocation11 + $0x938] sm:$0xff] }
 0x4e8   : > { %4273 = vmatpush1.bf16.msra.mxu0 %v4272_v9  ;;  %v3262_v9 = vld [vmem:[#allocation14 + $0x1b8] sm:$0xff]  ;;  %v2807_v62 = vld [vmem:[#allocation11 + $0x908] sm:$0xff]  ;;  %v2812_v34 = vld [vmem:[#allocation11 + $0x930] sm:$0xff] }
 0x4e9   : > { %4275 = vmatprep.subr.bf16.mxu0 %v4274_v1  ;;  %v2768_v1 = vld [vmem:[#allocation11 + $0x7d0] sm:$0xff]  ;;  %v4402_v29 = vpack.c.bf16 %v3265_v59, %v3262_v9  ;;  %v2815_v38 = vld [vmem:[#allocation11 + $0x948] sm:$0xff] }
 0x4ea   : > { %v4296_v16 = vpack.c.bf16 %v2768_v1, %v2766_v37  ;;  %4401 = vmatpush1.bf16.msra.mxu1 %v4400_v27  ;;  %v3285_v9 = vld [vmem:[#allocation14 + $0x270] sm:$0xff]  ;;  %v3288_v59 = vld [vmem:[#allocation14 + $0x288] sm:$0xff]  ;;  %v4314_v1 = vpack.c.bf16 %v2789_v32, %v2787_v22  ;;  %v2786_v27 = vld [vmem:[#allocation11 + $0x860] sm:$0xff] }
 0x4eb   : > { %4403 = vmatprep.subr.bf16.mxu1 %v4402_v29  ;;  %v4420_v17 = vpack.c.bf16 %v3288_v59, %v3285_v9  ;;  %v2793_v29 = vld [vmem:[#allocation11 + $0x898] sm:$0xff]  ;;  %v2820_v9 = vld [vmem:[#allocation11 + $0x970] sm:$0xff]  ;;  %v2823_v59 = vld [vmem:[#allocation11 + $0x988] sm:$0xff] }
 0x4ec   : > { %4277 = vmatpush1.bf16.msra.mxu0 %v4276_v12  ;;  %v3268_v12 = vld [vmem:[#allocation14 + $0x1e8] sm:$0xff]  ;;  %v2821_v22 = vld [vmem:[#allocation11 + $0x978] sm:$0xff] }
 0x4ed   : > { %4279 = vmatprep.subr.bf16.mxu0 %v4278_v31  ;;  %v2772_v31 = vld [vmem:[#allocation11 + $0x7f0] sm:$0xff]  ;;  %v4406_v24 = vpack.c.bf16 %v3271_v28, %v3268_v12 }
 0x4ee   : > { %v4300_v56 = vpack.c.bf16 %v2772_v31, %v2770_v8  ;;  %4405 = vmatpush1.bf16.msra.mxu1 %v4404_v13  ;;  %v2792_v8 = vld [vmem:[#allocation11 + $0x890] sm:$0xff]  ;;  %v4424_v31 = vpack.c.bf16 %v3294_v4, %v3291_v49  ;;  %v2795_v13 = vld [vmem:[#allocation11 + $0x8a8] sm:$0xff] }
 0x4ef   : > { %4407 = vmatprep.subr.bf16.mxu1 %v4406_v24  ;;  %v2828_v49 = vld [vmem:[#allocation11 + $0x9b0] sm:$0xff]  ;;  %v2831_v4 = vld [vmem:[#allocation11 + $0x9c8] sm:$0xff] }
 0x4f0   : > { %4281 = vmatpush1.bf16.msra.mxu0 %v4280_v54  ;;  %v3274_v54 = vld [vmem:[#allocation14 + $0x218] sm:$0xff] }
 0x4f1   : > { %4283 = vmatprep.subr.bf16.mxu0 %v4282_v45  ;;  %v4302_v45 = vpack.c.bf16 %v2777_v21, %v2775_v57  ;;  %v4410_v53 = vpack.c.bf16 %v3277_v10, %v3274_v54  ;;  %v2799_v21 = vld [vmem:[#allocation11 + $0x8c8] sm:$0xff]  ;;  %v2801_v54 = vld [vmem:[#allocation11 + $0x8d8] sm:$0xff]  ;;  %v4324_v10 = vpack.c.bf16 %v2796_v47, %v2794_v5  ;;  %v2834_v5 = vld [vmem:[#allocation11 + $0x9e0] sm:$0xff] }
 0x4f2   : > { %4409 = vmatpush1.bf16.msra.mxu1 %v4408_v26  ;;  %v2798_v26 = vld [vmem:[#allocation11 + $0x8c0] sm:$0xff]  ;;  %v2836_v47 = vld [vmem:[#allocation11 + $0x9f0] sm:$0xff] }
 0x4f3   : > { %4411 = vmatprep.subr.bf16.mxu1 %v4410_v53  ;;  %v4330_v53 = vpack.c.bf16 %v2805_v3, %v2803_v15  ;;  %v3297_v15 = vld [vmem:[#allocation14 + $0x2d0] sm:$0xff]  ;;  %v3300_v3 = vld [vmem:[#allocation14 + $0x2e8] sm:$0xff] }
 0x4f4   : > { %4285 = vmatpush1.bf16.msra.mxu0 %v4284_v25  ;;  %v3280_v25 = vld [vmem:[#allocation14 + $0x248] sm:$0xff] }
 0x4f5   : > { %4287 = vmatprep.subr.bf16.mxu0 %v4286_v42  ;;  %v2778_v42 = vld [vmem:[#allocation11 + $0x820] sm:$0xff]  ;;  %v4414_v14 = vpack.c.bf16 %v3283_v11, %v3280_v25  ;;  %v2809_v25 = vld [vmem:[#allocation11 + $0x918] sm:$0xff]  ;;  %v4332_v11 = vpack.c.bf16 %v2804_v43, %v2802_v41  ;;  %v3260_v41 = vld [vmem:[#allocation14 + $0x1a8] sm:$0xff] }
 0x4f6   : > { %v4308_v58 = vpack.c.bf16 %v2780_v18, %v2778_v42  ;;  %4413 = vmatpush1.bf16.msra.mxu1 %v4412_v39  ;;  %v2808_v42 = vld [vmem:[#allocation11 + $0x910] sm:$0xff]  ;;  %v2811_v18 = vld [vmem:[#allocation11 + $0x928] sm:$0xff] }
 0x4f7   : > { %4415 = vmatprep.subr.bf16.mxu1 %v4414_v14  ;;  %v4338_v48 = vpack.c.bf16 %v2813_v33, %v2811_v18  ;;  %v2810_v14 = vld [vmem:[#allocation11 + $0x920] sm:$0xff]  ;;  %v3209_v33 = vld [vmem:[#allocation14 + $0x10] sm:$0xff] }
 0x4f8   : > { %4289 = vmatpush1.bf16.msra.mxu0 %v4288_v60  ;;  %v3286_v60 = vld [vmem:[#allocation14 + $0x278] sm:$0xff] }
 0x4f9   : > { %4291 = vmatprep.subr.bf16.mxu0 %v4290_v44  ;;  %v2782_v44 = vld [vmem:[#allocation11 + $0x840] sm:$0xff]  ;;  %v4418_v30 = vpack.c.bf16 %v3289_v2, %v3286_v60  ;;  %v2817_v60 = vld [vmem:[#allocation11 + $0x958] sm:$0xff]  ;;  %v4340_v2 = vpack.c.bf16 %v2812_v34, %v2810_v14 }
 0x4fa   : > { %v4312_v37 = vpack.c.bf16 %v2784_v23, %v2782_v44  ;;  %4417 = vmatpush1.bf16.msra.mxu1 %v4416_v61  ;;  %v2816_v44 = vld [vmem:[#allocation11 + $0x950] sm:$0xff]  ;;  %v2819_v23 = vld [vmem:[#allocation11 + $0x968] sm:$0xff]  ;;  %v3266_v34 = vld [vmem:[#allocation14 + $0x1d8] sm:$0xff] }
 0x4fb   : > { %4419 = vmatprep.subr.bf16.mxu1 %v4418_v30  ;;  %v4346_v32 = vpack.c.bf16 %v2821_v22, %v2819_v23  ;;  %v2818_v30 = vld [vmem:[#allocation11 + $0x960] sm:$0xff]  ;;  %v3269_v23 = vld [vmem:[#allocation14 + $0x1f0] sm:$0xff]  ;;  %v3272_v22 = vld [vmem:[#allocation14 + $0x208] sm:$0xff] }
 0x4fc   : > { %4293 = vmatpush1.bf16.msra.mxu0 %v4292_v0  ;;  %v3292_v0 = vld [vmem:[#allocation14 + $0x2a8] sm:$0xff]  ;;  %v3263_v14 = vld [vmem:[#allocation14 + $0x1c0] sm:$0xff] }
 0x4fd   : > { %4295 = vmatprep.subr.bf16.mxu0 %v4294_v46  ;;  %v2791_v46 = vld [vmem:[#allocation11 + $0x888] sm:$0xff] }
 0x4fe   : > { %v4318_v28 = vpack.c.bf16 %v2793_v29, %v2791_v46  ;;  %4421 = vmatpush1.bf16.msra.mxu1 %v4420_v17  ;;  %v2829_v46 = vld [vmem:[#allocation11 + $0x9b8] sm:$0xff] }
 0x500   : > { %4297 = vmatpush1.bf16.msra.mxu0 %v4296_v16  ;;  %v2790_v16 = vld [vmem:[#allocation11 + $0x880] sm:$0xff] }
 0x501   : > { %4299 = vmatprep.subr.bf16.mxu0 %v4298_v19  ;;  %v2797_v19 = vld [vmem:[#allocation11 + $0x8b8] sm:$0xff]  ;;  %v4320_v57 = vpack.c.bf16 %v2792_v8, %v2790_v16  ;;  %v2830_v8 = vld [vmem:[#allocation11 + $0x9c0] sm:$0xff] }
 0x502   : > { %v4322_v24 = vpack.c.bf16 %v2797_v19, %v2795_v13  ;;  %v2835_v13 = vld [vmem:[#allocation11 + $0x9e8] sm:$0xff]  ;;  %v2837_v19 = vld [vmem:[#allocation11 + $0x9f8] sm:$0xff] }
 0x504   : > { %4301 = vmatpush1.bf16.msra.mxu0 %v4300_v56  ;;  %v4326_v56 = vpack.c.bf16 %v2801_v54, %v2799_v21  ;;  %v4364_v21 = vpack.c.bf16 %v2836_v47, %v2834_v5  ;;  %v3245_v5 = vld [vmem:[#allocation14 + $0x130] sm:$0xff]  ;;  %v3248_v47 = vld [vmem:[#allocation14 + $0x148] sm:$0xff] }
 0x505   : > { %4303 = vmatprep.subr.bf16.mxu0 %v4302_v45  ;;  %v2800_v45 = vld [vmem:[#allocation11 + $0x8d0] sm:$0xff] }
 0x506   : > { %v4328_v20 = vpack.c.bf16 %v2800_v45, %v2798_v26  ;;  %v3301_v26 = vld [vmem:[#allocation14 + $0x2f0] sm:$0xff] }
 0x507   : > { %3128 = vmatmul.mubr.f32.vlgmr.msra.gmra.mrb[28].mxu0 %v6371_v36  ;;  %v3295_v36 = vld [vmem:[#allocation14 + $0x2c0] sm:$0xff] }
 0x508   : > { %4305 = vmatpush1.bf16.msra.mxu0 %v4304_v52  ;;  %3198 = vmatprep.mubr.f32.mxu0 %v6377_v50  ;;  %v2788_v50 = vld [vmem:[#allocation11 + $0x870] sm:$0xff]  ;;  %v4422_v6 = vpack.c.bf16 %v3295_v36, %v3292_v0  ;;  %v4334_v52 = vpack.c.bf16 %v2809_v25, %v2807_v62  ;;  %v2825_v0 = vld [vmem:[#allocation11 + $0x998] sm:$0xff]  ;;  %v4348_v36 = vpack.c.bf16 %v2820_v9, %v2818_v30  ;;  %v2838_v62 = vld [vmem:[#allocation13] sm:$0x3] }
 0x509   : > { %4307 = vmatprep.subr.bf16.mxu0 %v4306_v35  ;;  %v4316_v12 = vpack.c.bf16 %v2788_v50, %v2786_v27  ;;  %v2806_v35 = vld [vmem:[#allocation11 + $0x900] sm:$0xff]  ;;  %v2824_v27 = vld [vmem:[#allocation11 + $0x990] sm:$0xff]  ;;  %v2827_v50 = vld [vmem:[#allocation11 + $0x9a8] sm:$0xff]  ;;  %v2843_v25 = vrot.slane %v2838_v62, %v6318_v63 }
 0x50a   : > { %4423 = vmatprep.subr.bf16.mxu1 %v4422_v6  ;;  %v4336_v39 = vpack.c.bf16 %v2808_v42, %v2806_v35  ;;  %v4354_v29 = vpack.c.bf16 %v2829_v46, %v2827_v50  ;;  %v2826_v6 = vld [vmem:[#allocation11 + $0x9a0] sm:$0xff]  ;;  %v3221_v30 = vld [vmem:[#allocation14 + $0x70] sm:$0xff]  ;;  %v3224_v9 = vld [vmem:[#allocation14 + $0x88] sm:$0xff] }
 0x50b   : > { %4425 = vmatpush1.bf16.msra.mxu1 %v4424_v31  ;;  %v2832_v31 = vld [vmem:[#allocation11 + $0x9d0] sm:$0xff] }
 0x50c   : > { %4309 = vmatpush1.bf16.msra.mxu0 %v4308_v58  ;;  %v4342_v58 = vpack.c.bf16 %v2817_v60, %v2815_v38  ;;  %v3281_v50 = vld [vmem:[#allocation14 + $0x250] sm:$0xff]  ;;  %v3284_v46 = vld [vmem:[#allocation14 + $0x268] sm:$0xff] }
 0x50d   : > { %4311 = vmatprep.subr.bf16.mxu0 %v4310_v40  ;;  %v2814_v40 = vld [vmem:[#allocation11 + $0x940] sm:$0xff] }
 0x50e   : > { %v4344_v61 = vpack.c.bf16 %v2816_v44, %v2814_v40  ;;  %v3215_v40 = vld [vmem:[#allocation14 + $0x40] sm:$0xff]  ;;  %v3218_v44 = vld [vmem:[#allocation14 + $0x58] sm:$0xff] }
 0x510   : > { %4313 = vmatpush1.bf16.msra.mxu0 %v4312_v37  ;;  %v4350_v37 = vpack.c.bf16 %v2825_v0, %v2823_v59  ;;  %v3275_v59 = vld [vmem:[#allocation14 + $0x220] sm:$0xff]  ;;  %v3278_v0 = vld [vmem:[#allocation14 + $0x238] sm:$0xff] }
 0x511   : > { %4315 = vmatprep.subr.bf16.mxu0 %v4314_v1  ;;  %v2822_v1 = vld [vmem:[#allocation11 + $0x980] sm:$0xff] }
 0x512   : > { %v4352_v17 = vpack.c.bf16 %v2824_v27, %v2822_v1  ;;  %v3227_v1 = vld [vmem:[#allocation14 + $0xa0] sm:$0xff]  ;;  %v3230_v27 = vld [vmem:[#allocation14 + $0xb8] sm:$0xff] }
 0x514   : > { %4317 = vmatpush1.bf16.msra.mxu0 %v4316_v12  ;;  %v2833_v12 = vld [vmem:[#allocation11 + $0x9d8] sm:$0xff] }
 0x515   : > { %4319 = vmatprep.subr.bf16.mxu0 %v4318_v28  ;;  %v4356_v28 = vpack.c.bf16 %v2828_v49, %v2826_v6  ;;  %v4358_v16 = vpack.c.bf16 %v2833_v12, %v2831_v4  ;;  %v3233_v6 = vld [vmem:[#allocation14 + $0xd0] sm:$0xff]  ;;  %v3236_v49 = vld [vmem:[#allocation14 + $0xe8] sm:$0xff]  ;;  %v3287_v4 = vld [vmem:[#allocation14 + $0x280] sm:$0xff] }
 0x516   : > { %v3290_v12 = vld [vmem:[#allocation14 + $0x298] sm:$0xff] }
 0x518   : > { %4321 = vmatpush1.bf16.msra.mxu0 %v4320_v57  ;;  %v4360_v57 = vpack.c.bf16 %v2832_v31, %v2830_v8  ;;  %v3239_v8 = vld [vmem:[#allocation14 + $0x100] sm:$0xff]  ;;  %v3242_v31 = vld [vmem:[#allocation14 + $0x118] sm:$0xff] }
 0x519   : > { %4323 = vmatprep.subr.bf16.mxu0 %v4322_v24  ;;  %v4362_v24 = vpack.c.bf16 %v2837_v19, %v2835_v13  ;;  %v3293_v13 = vld [vmem:[#allocation14 + $0x2b0] sm:$0xff]  ;;  %v3296_v19 = vld [vmem:[#allocation14 + $0x2c8] sm:$0xff] }
 0x51c   : > { %4325 = vmatpush1.bf16.msra.mxu0 %v4324_v10 }
 0x51d   : > { %4327 = vmatprep.subr.bf16.mxu0 %v4326_v56  ;;  %v3298_v56 = vld [vmem:[#allocation14 + $0x2d8] sm:$0xff] }
 0x51e   : > { %v4426_v45 = vpack.c.bf16 %v3301_v26, %v3298_v56  ;;  %v3251_v26 = vld [vmem:[#allocation14 + $0x160] sm:$0xff] }
 0x520   : > { %4329 = vmatpush1.bf16.msra.mxu0 %v4328_v20  ;;  %v4428_v20 = vpack.c.bf16 %v3300_v3, %v3297_v15  ;;  %4427 = vmatprep.subr.bf16.mxu1 %v4426_v45  ;;  %v3254_v45 = vld [vmem:[#allocation14 + $0x178] sm:$0xff]  ;;  %v3303_v3 = vld [vmem:[#allocation16] sm:$0x7] }
 0x521   : > { %4331 = vmatprep.subr.bf16.mxu0 %v4330_v53  ;;  %v3257_v53 = vld [vmem:[#allocation14 + $0x190] sm:$0xff]  ;;  %v4460_v15 = vpack.c.bf16 %v3254_v45, %v3251_v26 }
 0x522   : > { %4429 = vmatpush1.bf16.msra.mxu1 %v4428_v20  ;;  %v4430_v43 = vpack.c.bf16 %v3260_v41, %v3257_v53  ;;  %v3308_v20 = vrot.slane %v3303_v3, %v6318_v63  ;;  %v3312_v53 = vrot.slane %v3303_v3, %v6321_v55 }
 0x524   : > { %4333 = vmatpush1.bf16.msra.mxu0 %v4332_v11  ;;  %4431 = vmatprep.subr.bf16.mxu1 %v4430_v43  ;;  %v2847_v11 = vrot.slane %v2838_v62, %v6321_v55 }
 0x525   : > { %4335 = vmatprep.subr.bf16.mxu0 %v4334_v52 }
 0x528   : > { %4337 = vmatpush1.bf16.msra.mxu0 %v4336_v39  ;;  %v3212_v39 = vld [vmem:[#allocation14 + $0x28] sm:$0xff] }
 0x529   : > { %4339 = vmatprep.subr.bf16.mxu0 %v4338_v48  ;;  %v4432_v60 = vpack.c.bf16 %v3212_v39, %v3209_v33 }
 0x52c   : > { %4341 = vmatpush1.bf16.msra.mxu0 %v4340_v2 }
 0x52d   : > { %4343 = vmatprep.subr.bf16.mxu0 %v4342_v58  ;;  %v4434_v58 = vpack.c.bf16 %v3266_v34, %v3263_v14 }
 0x530   : > { %4345 = vmatpush1.bf16.msra.mxu0 %v4344_v61  ;;  %v4436_v61 = vpack.c.bf16 %v3218_v44, %v3215_v40 }
 0x531   : > { %4347 = vmatprep.subr.bf16.mxu0 %v4346_v32  ;;  %v4438_v32 = vpack.c.bf16 %v3272_v22, %v3269_v23 }
 0x534   : > { %4349 = vmatpush1.bf16.msra.mxu0 %v4348_v36  ;;  %v4440_v36 = vpack.c.bf16 %v3224_v9, %v3221_v30 }
 0x535   : > { %4351 = vmatprep.subr.bf16.mxu0 %v4350_v37  ;;  %v4442_v37 = vpack.c.bf16 %v3278_v0, %v3275_v59 }
 0x538   : > { %4353 = vmatpush1.bf16.msra.mxu0 %v4352_v17  ;;  %v4444_v17 = vpack.c.bf16 %v3230_v27, %v3227_v1 }
 0x539   : > { %4355 = vmatprep.subr.bf16.mxu0 %v4354_v29  ;;  %v4446_v29 = vpack.c.bf16 %v3284_v46, %v3281_v50 }
 0x53c   : > { %4357 = vmatpush1.bf16.msra.mxu0 %v4356_v28  ;;  %v4448_v28 = vpack.c.bf16 %v3236_v49, %v3233_v6 }
 0x53d   : > { %4359 = vmatprep.subr.bf16.mxu0 %v4358_v16  ;;  %v4450_v16 = vpack.c.bf16 %v3290_v12, %v3287_v4 }
 0x540   : > { %4361 = vmatpush1.bf16.msra.mxu0 %v4360_v57  ;;  %v4452_v57 = vpack.c.bf16 %v3242_v31, %v3239_v8 }
 0x541   : > { %4363 = vmatprep.subr.bf16.mxu0 %v4362_v24  ;;  %v4454_v24 = vpack.c.bf16 %v3296_v19, %v3293_v13 }
 0x544   : > { %4365 = vmatpush1.bf16.msra.mxu0 %v4364_v21  ;;  %v3299_v21 = vld [vmem:[#allocation14 + $0x2e0] sm:$0xff] }
 0x547   : > { %3199 = vmatmul.mubr.f32.vlgmr.msra.gmra.mrb[28].mxu0 %v6375_v7 }
 0x556   : > { %v2916_v54 = vpop.f32.mrb[52].mxu1 }
 0x557   : > { %v2918_v10 = vpop.f32.mrb[53].mxu1  ;;  %v2917_v7 = vadd.f32 %v2916_v54, %v2843_v25  ;;  %v3302_v54 = vld [vmem:[#allocation14 + $0x2f8] sm:$0xff] }
 0x558   : > { %v2919_v52 = vadd.f32 %v2918_v10, %v2847_v11  ;;  %v4456_v10 = vpack.c.bf16 %v3248_v47, %v3245_v5  ;;  %v4458_v56 = vpack.c.bf16 %v3302_v54, %v3299_v21 }
 0x61a   : > { %v3200_v35 = vpop.f32.mrb[28].mxu0 }
 0x61b   : > { %v6386_v42 = vadd.f32 %v3200_v35, %v2917_v7  ;;  %v3202_v18 = vpop.f32.mrb[29].mxu0  ;;  %v3315_v7 = vsub.s32 2, %v6509_v51 }
 0x61c   : > { %v4483_v48 = vadd.f32 %v3202_v18, %v2919_v52 }
 0x61d   : > { %v3205_v2 = vmax.f32 %v6386_v42, 0.0  ;;  %v3316_v35 = vrot.slane %v3303_v3, %v3315_v7 }
 0x61e   : > { %v3206_v38 = vmax.f32 %v4483_v48, 0.0 }
 0x620   : > { %3384 = vmatprep.mubr.f32.mxu1 %v3206_v38 }
 0x621   : > { %3385 = vmatmul.mubr.f32.vlgmr.msra.gmra.mrb[54].mxu1 %v3205_v2 }
 0x622   : > { %4433 = vmatpush3.bf16.msra.mxu1 %v4432_v60  ;;  %3455 = vmatprep.mubr.f32.mxu1 %v3206_v38 }
 0x623   : > { %4435 = vmatprep.subr.bf16.mxu1 %v4434_v58 }
 0x626   : > { %4437 = vmatpush3.bf16.msra.mxu1 %v4436_v61 }
 0x627   : > { %4439 = vmatprep.subr.bf16.mxu1 %v4438_v32 }
 0x62a   : > { %4441 = vmatpush3.bf16.msra.mxu1 %v4440_v36 }
 0x62b   : > { %4443 = vmatprep.subr.bf16.mxu1 %v4442_v37 }
 0x62e   : > { %4445 = vmatpush3.bf16.msra.mxu1 %v4444_v17 }
 0x62f   : > { %4447 = vmatprep.subr.bf16.mxu1 %v4446_v29 }
 0x632   : > { %4449 = vmatpush3.bf16.msra.mxu1 %v4448_v28 }
 0x633   : > { %4451 = vmatprep.subr.bf16.mxu1 %v4450_v16 }
 0x636   : > { %4453 = vmatpush3.bf16.msra.mxu1 %v4452_v57 }
 0x637   : > { %4455 = vmatprep.subr.bf16.mxu1 %v4454_v24 }
 0x63a   : > { %4457 = vmatpush3.bf16.msra.mxu1 %v4456_v10 }
 0x63b   : > { %4459 = vmatprep.subr.bf16.mxu1 %v4458_v56 }
 0x63e   : > { %4461 = vmatpush3.bf16.msra.mxu1 %v4460_v15 }
 0x641   : > { %3456 = vmatmul.mubr.f32.vlgmr.msra.gmra.mrb[56].mxu1 %v3205_v2 }
 0x6f4   : > { %v3386_v41 = vpop.f32.mrb[54].mxu1 }
 0x6f5   : > { %v3387_v43 = vadd.f32 %v3386_v41, %v3308_v20  ;;  %v3388_v62 = vpop.f32.mrb[55].mxu1 }
 0x6f6   : > { %v3389_v25 = vadd.f32 %v3388_v62, %v3312_v53 }
 0x6f8   : > { %v3461_v11 = vmax.f32 %v3387_v43, %v3389_v25 }
 0x6fa   : > { %3462 = vmax.xlane.f32.xlu0 %v3461_v11 }
 0x714   : > { %v3804_v52 = vpop.f32.mrb[56].mxu1 }
 0x715   : > { %v3805_v42 = vpop.f32.mrb[57].mxu1 }
 0x716   : > { %v3806_v18 = vadd.f32 %v3805_v42, %v3804_v52 }
 0x718   : > { %v3458_v63 = vadd.f32 %v3806_v18, %v3316_v35 }
 0x71a   : > { %3479 = vst [vmem:[%s484_s15 + $0x10] sm:$0xff] %v3458_v63 }
 0x787   : > { %v3463_v55 = vpop.xlane.xlu0 %3462 }
 0x788   : > { %v3464_v33 = vsub.f32 %v3387_v43, %v3463_v55  ;;  %v3465_v39 = vsub.f32 %v3389_v25, %v3463_v55 }
 0x78a   : > { %v3466_v48 = vmul.f32 1.442695, %v3464_v33  ;;  %v3468_v14 = vmul.f32 1.442695, %v3465_v39 }
 0x78c   : > { %4726 = vpow2.f32 %v3466_v48 }
 0x78d   : > { %4728 = vpow2.f32 %v3468_v14 }
 0x796   : > { %v4727_v34 = vpop.eup %4726 }
 0x797   : > { %v4729_v51 = vpop.eup %4728 }
 0x798   : > { %v3470_v38 = vadd.f32 %v4729_v51, %v4727_v34 }
 0x79a   : > { %3471 = vadd.xlane.f32.xlu0 %v3470_v38 }
 0x827   : > { %v3472_v60 = vpop.xlane.xlu0 %3471 }
 0x828   : > { %4730 = vlog2.f32 %v3472_v60 }
 0x832   : > { %v4731_v2 = vpop.eup %4730 }
 0x833   : > { %v3474_v58 = vmul.f32 0.6931472, %v4731_v2 }
 0x835   : > { %v3475_v40 = vsub.f32 %v3464_v33, %v3474_v58  ;;  %v3476_v44 = vsub.f32 %v3465_v39, %v3474_v58 }
 0x837   : > { %3477 = vst [vmem:[%s484_s15] sm:$0xff] %v3475_v40  ;;  %3478 = vst [vmem:[%s484_s15 + $0x8] sm:$0xff] %v3476_v44 }
 0x838 PF: > { %s25_s13 = sadd.s32 1, %s5027_s13  }
 0x839   : > { %p22_p12 = scmp.ge.s32.totalorder %s25_s13, 4  }
 0x83b   :  { %24 = sbr.rel (!%p22_p12) target bundleno = 5 (0x5), region = 131 }
 0x842   :  { %3501 = vsyncpa [#allocation4], 1 }
 0x843   :  { %3503 = vsyncpa [#allocation4 + $0x1], 1 }
 0x844   :  { %3504 = vsyncpa [#allocation6], 1 }
 0x845   :  { %3505 = vsyncpa [#allocation9], 1 }
 0x846   :  { %3506 = vsyncpa [#allocation12], 1 }
 0x847   :  { %3507 = vsyncpa [#allocation15], 1 }

</bundles_post_ra>
